<compile_context>
chip_gen: v7x
topology: tpu7x:2x2x1
jax: 0.10.0
libtpu: 0.0.40
codegen_flags: <defaults>
</compile_context>

<pallas_src>
import math
import functools

import jax
import jax.numpy as jnp
from jax.experimental import pallas as pl
from jax.experimental.pallas import tpu as pltpu


# Scoped-VMEM budget: safe on v7x (64 MiB physical) and generous vs the 16/32 MiB defaults.
_VMEM_LIMIT = 48 * 1024 * 1024
_LN_EPS = 1e-5


# -----------------------------------------------------------------------------
# Tiling helper
# -----------------------------------------------------------------------------
def _fit_tile(dim, target, align):
    """Largest tile <= target that evenly divides `dim` and is `align`-aligned.

    Falls back to the full dim (a full-extent block is always a legal BlockSpec)."""
    if dim <= target:
        return dim
    for t in range(target, 0, -1):
        if dim % t == 0 and t % align == 0:
            return t
    return dim


# -----------------------------------------------------------------------------
# Pallas kernels
# -----------------------------------------------------------------------------
def _matmul_kernel(x_ref, w_ref, b_ref, o_ref, acc_ref):
    """Tiled y = x @ w + b with f32 accumulation over the K grid axis."""
    @pl.when(pl.program_id(2) == 0)
    def _():
        acc_ref[...] = jnp.zeros_like(acc_ref)

    acc_ref[...] += jnp.dot(x_ref[...], w_ref[...],
                            preferred_element_type=jnp.float32)

    @pl.when(pl.program_id(2) == pl.num_programs(2) - 1)
    def _():
        o_ref[...] = (acc_ref[...] + b_ref[...].astype(jnp.float32)).astype(o_ref.dtype)


def _ffn_ln_kernel(x_ref, w1_ref, b1_ref, w2_ref, b2_ref, g_ref, bln_ref, o_ref,
                   acc_ref, *, eps):
    """Fused FFN: acc += relu(x @ w1_chunk + b1_chunk) @ w2_chunk over dim_ff chunks,
    with residual add + LayerNorm fused into the finalize branch."""
    @pl.when(pl.program_id(1) == 0)
    def _():
        acc_ref[...] = jnp.zeros_like(acc_ref)

    h = jnp.dot(x_ref[...], w1_ref[...], preferred_element_type=jnp.float32)
    h = jnp.maximum(h + b1_ref[...].astype(jnp.float32), 0.0)
    acc_ref[...] += jnp.dot(h.astype(w2_ref.dtype), w2_ref[...],
                            preferred_element_type=jnp.float32)

    @pl.when(pl.program_id(1) == pl.num_programs(1) - 1)
    def _():
        y = (acc_ref[...] + b2_ref[...].astype(jnp.float32)
             + x_ref[...].astype(jnp.float32))                     # residual (post-norm)
        mu = jnp.mean(y, axis=-1, keepdims=True)
        var = jnp.mean((y - mu) ** 2, axis=-1, keepdims=True)
        y = (y - mu) * jax.lax.rsqrt(var + eps)
        y = y * g_ref[...].astype(jnp.float32) + bln_ref[...].astype(jnp.float32)
        o_ref[...] = y.astype(o_ref.dtype)


def _layernorm_kernel(x_ref, g_ref, b_ref, o_ref, *, eps):
    """Plain LayerNorm over the last dim (used only for the decoder's final norm)."""
    x = x_ref[...].astype(jnp.float32)
    mu = jnp.mean(x, axis=-1, keepdims=True)
    var = jnp.mean((x - mu) ** 2, axis=-1, keepdims=True)
    y = (x - mu) * jax.lax.rsqrt(var + eps)
    y = y * g_ref[...].astype(jnp.float32) + b_ref[...].astype(jnp.float32)
    o_ref[...] = y.astype(o_ref.dtype)


def _mha_ln_kernel(*refs, nhead, scale, eps, has_mask):
    """One (batch, q-tile) step of multi-head attention, fused with:
       output projection (per-head accumulation, no concat), residual add, LayerNorm.

    Softmax in f32 with deferred normalization; MXU operands in the stored (bf16) dtype."""
    if has_mask:
        q_ref, k_ref, v_ref, m_ref, wo_ref, bo_ref, res_ref, g_ref, bln_ref, o_ref = refs
    else:
        q_ref, k_ref, v_ref, wo_ref, bo_ref, res_ref, g_ref, bln_ref, o_ref = refs
        m_ref = None

    q = q_ref[0]                          # (tq, E)
    k = k_ref[0]                          # (Tk, E)
    v = v_ref[0]                          # (Tk, E)
    wo = wo_ref[...]                      # (E, E)
    tq, E = q.shape
    dh = E // nhead

    mask = m_ref[...].astype(jnp.float32) if m_ref is not None else None

    acc = jnp.zeros((tq, E), jnp.float32)
    for h in range(nhead):                # heads: each contribution is consumed immediately
        sl = slice(h * dh, (h + 1) * dh)
        # pre-scale the small (tq, dh) q slice instead of the (tq, Tk) score matrix
        qh = (q[:, sl].astype(jnp.float32) * scale).astype(q.dtype)
        s = jax.lax.dot_general(qh, k[:, sl], (((1,), (1,)), ((), ())),
                                preferred_element_type=jnp.float32)   # (tq, Tk)
        if mask is not None:
            s = s + mask
        m = jnp.max(s, axis=-1, keepdims=True)
        m = jnp.maximum(m, -1e30)                         # finite floor: fully-masked rows
        p = jnp.exp(s - m)
        l = jnp.sum(p, axis=-1, keepdims=True)
        l = jnp.where(l == 0.0, 1.0, l)                   # zero-denominator guard
        o_h = jnp.dot(p.astype(v.dtype), v[:, sl],
                      preferred_element_type=jnp.float32)             # (tq, dh)
        o_h = o_h / l                                     # deferred normalization (small)
        # fused output projection: accumulate this head's slice of Wo (no concat)
        acc = acc + jnp.dot(o_h.astype(wo.dtype), wo[sl, :],
                            preferred_element_type=jnp.float32)

    y = acc + bo_ref[...].astype(jnp.float32) + res_ref[0].astype(jnp.float32)
    mu = jnp.mean(y, axis=-1, keepdims=True)
    var = jnp.mean((y - mu) ** 2, axis=-1, keepdims=True)
    y = (y - mu) * jax.lax.rsqrt(var + eps)
    y = y * g_ref[...].astype(jnp.float32) + bln_ref[...].astype(jnp.float32)
    o_ref[0] = y.astype(o_ref.dtype)


# -----------------------------------------------------------------------------
# Pallas wrappers
# -----------------------------------------------------------------------------
def linear_pallas(x, w, b, tm=256, tn=512, tk=512):
    """x: (M, K) @ w: (K, N) + b -> (M, N), tiled + pipelined, f32 VMEM accumulator."""
    M, K = x.shape
    N = w.shape[1]
    tm = _fit_tile(M, tm, 8)
    tn = _fit_tile(N, tn, 128)
    tk = _fit_tile(K, tk, 128)
    grid = (M // tm, N // tn, K // tk)
    return pl.pallas_call(
        _matmul_kernel,
        out_shape=jax.ShapeDtypeStruct((M, N), x.dtype),
        grid=grid,
        in_specs=[
            pl.BlockSpec((tm, tk), lambda i, j, k: (i, k)),
            pl.BlockSpec((tk, tn), lambda i, j, k: (k, j)),
            pl.BlockSpec((1, tn), lambda i, j, k: (0, j)),
        ],
        out_specs=pl.BlockSpec((tm, tn), lambda i, j, k: (i, j)),
        scratch_shapes=[pltpu.VMEM((tm, tn), jnp.float32)],
        compiler_params=pltpu.CompilerParams(
            dimension_semantics=("parallel", "parallel", "arbitrary"),
            vmem_limit_bytes=_VMEM_LIMIT),
    )(x, w, b.reshape(1, N))


def ffn_ln_pallas(x, w1, b1, w2, b2, gamma, beta, tm=256, tf=512):
    """Fused relu-MLP + residual + LayerNorm: (M, E) -> (M, E) without materializing the
    (M, dim_ff) intermediate or a separate LN pass.
    Note: for E >= 4096 on v7x (64 MiB VMEM) drop tf to 256 or lower the VMEM budget."""
    M, E = x.shape
    FF = w1.shape[1]
    tm = _fit_tile(M, tm, 8)
    tf = _fit_tile(FF, tf, 128)
    grid = (M // tm, FF // tf)
    return pl.pallas_call(
        functools.partial(_ffn_ln_kernel, eps=_LN_EPS),
        out_shape=jax.ShapeDtypeStruct((M, E), x.dtype),
        grid=grid,
        in_specs=[
            pl.BlockSpec((tm, E), lambda i, f: (i, 0)),
            pl.BlockSpec((E, tf), lambda i, f: (0, f)),
            pl.BlockSpec((1, tf), lambda i, f: (0, f)),
            pl.BlockSpec((tf, E), lambda i, f: (f, 0)),
            pl.BlockSpec((1, E), lambda i, f: (0, 0)),
            pl.BlockSpec((1, E), lambda i, f: (0, 0)),
            pl.BlockSpec((1, E), lambda i, f: (0, 0)),
        ],
        out_specs=pl.BlockSpec((tm, E), lambda i, f: (i, 0)),
        scratch_shapes=[pltpu.VMEM((tm, E), jnp.float32)],
        compiler_params=pltpu.CompilerParams(
            dimension_semantics=("parallel", "arbitrary"),
            vmem_limit_bytes=_VMEM_LIMIT),
    )(x, w1, b1.reshape(1, FF), w2, b2.reshape(1, E),
      gamma.reshape(1, E), beta.reshape(1, E))


def layernorm_pallas(x, gamma, beta, tm=512):
    """LayerNorm over the last dim, row-tiled (final decoder norm only)."""
    N, D = x.shape
    tm = _fit_tile(N, tm, 8)
    grid = (N // tm,)
    return pl.pallas_call(
        functools.partial(_layernorm_kernel, eps=_LN_EPS),
        out_shape=jax.ShapeDtypeStruct((N, D), x.dtype),
        grid=grid,
        in_specs=[pl.BlockSpec((tm, D), lambda i: (i, 0)),
                  pl.BlockSpec((1, D), lambda i: (0, 0)),
                  pl.BlockSpec((1, D), lambda i: (0, 0))],
        out_specs=pl.BlockSpec((tm, D), lambda i: (i, 0)),
        compiler_params=pltpu.CompilerParams(
            dimension_semantics=("parallel",),
            vmem_limit_bytes=_VMEM_LIMIT),
    )(x, gamma.reshape(1, D), beta.reshape(1, D))


def mha_ln_pallas(q_arr, k_arr, v_arr, q_col, k_col, v_col,
                  wo, bo, residual, gamma, beta, nhead, mask=None, tq=256):
    """Fused multi-head attention block.

    q_arr/k_arr/v_arr may be packed projection outputs (e.g. the (B,T,3E) QKV or
    (B,S,2E) KV tensors); q_col/k_col/v_col select which E-wide column block to read,
    so no XLA slices / HBM copies are needed between the projection and the attention.

    Computes  LN(residual + OutProj(MHA(q, k, v)))  per (batch, q-tile) grid step."""
    B, Tq, _ = q_arr.shape
    Tk = k_arr.shape[1]
    E = residual.shape[-1]
    assert E % nhead == 0, "d_model must be divisible by nhead"
    scale = 1.0 / math.sqrt(E // nhead)
    tq = _fit_tile(Tq, tq, 8)
    grid = (B, Tq // tq)

    in_specs = [
        pl.BlockSpec((1, tq, E), lambda b, i: (b, i, q_col)),
        pl.BlockSpec((1, Tk, E), lambda b, i: (b, 0, k_col)),
        pl.BlockSpec((1, Tk, E), lambda b, i: (b, 0, v_col)),
    ]
    args = [q_arr, k_arr, v_arr]
    if mask is not None:
        in_specs.append(pl.BlockSpec((tq, Tk), lambda b, i: (i, 0)))
        args.append(mask)
    in_specs += [
        pl.BlockSpec((E, E), lambda b, i: (0, 0)),        # Wo (resident in VMEM)
        pl.BlockSpec((1, E), lambda b, i: (0, 0)),        # bo
        pl.BlockSpec((1, tq, E), lambda b, i: (b, i, 0)),  # residual
        pl.BlockSpec((1, E), lambda b, i: (0, 0)),        # LN gamma
        pl.BlockSpec((1, E), lambda b, i: (0, 0)),        # LN beta
    ]
    args += [wo, bo.reshape(1, E), residual, gamma.reshape(1, E), beta.reshape(1, E)]

    # TODO(synk): flash-style online-softmax tiling over Tk for very long memory lengths.
    return pl.pallas_call(
        functools.partial(_mha_ln_kernel, nhead=nhead, scale=scale, eps=_LN_EPS,
                          has_mask=mask is not None),
        out_shape=jax.ShapeDtypeStruct((B, Tq, E), residual.dtype),
        grid=grid,
        in_specs=in_specs,
        out_specs=pl.BlockSpec((1, tq, E), lambda b, i: (b, i, 0)),
        compiler_params=pltpu.CompilerParams(
            dimension_semantics=("parallel", "parallel"),
            vmem_limit_bytes=_VMEM_LIMIT),
    )(*args)


# -----------------------------------------------------------------------------
# Model glue (batch-first internally)
# -----------------------------------------------------------------------------
def decoder_layer_forward(x, memory, p, nhead, tgt_mask=None, memory_mask=None):
    """x: (B, T, E), memory: (B, S, E). Post-norm layer, dropout = identity (eval)."""
    B, T, E = x.shape
    S = memory.shape[1]

    # --- self attention: fused QKV projection; attn + out-proj + residual + LN1 fused ---
    qkv = linear_pallas(x.reshape(B * T, E), p["sa_w_qkv"], p["sa_b_qkv"]).reshape(B, T, 3 * E)
    x = mha_ln_pallas(qkv, qkv, qkv, 0, 1, 2,
                      p["sa_wo"], p["sa_bo"], residual=x,
                      gamma=p["ln1_g"], beta=p["ln1_b"],
                      nhead=nhead, mask=tgt_mask)

    # --- cross attention: fused KV projection over memory; attn + out-proj + res + LN2 ---
    q = linear_pallas(x.reshape(B * T, E), p["ca_wq"], p["ca_bq"]).reshape(B, T, E)
    kv = linear_pallas(memory.reshape(B * S, E),
                       p["ca_w_kv"], p["ca_b_kv"]).reshape(B, S, 2 * E)
    x = mha_ln_pallas(q, kv, kv, 0, 0, 1,
                      p["ca_wo"], p["ca_bo"], residual=x,
                      gamma=p["ln2_g"], beta=p["ln2_b"],
                      nhead=nhead, mask=memory_mask)

    # --- feed-forward: single fused kernel incl. residual + LN3 ---
    x2 = ffn_ln_pallas(x.reshape(B * T, E), p["w1"], p["b1"], p["w2"], p["b2"],
                       p["ln3_g"], p["ln3_b"])
    return x2.reshape(B, T, E)


def transformer_decoder_forward(tgt, memory, params, nhead,
                                tgt_mask=None, memory_mask=None, need_weights=False):
    """Equivalent of TransformerDecoder.forward (need_weights=False path, norm=LayerNorm)."""
    # TODO(synk): need_weights=True (per-layer sigma / attention weights), key-padding
    #             masks, and the BatchNorm1d norm branch are not plumbed through Pallas.
    compute_dtype = params["layers"][0]["sa_w_qkv"].dtype
    T, B, E = tgt.shape
    x = tgt.astype(compute_dtype).transpose(1, 0, 2)        # (B, T, E)
    mem = memory.astype(compute_dtype).transpose(1, 0, 2)   # (B, S, E)
    if tgt_mask is not None:
        tgt_mask = tgt_mask.astype(compute_dtype)
    if memory_mask is not None:
        memory_mask = memory_mask.astype(compute_dtype)

    for lp in params["layers"]:
        x = decoder_layer_forward(x, mem, lp, nhead, tgt_mask, memory_mask)

    out = layernorm_pallas(x.reshape(B * T, E), params["norm_g"], params["norm_b"])
    out = out.reshape(B, T, E).transpose(1, 0, 2).astype(tgt.dtype)
    return out, None, None


# -----------------------------------------------------------------------------
# Deterministic parameter initialization (bf16 weights feeding the MXU)
# -----------------------------------------------------------------------------
def init_params(key, num_layers, d_model, nhead, dim_ff, dtype=jnp.bfloat16):
    def dense(k, din, dout):
        return (0.02 * jax.random.normal(k, (din, dout), dtype=jnp.float32)).astype(dtype)

    layers = []
    for _ in range(num_layers):
        key, *ks = jax.random.split(key, 8)
        layers.append({
            "sa_w_qkv": dense(ks[0], d_model, 3 * d_model),
            "sa_b_qkv": jnp.zeros((3 * d_model,), dtype),
            "sa_wo": dense(ks[1], d_model, d_model), "sa_bo": jnp.zeros((d_model,), dtype),
            "ca_wq": dense(ks[2], d_model, d_model), "ca_bq": jnp.zeros((d_model,), dtype),
            "ca_w_kv": dense(ks[3], d_model, 2 * d_model),
            "ca_b_kv": jnp.zeros((2 * d_model,), dtype),
            "ca_wo": dense(ks[4], d_model, d_model), "ca_bo": jnp.zeros((d_model,), dtype),
            "w1": dense(ks[5], d_model, dim_ff), "b1": jnp.zeros((dim_ff,), dtype),
            "w2": dense(ks[6], dim_ff, d_model), "b2": jnp.zeros((d_model,), dtype),
            "ln1_g": jnp.ones((d_model,), jnp.float32), "ln1_b": jnp.zeros((d_model,), jnp.float32),
            "ln2_g": jnp.ones((d_model,), jnp.float32), "ln2_b": jnp.zeros((d_model,), jnp.float32),
            "ln3_g": jnp.ones((d_model,), jnp.float32), "ln3_b": jnp.zeros((d_model,), jnp.float32),
        })
    return {
        "layers": layers,
        "norm_g": jnp.ones((d_model,), jnp.float32),
        "norm_b": jnp.zeros((d_model,), jnp.float32),
    }


# -----------------------------------------------------------------------------
# Main
# -----------------------------------------------------------------------------
if __name__ == "__main__":
    # Small but lane-aligned config (E multiple of 128 keeps every BlockSpec legal).
    d_model = 128
    nhead = 4
    dim_ff = 256
    num_layers = 2
    T, S, B = 8, 16, 2   # tgt len, memory len, batch

    key = jax.random.PRNGKey(0)
    k_tgt, k_mem, k_par = jax.random.split(key, 3)

    tgt = jax.random.normal(k_tgt, (T, B, d_model), dtype=jnp.float32)
    memory = jax.random.normal(k_mem, (S, B, d_model), dtype=jnp.float32)
    params = init_params(k_par, num_layers, d_model, nhead, dim_ff, dtype=jnp.bfloat16)

    # causal additive mask for the target (like generate_square_subsequent_mask)
    causal = jnp.where(jnp.arange(T)[None, :] <= jnp.arange(T)[:, None],
                       0.0, -jnp.inf).astype(jnp.float32)

    fwd = jax.jit(functools.partial(transformer_decoder_forward, nhead=nhead))
    out, sigma, attn_w = fwd(tgt, memory, params, tgt_mask=causal)
    out = jax.block_until_ready(out)

    assert out.shape == (T, B, d_model)
    assert bool(jnp.all(jnp.isfinite(out)))
    print("KERNEL_OK")
</pallas_src>

<mosaic_0001>
module attributes {stable_mosaic.version = 11 : i64} {
  func.func @_matmul_kernel(%arg0: i32, %arg1: i32, %arg2: i32, %arg3: memref<16x128xbf16, #tpu.memory_space<vmem>>, %arg4: memref<128x384xbf16, #tpu.memory_space<vmem>>, %arg5: memref<1x384xbf16, #tpu.memory_space<vmem>>, %arg6: memref<16x384xbf16, #tpu.memory_space<vmem>>, %arg7: memref<16x384xf32, #tpu.memory_space<vmem>>) attributes {dimension_semantics = [#tpu.dimension_semantics<parallel>, #tpu.dimension_semantics<parallel>, #tpu.dimension_semantics<arbitrary>], iteration_bounds = array<i64: 1, 1, 1>, scalar_prefetch = 0 : i64, scratch_operands = 1 : i64, tpu.core_type = #tpu.core_type<tc>, window_params = [{transform_indices = @transform_0, window_bounds = array<i64: 16, 128>}, {transform_indices = @transform_1, window_bounds = array<i64: 128, 384>}, {transform_indices = @transform_2, window_bounds = array<i64: 1, 384>}, {transform_indices = @transform_3, window_bounds = array<i64: 16, 384>}]} {
    %c0_i32 = arith.constant 0 : i32
    %0 = arith.cmpi eq, %arg2, %c0_i32 : i32
    %1 = arith.extui %0 : i1 to i32
    %c0_i32_0 = arith.constant 0 : i32
    %2 = arith.cmpi ne, %1, %c0_i32_0 : i32
    scf.if %2 {
      %cst_10 = arith.constant 0.000000e+00 : f32
      %12 = vector.broadcast %cst_10 : f32 to vector<16x384xf32>
      %c0_11 = arith.constant 0 : index
      %c0_12 = arith.constant 0 : index
      %13 = vector.load %arg7[%c0_11, %c0_12] : memref<16x384xf32, #tpu.memory_space<vmem>>, vector<16x384xf32>
      tpu.vector_store %arg7[%c0_11, %c0_12], %12 {strides = array<i32>} : memref<16x384xf32, #tpu.memory_space<vmem>>, vector<16x384xf32>,
    } else {
    }
    %c0 = arith.constant 0 : index
    %c0_1 = arith.constant 0 : index
    %3 = vector.load %arg7[%c0, %c0_1] : memref<16x384xf32, #tpu.memory_space<vmem>>, vector<16x384xf32>
    %c0_2 = arith.constant 0 : index
    %c0_3 = arith.constant 0 : index
    %4 = vector.load %arg3[%c0_2, %c0_3] : memref<16x128xbf16, #tpu.memory_space<vmem>>, vector<16x128xbf16>
    %c0_4 = arith.constant 0 : index
    %c0_5 = arith.constant 0 : index
    %5 = vector.load %arg4[%c0_4, %c0_5] : memref<128x384xbf16, #tpu.memory_space<vmem>>, vector<128x384xbf16>
    %cst = arith.constant dense<0.000000e+00> : vector<16x384xf32>
    %6 = tpu.matmul %4, %5, %cst {dimension_numbers = #tpu.dot_dimension_numbers<[1], [0], [0], [1], [0, 0, 1, 1], [], []>} : vector<16x128xbf16>, vector<128x384xbf16>, vector<16x384xf32> -> vector<16x384xf32>
    %7 = arith.addf %3, %6 : vector<16x384xf32>
    %c0_6 = arith.constant 0 : index
    %c0_7 = arith.constant 0 : index
    %8 = vector.load %arg7[%c0_6, %c0_7] : memref<16x384xf32, #tpu.memory_space<vmem>>, vector<16x384xf32>
    tpu.vector_store %arg7[%c0_6, %c0_7], %7 {strides = array<i32>} : memref<16x384xf32, #tpu.memory_space<vmem>>, vector<16x384xf32>,
    %c0_i32_8 = arith.constant 0 : i32
    %9 = arith.cmpi eq, %arg2, %c0_i32_8 : i32
    %10 = arith.extui %9 : i1 to i32
    %c0_i32_9 = arith.constant 0 : i32
    %11 = arith.cmpi ne, %10, %c0_i32_9 : i32
    scf.if %11 {
      %c0_10 = arith.constant 0 : index
      %c0_11 = arith.constant 0 : index
      %12 = vector.load %arg7[%c0_10, %c0_11] : memref<16x384xf32, #tpu.memory_space<vmem>>, vector<16x384xf32>
      %c0_12 = arith.constant 0 : index
      %c0_13 = arith.constant 0 : index
      %13 = vector.load %arg5[%c0_12, %c0_13] : memref<1x384xbf16, #tpu.memory_space<vmem>>, vector<1x384xbf16>
      %14 = arith.extf %13 : vector<1x384xbf16> to vector<1x384xf32>
      %15 = vector.broadcast %14 : vector<1x384xf32> to vector<16x384xf32>
      %16 = arith.addf %12, %15 : vector<16x384xf32>
      %17 = arith.truncf %16 : vector<16x384xf32> to vector<16x384xbf16>
      %c0_14 = arith.constant 0 : index
      %c0_15 = arith.constant 0 : index
      %18 = vector.load %arg6[%c0_14, %c0_15] : memref<16x384xbf16, #tpu.memory_space<vmem>>, vector<16x384xbf16>
      tpu.vector_store %arg6[%c0_14, %c0_15], %17 {strides = array<i32>} : memref<16x384xbf16, #tpu.memory_space<vmem>>, vector<16x384xbf16>,
    } else {
    }
    return
  }
  func.func @transform_0(%arg0: i32, %arg1: i32, %arg2: i32) -> (i32, i32) {
    %c0_i32 = arith.constant 0 : i32
    return %arg0, %arg2 : i32, i32
  }
  func.func @transform_1(%arg0: i32, %arg1: i32, %arg2: i32) -> (i32, i32) {
    %c0_i32 = arith.constant 0 : i32
    return %arg2, %arg1 : i32, i32
  }
  func.func @transform_2(%arg0: i32, %arg1: i32, %arg2: i32) -> (i32, i32) {
    %c0_i32 = arith.constant 0 : i32
    %c0_i32_0 = arith.constant 0 : i32
    return %c0_i32, %arg1 : i32, i32
  }
  func.func @transform_3(%arg0: i32, %arg1: i32, %arg2: i32) -> (i32, i32) {
    %c0_i32 = arith.constant 0 : i32
    return %arg0, %arg1 : i32, i32
  }
}

module attributes {stable_mosaic.version = 11 : i64} {
  func.func @_matmul_kernel(%arg0: i32, %arg1: i32, %arg2: i32, %arg3: memref<32x128xbf16, #tpu.memory_space<vmem>>, %arg4: memref<128x256xbf16, #tpu.memory_space<vmem>>, %arg5: memref<1x256xbf16, #tpu.memory_space<vmem>>, %arg6: memref<32x256xbf16, #tpu.memory_space<vmem>>, %arg7: memref<32x256xf32, #tpu.memory_space<vmem>>) attributes {dimension_semantics = [#tpu.dimension_semantics<parallel>, #tpu.dimension_semantics<parallel>, #tpu.dimension_semantics<arbitrary>], iteration_bounds = array<i64: 1, 1, 1>, scalar_prefetch = 0 : i64, scratch_operands = 1 : i64, tpu.core_type = #tpu.core_type<tc>, window_params = [{transform_indices = @transform_0, window_bounds = array<i64: 32, 128>}, {transform_indices = @transform_1, window_bounds = array<i64: 128, 256>}, {transform_indices = @transform_2, window_bounds = array<i64: 1, 256>}, {transform_indices = @transform_3, window_bounds = array<i64: 32, 256>}]} {
    %c0_i32 = arith.constant 0 : i32
    %0 = arith.cmpi eq, %arg2, %c0_i32 : i32
    %1 = arith.extui %0 : i1 to i32
    %c0_i32_0 = arith.constant 0 : i32
    %2 = arith.cmpi ne, %1, %c0_i32_0 : i32
    scf.if %2 {
      %cst_10 = arith.constant 0.000000e+00 : f32
      %12 = vector.broadcast %cst_10 : f32 to vector<32x256xf32>
      %c0_11 = arith.constant 0 : index
      %c0_12 = arith.constant 0 : index
      %13 = vector.load %arg7[%c0_11, %c0_12] : memref<32x256xf32, #tpu.memory_space<vmem>>, vector<32x256xf32>
      tpu.vector_store %arg7[%c0_11, %c0_12], %12 {strides = array<i32>} : memref<32x256xf32, #tpu.memory_space<vmem>>, vector<32x256xf32>,
    } else {
    }
    %c0 = arith.constant 0 : index
    %c0_1 = arith.constant 0 : index
    %3 = vector.load %arg7[%c0, %c0_1] : memref<32x256xf32, #tpu.memory_space<vmem>>, vector<32x256xf32>
    %c0_2 = arith.constant 0 : index
    %c0_3 = arith.constant 0 : index
    %4 = vector.load %arg3[%c0_2, %c0_3] : memref<32x128xbf16, #tpu.memory_space<vmem>>, vector<32x128xbf16>
    %c0_4 = arith.constant 0 : index
    %c0_5 = arith.constant 0 : index
    %5 = vector.load %arg4[%c0_4, %c0_5] : memref<128x256xbf16, #tpu.memory_space<vmem>>, vector<128x256xbf16>
    %cst = arith.constant dense<0.000000e+00> : vector<32x256xf32>
    %6 = tpu.matmul %4, %5, %cst {dimension_numbers = #tpu.dot_dimension_numbers<[1], [0], [0], [1], [0, 0, 1, 1], [], []>} : vector<32x128xbf16>, vector<128x256xbf16>, vector<32x256xf32> -> vector<32x256xf32>
    %7 = arith.addf %3, %6 : vector<32x256xf32>
    %c0_6 = arith.constant 0 : index
    %c0_7 = arith.constant 0 : index
    %8 = vector.load %arg7[%c0_6, %c0_7] : memref<32x256xf32, #tpu.memory_space<vmem>>, vector<32x256xf32>
    tpu.vector_store %arg7[%c0_6, %c0_7], %7 {strides = array<i32>} : memref<32x256xf32, #tpu.memory_space<vmem>>, vector<32x256xf32>,
    %c0_i32_8 = arith.constant 0 : i32
    %9 = arith.cmpi eq, %arg2, %c0_i32_8 : i32
    %10 = arith.extui %9 : i1 to i32
    %c0_i32_9 = arith.constant 0 : i32
    %11 = arith.cmpi ne, %10, %c0_i32_9 : i32
    scf.if %11 {
      %c0_10 = arith.constant 0 : index
      %c0_11 = arith.constant 0 : index
      %12 = vector.load %arg7[%c0_10, %c0_11] : memref<32x256xf32, #tpu.memory_space<vmem>>, vector<32x256xf32>
      %c0_12 = arith.constant 0 : index
      %c0_13 = arith.constant 0 : index
      %13 = vector.load %arg5[%c0_12, %c0_13] : memref<1x256xbf16, #tpu.memory_space<vmem>>, vector<1x256xbf16>
      %14 = arith.extf %13 : vector<1x256xbf16> to vector<1x256xf32>
      %15 = vector.broadcast %14 : vector<1x256xf32> to vector<32x256xf32>
      %16 = arith.addf %12, %15 : vector<32x256xf32>
      %17 = arith.truncf %16 : vector<32x256xf32> to vector<32x256xbf16>
      %c0_14 = arith.constant 0 : index
      %c0_15 = arith.constant 0 : index
      %18 = vector.load %arg6[%c0_14, %c0_15] : memref<32x256xbf16, #tpu.memory_space<vmem>>, vector<32x256xbf16>
      tpu.vector_store %arg6[%c0_14, %c0_15], %17 {strides = array<i32>} : memref<32x256xbf16, #tpu.memory_space<vmem>>, vector<32x256xbf16>,
    } else {
    }
    return
  }
  func.func @transform_0(%arg0: i32, %arg1: i32, %arg2: i32) -> (i32, i32) {
    %c0_i32 = arith.constant 0 : i32
    return %arg0, %arg2 : i32, i32
  }
  func.func @transform_1(%arg0: i32, %arg1: i32, %arg2: i32) -> (i32, i32) {
    %c0_i32 = arith.constant 0 : i32
    return %arg2, %arg1 : i32, i32
  }
  func.func @transform_2(%arg0: i32, %arg1: i32, %arg2: i32) -> (i32, i32) {
    %c0_i32 = arith.constant 0 : i32
    %c0_i32_0 = arith.constant 0 : i32
    return %c0_i32, %arg1 : i32, i32
  }
  func.func @transform_3(%arg0: i32, %arg1: i32, %arg2: i32) -> (i32, i32) {
    %c0_i32 = arith.constant 0 : i32
    return %arg0, %arg1 : i32, i32
  }
}

module attributes {stable_mosaic.version = 11 : i64} {
  func.func @_mha_ln_kernel(%arg0: i32, %arg1: i32, %arg2: memref<1x8x128xbf16, #tpu.memory_space<vmem>>, %arg3: memref<1x8x128xbf16, #tpu.memory_space<vmem>>, %arg4: memref<1x8x128xbf16, #tpu.memory_space<vmem>>, %arg5: memref<8x8xbf16, #tpu.memory_space<vmem>>, %arg6: memref<128x128xbf16, #tpu.memory_space<vmem>>, %arg7: memref<1x128xbf16, #tpu.memory_space<vmem>>, %arg8: memref<1x8x128xbf16, #tpu.memory_space<vmem>>, %arg9: memref<1x128xf32, #tpu.memory_space<vmem>>, %arg10: memref<1x128xf32, #tpu.memory_space<vmem>>, %arg11: memref<1x8x128xbf16, #tpu.memory_space<vmem>>) attributes {dimension_semantics = [#tpu.dimension_semantics<parallel>, #tpu.dimension_semantics<parallel>], iteration_bounds = array<i64: 2, 1>, scalar_prefetch = 0 : i64, scratch_operands = 0 : i64, tpu.core_type = #tpu.core_type<tc>, window_params = [{transform_indices = @transform_0, window_bounds = array<i64: 1, 8, 128>}, {transform_indices = @transform_1, window_bounds = array<i64: 1, 8, 128>}, {transform_indices = @transform_2, window_bounds = array<i64: 1, 8, 128>}, {transform_indices = @transform_3, window_bounds = array<i64: 8, 8>}, {pipeline_mode = #tpu.pipeline_mode<synchronous>, transform_indices = @transform_4, window_bounds = array<i64: 128, 128>}, {pipeline_mode = #tpu.pipeline_mode<synchronous>, transform_indices = @transform_5, window_bounds = array<i64: 1, 128>}, {transform_indices = @transform_6, window_bounds = array<i64: 1, 8, 128>}, {pipeline_mode = #tpu.pipeline_mode<synchronous>, transform_indices = @transform_7, window_bounds = array<i64: 1, 128>}, {pipeline_mode = #tpu.pipeline_mode<synchronous>, transform_indices = @transform_8, window_bounds = array<i64: 1, 128>}, {transform_indices = @transform_9, window_bounds = array<i64: 1, 8, 128>}]} {
    %c0 = arith.constant 0 : index
    %c0_0 = arith.constant 0 : index
    %c0_1 = arith.constant 0 : index
    %0 = vector.load %arg2[%c0, %c0_0, %c0_1] : memref<1x8x128xbf16, #tpu.memory_space<vmem>>, vector<1x8x128xbf16>
    %1 = vector.shape_cast %0 : vector<1x8x128xbf16> to vector<8x128xbf16>
    %c0_2 = arith.constant 0 : index
    %c0_3 = arith.constant 0 : index
    %c0_4 = arith.constant 0 : index
    %2 = vector.load %arg3[%c0_2, %c0_3, %c0_4] : memref<1x8x128xbf16, #tpu.memory_space<vmem>>, vector<1x8x128xbf16>
    %3 = vector.shape_cast %2 : vector<1x8x128xbf16> to vector<8x128xbf16>
    %c0_5 = arith.constant 0 : index
    %c0_6 = arith.constant 0 : index
    %c0_7 = arith.constant 0 : index
    %4 = vector.load %arg4[%c0_5, %c0_6, %c0_7] : memref<1x8x128xbf16, #tpu.memory_space<vmem>>, vector<1x8x128xbf16>
    %5 = vector.shape_cast %4 : vector<1x8x128xbf16> to vector<8x128xbf16>
    %c0_8 = arith.constant 0 : index
    %c0_9 = arith.constant 0 : index
    %6 = vector.load %arg6[%c0_8, %c0_9] : memref<128x128xbf16, #tpu.memory_space<vmem>>, vector<128x128xbf16>
    %c0_10 = arith.constant 0 : index
    %c0_11 = arith.constant 0 : index
    %7 = vector.load %arg5[%c0_10, %c0_11] : memref<8x8xbf16, #tpu.memory_space<vmem>>, vector<8x8xbf16>
    %8 = arith.extf %7 : vector<8x8xbf16> to vector<8x8xf32>
    %cst = arith.constant 0.000000e+00 : f32
    %9 = vector.broadcast %cst : f32 to vector<8x128xf32>
    %10 = vector.extract_strided_slice %1 {offsets = [0, 0], sizes = [8, 32], strides = [1, 1]} : vector<8x128xbf16> to vector<8x32xbf16>
    %11 = arith.extf %10 : vector<8x32xbf16> to vector<8x32xf32>
    %cst_12 = arith.constant 0.176776692 : f32
    %12 = vector.broadcast %cst_12 : f32 to vector<8x32xf32>
    %13 = arith.mulf %11, %12 : vector<8x32xf32>
    %14 = arith.truncf %13 : vector<8x32xf32> to vector<8x32xbf16>
    %15 = vector.extract_strided_slice %3 {offsets = [0, 0], sizes = [8, 32], strides = [1, 1]} : vector<8x128xbf16> to vector<8x32xbf16>
    %cst_13 = arith.constant dense<0.000000e+00> : vector<8x8xf32>
    %16 = tpu.matmul %14, %15, %cst_13 {dimension_numbers = #tpu.dot_dimension_numbers<[1], [1], [0], [0], [0, 0, 1, 0], [], []>} : vector<8x32xbf16>, vector<8x32xbf16>, vector<8x8xf32> -> vector<8x8xf32>
    %17 = arith.addf %16, %8 : vector<8x8xf32>
    %cst_14 = arith.constant dense<0xFF800000> : vector<8xf32>
    %18 = vector.multi_reduction <maximumf>, %17, %cst_14 [1] : vector<8x8xf32> to vector<8xf32>
    %19 = vector.shape_cast %18 : vector<8xf32> to vector<8x1xf32>
    %cst_15 = arith.constant -1.000000e+30 : f32
    %20 = vector.broadcast %cst_15 : f32 to vector<8x1xf32>
    %21 = arith.maximumf %19, %20 : vector<8x1xf32>
    %22 = vector.broadcast %21 : vector<8x1xf32> to vector<8x8xf32>
    %23 = arith.subf %17, %22 : vector<8x8xf32>
    %24 = math.exp %23 : vector<8x8xf32>
    %cst_16 = arith.constant dense<0.000000e+00> : vector<8xf32>
    %25 = vector.multi_reduction <add>, %24, %cst_16 [1] : vector<8x8xf32> to vector<8xf32>
    %26 = vector.shape_cast %25 : vector<8xf32> to vector<8x1xf32>
    %cst_17 = arith.constant 0.000000e+00 : f32
    %27 = vector.broadcast %cst_17 : f32 to vector<8x1xf32>
    %28 = arith.cmpf oeq, %26, %27 : vector<8x1xf32>
    %cst_18 = arith.constant 1.000000e+00 : f32
    %29 = vector.broadcast %cst_18 : f32 to vector<8x1xf32>
    %30 = arith.select %28, %29, %26 : vector<8x1xi1>, vector<8x1xf32>
    %31 = arith.truncf %24 : vector<8x8xf32> to vector<8x8xbf16>
    %32 = vector.extract_strided_slice %5 {offsets = [0, 0], sizes = [8, 32], strides = [1, 1]} : vector<8x128xbf16> to vector<8x32xbf16>
    %cst_19 = arith.constant dense<0.000000e+00> : vector<8x32xf32>
    %33 = tpu.matmul %31, %32, %cst_19 {dimension_numbers = #tpu.dot_dimension_numbers<[1], [0], [0], [1], [0, 0, 1, 1], [], []>} : vector<8x8xbf16>, vector<8x32xbf16>, vector<8x32xf32> -> vector<8x32xf32>
    %34 = vector.broadcast %30 : vector<8x1xf32> to vector<8x32xf32>
    %35 = arith.divf %33, %34 : vector<8x32xf32>
    %36 = arith.truncf %35 : vector<8x32xf32> to vector<8x32xbf16>
    %37 = vector.extract_strided_slice %6 {offsets = [0, 0], sizes = [32, 128], strides = [1, 1]} : vector<128x128xbf16> to vector<32x128xbf16>
    %cst_20 = arith.constant dense<0.000000e+00> : vector<8x128xf32>
    %38 = tpu.matmul %36, %37, %cst_20 {dimension_numbers = #tpu.dot_dimension_numbers<[1], [0], [0], [1], [0, 0, 1, 1], [], []>} : vector<8x32xbf16>, vector<32x128xbf16>, vector<8x128xf32> -> vector<8x128xf32>
    %39 = arith.addf %9, %38 : vector<8x128xf32>
    %40 = vector.extract_strided_slice %1 {offsets = [0, 32], sizes = [8, 32], strides = [1, 1]} : vector<8x128xbf16> to vector<8x32xbf16>
    %41 = arith.extf %40 : vector<8x32xbf16> to vector<8x32xf32>
    %cst_21 = arith.constant 0.176776692 : f32
    %42 = vector.broadcast %cst_21 : f32 to vector<8x32xf32>
    %43 = arith.mulf %41, %42 : vector<8x32xf32>
    %44 = arith.truncf %43 : vector<8x32xf32> to vector<8x32xbf16>
    %45 = vector.extract_strided_slice %3 {offsets = [0, 32], sizes = [8, 32], strides = [1, 1]} : vector<8x128xbf16> to vector<8x32xbf16>
    %cst_22 = arith.constant dense<0.000000e+00> : vector<8x8xf32>
    %46 = tpu.matmul %44, %45, %cst_22 {dimension_numbers = #tpu.dot_dimension_numbers<[1], [1], [0], [0], [0, 0, 1, 0], [], []>} : vector<8x32xbf16>, vector<8x32xbf16>, vector<8x8xf32> -> vector<8x8xf32>
    %47 = arith.addf %46, %8 : vector<8x8xf32>
    %cst_23 = arith.constant dense<0xFF800000> : vector<8xf32>
    %48 = vector.multi_reduction <maximumf>, %47, %cst_23 [1] : vector<8x8xf32> to vector<8xf32>
    %49 = vector.shape_cast %48 : vector<8xf32> to vector<8x1xf32>
    %cst_24 = arith.constant -1.000000e+30 : f32
    %50 = vector.broadcast %cst_24 : f32 to vector<8x1xf32>
    %51 = arith.maximumf %49, %50 : vector<8x1xf32>
    %52 = vector.broadcast %51 : vector<8x1xf32> to vector<8x8xf32>
    %53 = arith.subf %47, %52 : vector<8x8xf32>
    %54 = math.exp %53 : vector<8x8xf32>
    %cst_25 = arith.constant dense<0.000000e+00> : vector<8xf32>
    %55 = vector.multi_reduction <add>, %54, %cst_25 [1] : vector<8x8xf32> to vector<8xf32>
    %56 = vector.shape_cast %55 : vector<8xf32> to vector<8x1xf32>
    %cst_26 = arith.constant 0.000000e+00 : f32
    %57 = vector.broadcast %cst_26 : f32 to vector<8x1xf32>
    %58 = arith.cmpf oeq, %56, %57 : vector<8x1xf32>
    %cst_27 = arith.constant 1.000000e+00 : f32
    %59 = vector.broadcast %cst_27 : f32 to vector<8x1xf32>
    %60 = arith.select %58, %59, %56 : vector<8x1xi1>, vector<8x1xf32>
    %61 = arith.truncf %54 : vector<8x8xf32> to vector<8x8xbf16>
    %62 = vector.extract_strided_slice %5 {offsets = [0, 32], sizes = [8, 32], strides = [1, 1]} : vector<8x128xbf16> to vector<8x32xbf16>
    %cst_28 = arith.constant dense<0.000000e+00> : vector<8x32xf32>
    %63 = tpu.matmul %61, %62, %cst_28 {dimension_numbers = #tpu.dot_dimension_numbers<[1], [0], [0], [1], [0, 0, 1, 1], [], []>} : vector<8x8xbf16>, vector<8x32xbf16>, vector<8x32xf32> -> vector<8x32xf32>
    %64 = vector.broadcast %60 : vector<8x1xf32> to vector<8x32xf32>
    %65 = arith.divf %63, %64 : vector<8x32xf32>
    %66 = arith.truncf %65 : vector<8x32xf32> to vector<8x32xbf16>
    %67 = vector.extract_strided_slice %6 {offsets = [32, 0], sizes = [32, 128], strides = [1, 1]} : vector<128x128xbf16> to vector<32x128xbf16>
    %cst_29 = arith.constant dense<0.000000e+00> : vector<8x128xf32>
    %68 = tpu.matmul %66, %67, %cst_29 {dimension_numbers = #tpu.dot_dimension_numbers<[1], [0], [0], [1], [0, 0, 1, 1], [], []>} : vector<8x32xbf16>, vector<32x128xbf16>, vector<8x128xf32> -> vector<8x128xf32>
    %69 = arith.addf %39, %68 : vector<8x128xf32>
    %70 = vector.extract_strided_slice %1 {offsets = [0, 64], sizes = [8, 32], strides = [1, 1]} : vector<8x128xbf16> to vector<8x32xbf16>
    %71 = arith.extf %70 : vector<8x32xbf16> to vector<8x32xf32>
    %cst_30 = arith.constant 0.176776692 : f32
    %72 = vector.broadcast %cst_30 : f32 to vector<8x32xf32>
    %73 = arith.mulf %71, %72 : vector<8x32xf32>
    %74 = arith.truncf %73 : vector<8x32xf32> to vector<8x32xbf16>
    %75 = vector.extract_strided_slice %3 {offsets = [0, 64], sizes = [8, 32], strides = [1, 1]} : vector<8x128xbf16> to vector<8x32xbf16>
    %cst_31 = arith.constant dense<0.000000e+00> : vector<8x8xf32>
    %76 = tpu.matmul %74, %75, %cst_31 {dimension_numbers = #tpu.dot_dimension_numbers<[1], [1], [0], [0], [0, 0, 1, 0], [], []>} : vector<8x32xbf16>, vector<8x32xbf16>, vector<8x8xf32> -> vector<8x8xf32>
    %77 = arith.addf %76, %8 : vector<8x8xf32>
    %cst_32 = arith.constant dense<0xFF800000> : vector<8xf32>
    %78 = vector.multi_reduction <maximumf>, %77, %cst_32 [1] : vector<8x8xf32> to vector<8xf32>
    %79 = vector.shape_cast %78 : vector<8xf32> to vector<8x1xf32>
    %cst_33 = arith.constant -1.000000e+30 : f32
    %80 = vector.broadcast %cst_33 : f32 to vector<8x1xf32>
    %81 = arith.maximumf %79, %80 : vector<8x1xf32>
    %82 = vector.broadcast %81 : vector<8x1xf32> to vector<8x8xf32>
    %83 = arith.subf %77, %82 : vector<8x8xf32>
    %84 = math.exp %83 : vector<8x8xf32>
    %cst_34 = arith.constant dense<0.000000e+00> : vector<8xf32>
    %85 = vector.multi_reduction <add>, %84, %cst_34 [1] : vector<8x8xf32> to vector<8xf32>
    %86 = vector.shape_cast %85 : vector<8xf32> to vector<8x1xf32>
    %cst_35 = arith.constant 0.000000e+00 : f32
    %87 = vector.broadcast %cst_35 : f32 to vector<8x1xf32>
    %88 = arith.cmpf oeq, %86, %87 : vector<8x1xf32>
    %cst_36 = arith.constant 1.000000e+00 : f32
    %89 = vector.broadcast %cst_36 : f32 to vector<8x1xf32>
    %90 = arith.select %88, %89, %86 : vector<8x1xi1>, vector<8x1xf32>
    %91 = arith.truncf %84 : vector<8x8xf32> to vector<8x8xbf16>
    %92 = vector.extract_strided_slice %5 {offsets = [0, 64], sizes = [8, 32], strides = [1, 1]} : vector<8x128xbf16> to vector<8x32xbf16>
    %cst_37 = arith.constant dense<0.000000e+00> : vector<8x32xf32>
    %93 = tpu.matmul %91, %92, %cst_37 {dimension_numbers = #tpu.dot_dimension_numbers<[1], [0], [0], [1], [0, 0, 1, 1], [], []>} : vector<8x8xbf16>, vector<8x32xbf16>, vector<8x32xf32> -> vector<8x32xf32>
    %94 = vector.broadcast %90 : vector<8x1xf32> to vector<8x32xf32>
    %95 = arith.divf %93, %94 : vector<8x32xf32>
    %96 = arith.truncf %95 : vector<8x32xf32> to vector<8x32xbf16>
    %97 = vector.extract_strided_slice %6 {offsets = [64, 0], sizes = [32, 128], strides = [1, 1]} : vector<128x128xbf16> to vector<32x128xbf16>
    %cst_38 = arith.constant dense<0.000000e+00> : vector<8x128xf32>
    %98 = tpu.matmul %96, %97, %cst_38 {dimension_numbers = #tpu.dot_dimension_numbers<[1], [0], [0], [1], [0, 0, 1, 1], [], []>} : vector<8x32xbf16>, vector<32x128xbf16>, vector<8x128xf32> -> vector<8x128xf32>
    %99 = arith.addf %69, %98 : vector<8x128xf32>
    %100 = vector.extract_strided_slice %1 {offsets = [0, 96], sizes = [8, 32], strides = [1, 1]} : vector<8x128xbf16> to vector<8x32xbf16>
    %101 = arith.extf %100 : vector<8x32xbf16> to vector<8x32xf32>
    %cst_39 = arith.constant 0.176776692 : f32
    %102 = vector.broadcast %cst_39 : f32 to vector<8x32xf32>
    %103 = arith.mulf %101, %102 : vector<8x32xf32>
    %104 = arith.truncf %103 : vector<8x32xf32> to vector<8x32xbf16>
    %105 = vector.extract_strided_slice %3 {offsets = [0, 96], sizes = [8, 32], strides = [1, 1]} : vector<8x128xbf16> to vector<8x32xbf16>
    %cst_40 = arith.constant dense<0.000000e+00> : vector<8x8xf32>
    %106 = tpu.matmul %104, %105, %cst_40 {dimension_numbers = #tpu.dot_dimension_numbers<[1], [1], [0], [0], [0, 0, 1, 0], [], []>} : vector<8x32xbf16>, vector<8x32xbf16>, vector<8x8xf32> -> vector<8x8xf32>
    %107 = arith.addf %106, %8 : vector<8x8xf32>
    %cst_41 = arith.constant dense<0xFF800000> : vector<8xf32>
    %108 = vector.multi_reduction <maximumf>, %107, %cst_41 [1] : vector<8x8xf32> to vector<8xf32>
    %109 = vector.shape_cast %108 : vector<8xf32> to vector<8x1xf32>
    %cst_42 = arith.constant -1.000000e+30 : f32
    %110 = vector.broadcast %cst_42 : f32 to vector<8x1xf32>
    %111 = arith.maximumf %109, %110 : vector<8x1xf32>
    %112 = vector.broadcast %111 : vector<8x1xf32> to vector<8x8xf32>
    %113 = arith.subf %107, %112 : vector<8x8xf32>
    %114 = math.exp %113 : vector<8x8xf32>
    %cst_43 = arith.constant dense<0.000000e+00> : vector<8xf32>
    %115 = vector.multi_reduction <add>, %114, %cst_43 [1] : vector<8x8xf32> to vector<8xf32>
    %116 = vector.shape_cast %115 : vector<8xf32> to vector<8x1xf32>
    %cst_44 = arith.constant 0.000000e+00 : f32
    %117 = vector.broadcast %cst_44 : f32 to vector<8x1xf32>
    %118 = arith.cmpf oeq, %116, %117 : vector<8x1xf32>
    %cst_45 = arith.constant 1.000000e+00 : f32
    %119 = vector.broadcast %cst_45 : f32 to vector<8x1xf32>
    %120 = arith.select %118, %119, %116 : vector<8x1xi1>, vector<8x1xf32>
    %121 = arith.truncf %114 : vector<8x8xf32> to vector<8x8xbf16>
    %122 = vector.extract_strided_slice %5 {offsets = [0, 96], sizes = [8, 32], strides = [1, 1]} : vector<8x128xbf16> to vector<8x32xbf16>
    %cst_46 = arith.constant dense<0.000000e+00> : vector<8x32xf32>
    %123 = tpu.matmul %121, %122, %cst_46 {dimension_numbers = #tpu.dot_dimension_numbers<[1], [0], [0], [1], [0, 0, 1, 1], [], []>} : vector<8x8xbf16>, vector<8x32xbf16>, vector<8x32xf32> -> vector<8x32xf32>
    %124 = vector.broadcast %120 : vector<8x1xf32> to vector<8x32xf32>
    %125 = arith.divf %123, %124 : vector<8x32xf32>
    %126 = arith.truncf %125 : vector<8x32xf32> to vector<8x32xbf16>
    %127 = vector.extract_strided_slice %6 {offsets = [96, 0], sizes = [32, 128], strides = [1, 1]} : vector<128x128xbf16> to vector<32x128xbf16>
    %cst_47 = arith.constant dense<0.000000e+00> : vector<8x128xf32>
    %128 = tpu.matmul %126, %127, %cst_47 {dimension_numbers = #tpu.dot_dimension_numbers<[1], [0], [0], [1], [0, 0, 1, 1], [], []>} : vector<8x32xbf16>, vector<32x128xbf16>, vector<8x128xf32> -> vector<8x128xf32>
    %129 = arith.addf %99, %128 : vector<8x128xf32>
    %c0_48 = arith.constant 0 : index
    %c0_49 = arith.constant 0 : index
    %130 = vector.load %arg7[%c0_48, %c0_49] : memref<1x128xbf16, #tpu.memory_space<vmem>>, vector<1x128xbf16>
    %131 = arith.extf %130 : vector<1x128xbf16> to vector<1x128xf32>
    %132 = vector.broadcast %131 : vector<1x128xf32> to vector<8x128xf32>
    %133 = arith.addf %129, %132 : vector<8x128xf32>
    %c0_50 = arith.constant 0 : index
    %c0_51 = arith.constant 0 : index
    %c0_52 = arith.constant 0 : index
    %134 = vector.load %arg8[%c0_50, %c0_51, %c0_52] : memref<1x8x128xbf16, #tpu.memory_space<vmem>>, vector<1x8x128xbf16>
    %135 = vector.shape_cast %134 : vector<1x8x128xbf16> to vector<8x128xbf16>
    %136 = arith.extf %135 : vector<8x128xbf16> to vector<8x128xf32>
    %137 = arith.addf %133, %136 : vector<8x128xf32>
    %cst_53 = arith.constant dense<0.000000e+00> : vector<8xf32>
    %138 = vector.multi_reduction <add>, %137, %cst_53 [1] : vector<8x128xf32> to vector<8xf32>
    %139 = vector.shape_cast %138 : vector<8xf32> to vector<8x1xf32>
    %cst_54 = arith.constant 1.280000e+02 : f32
    %140 = vector.broadcast %cst_54 : f32 to vector<8x1xf32>
    %141 = arith.divf %139, %140 : vector<8x1xf32>
    %142 = vector.broadcast %141 : vector<8x1xf32> to vector<8x128xf32>
    %143 = arith.subf %137, %142 : vector<8x128xf32>
    %144 = arith.mulf %143, %143 : vector<8x128xf32>
    %cst_55 = arith.constant dense<0.000000e+00> : vector<8xf32>
    %145 = vector.multi_reduction <add>, %144, %cst_55 [1] : vector<8x128xf32> to vector<8xf32>
    %146 = vector.shape_cast %145 : vector<8xf32> to vector<8x1xf32>
    %cst_56 = arith.constant 1.280000e+02 : f32
    %147 = vector.broadcast %cst_56 : f32 to vector<8x1xf32>
    %148 = arith.divf %146, %147 : vector<8x1xf32>
    %149 = vector.broadcast %141 : vector<8x1xf32> to vector<8x128xf32>
    %150 = arith.subf %137, %149 : vector<8x128xf32>
    %cst_57 = arith.constant 9.99999974E-6 : f32
    %151 = vector.broadcast %cst_57 : f32 to vector<8x1xf32>
    %152 = arith.addf %148, %151 : vector<8x1xf32>
    %153 = math.rsqrt %152 : vector<8x1xf32>
    %154 = vector.broadcast %153 : vector<8x1xf32> to vector<8x128xf32>
    %155 = arith.mulf %150, %154 : vector<8x128xf32>
    %c0_58 = arith.constant 0 : index
    %c0_59 = arith.constant 0 : index
    %156 = vector.load %arg9[%c0_58, %c0_59] : memref<1x128xf32, #tpu.memory_space<vmem>>, vector<1x128xf32>
    %157 = vector.broadcast %156 : vector<1x128xf32> to vector<8x128xf32>
    %158 = arith.mulf %155, %157 : vector<8x128xf32>
    %c0_60 = arith.constant 0 : index
    %c0_61 = arith.constant 0 : index
    %159 = vector.load %arg10[%c0_60, %c0_61] : memref<1x128xf32, #tpu.memory_space<vmem>>, vector<1x128xf32>
    %160 = vector.broadcast %159 : vector<1x128xf32> to vector<8x128xf32>
    %161 = arith.addf %158, %160 : vector<8x128xf32>
    %162 = arith.truncf %161 : vector<8x128xf32> to vector<8x128xbf16>
    %c0_62 = arith.constant 0 : index
    %c0_63 = arith.constant 0 : index
    %c0_64 = arith.constant 0 : index
    %163 = vector.load %arg11[%c0_62, %c0_63, %c0_64] : memref<1x8x128xbf16, #tpu.memory_space<vmem>>, vector<1x8x128xbf16>
    %164 = vector.shape_cast %163 : vector<1x8x128xbf16> to vector<8x128xbf16>
    %165 = vector.shape_cast %162 : vector<8x128xbf16> to vector<1x8x128xbf16>
    tpu.vector_store %arg11[%c0_62, %c0_63, %c0_64], %165 {strides = array<i32>} : memref<1x8x128xbf16, #tpu.memory_space<vmem>>, vector<1x8x128xbf16>,
    return
  }
  func.func @transform_0(%arg0: i32, %arg1: i32) -> (i32, i32, i32) {
    %c0_i32 = arith.constant 0 : i32
    %c0_i32_0 = arith.constant 0 : i32
    return %arg0, %arg1, %c0_i32 : i32, i32, i32
  }
  func.func @transform_1(%arg0: i32, %arg1: i32) -> (i32, i32, i32) {
    %c0_i32 = arith.constant 0 : i32
    %c1_i32 = arith.constant 1 : i32
    %c0_i32_0 = arith.constant 0 : i32
    return %arg0, %c0_i32, %c1_i32 : i32, i32, i32
  }
  func.func @transform_2(%arg0: i32, %arg1: i32) -> (i32, i32, i32) {
    %c0_i32 = arith.constant 0 : i32
    %c2_i32 = arith.constant 2 : i32
    %c0_i32_0 = arith.constant 0 : i32
    return %arg0, %c0_i32, %c2_i32 : i32, i32, i32
  }
  func.func @transform_3(%arg0: i32, %arg1: i32) -> (i32, i32) {
    %c0_i32 = arith.constant 0 : i32
    %c0_i32_0 = arith.constant 0 : i32
    return %arg1, %c0_i32 : i32, i32
  }
  func.func @transform_4(%arg0: i32, %arg1: i32) -> (i32, i32) {
    %c0_i32 = arith.constant 0 : i32
    %c0_i32_0 = arith.constant 0 : i32
    %c0_i32_1 = arith.constant 0 : i32
    return %c0_i32, %c0_i32_0 : i32, i32
  }
  func.func @transform_5(%arg0: i32, %arg1: i32) -> (i32, i32) {
    %c0_i32 = arith.constant 0 : i32
    %c0_i32_0 = arith.constant 0 : i32
    %c0_i32_1 = arith.constant 0 : i32
    return %c0_i32, %c0_i32_0 : i32, i32
  }
  func.func @transform_6(%arg0: i32, %arg1: i32) -> (i32, i32, i32) {
    %c0_i32 = arith.constant 0 : i32
    %c0_i32_0 = arith.constant 0 : i32
    return %arg0, %arg1, %c0_i32 : i32, i32, i32
  }
  func.func @transform_7(%arg0: i32, %arg1: i32) -> (i32, i32) {
    %c0_i32 = arith.constant 0 : i32
    %c0_i32_0 = arith.constant 0 : i32
    %c0_i32_1 = arith.constant 0 : i32
    return %c0_i32, %c0_i32_0 : i32, i32
  }
  func.func @transform_8(%arg0: i32, %arg1: i32) -> (i32, i32) {
    %c0_i32 = arith.constant 0 : i32
    %c0_i32_0 = arith.constant 0 : i32
    %c0_i32_1 = arith.constant 0 : i32
    return %c0_i32, %c0_i32_0 : i32, i32
  }
  func.func @transform_9(%arg0: i32, %arg1: i32) -> (i32, i32, i32) {
    %c0_i32 = arith.constant 0 : i32
    %c0_i32_0 = arith.constant 0 : i32
    return %arg0, %arg1, %c0_i32 : i32, i32, i32
  }
}

module attributes {stable_mosaic.version = 11 : i64} {
  func.func @_matmul_kernel(%arg0: i32, %arg1: i32, %arg2: i32, %arg3: memref<16x128xbf16, #tpu.memory_space<vmem>>, %arg4: memref<128x128xbf16, #tpu.memory_space<vmem>>, %arg5: memref<1x128xbf16, #tpu.memory_space<vmem>>, %arg6: memref<16x128xbf16, #tpu.memory_space<vmem>>, %arg7: memref<16x128xf32, #tpu.memory_space<vmem>>) attributes {dimension_semantics = [#tpu.dimension_semantics<parallel>, #tpu.dimension_semantics<parallel>, #tpu.dimension_semantics<arbitrary>], iteration_bounds = array<i64: 1, 1, 1>, scalar_prefetch = 0 : i64, scratch_operands = 1 : i64, tpu.core_type = #tpu.core_type<tc>, window_params = [{transform_indices = @transform_0, window_bounds = array<i64: 16, 128>}, {transform_indices = @transform_1, window_bounds = array<i64: 128, 128>}, {transform_indices = @transform_2, window_bounds = array<i64: 1, 128>}, {transform_indices = @transform_3, window_bounds = array<i64: 16, 128>}]} {
    %c0_i32 = arith.constant 0 : i32
    %0 = arith.cmpi eq, %arg2, %c0_i32 : i32
    %1 = arith.extui %0 : i1 to i32
    %c0_i32_0 = arith.constant 0 : i32
    %2 = arith.cmpi ne, %1, %c0_i32_0 : i32
    scf.if %2 {
      %cst_10 = arith.constant 0.000000e+00 : f32
      %12 = vector.broadcast %cst_10 : f32 to vector<16x128xf32>
      %c0_11 = arith.constant 0 : index
      %c0_12 = arith.constant 0 : index
      %13 = vector.load %arg7[%c0_11, %c0_12] : memref<16x128xf32, #tpu.memory_space<vmem>>, vector<16x128xf32>
      tpu.vector_store %arg7[%c0_11, %c0_12], %12 {strides = array<i32>} : memref<16x128xf32, #tpu.memory_space<vmem>>, vector<16x128xf32>,
    } else {
    }
    %c0 = arith.constant 0 : index
    %c0_1 = arith.constant 0 : index
    %3 = vector.load %arg7[%c0, %c0_1] : memref<16x128xf32, #tpu.memory_space<vmem>>, vector<16x128xf32>
    %c0_2 = arith.constant 0 : index
    %c0_3 = arith.constant 0 : index
    %4 = vector.load %arg3[%c0_2, %c0_3] : memref<16x128xbf16, #tpu.memory_space<vmem>>, vector<16x128xbf16>
    %c0_4 = arith.constant 0 : index
    %c0_5 = arith.constant 0 : index
    %5 = vector.load %arg4[%c0_4, %c0_5] : memref<128x128xbf16, #tpu.memory_space<vmem>>, vector<128x128xbf16>
    %cst = arith.constant dense<0.000000e+00> : vector<16x128xf32>
    %6 = tpu.matmul %4, %5, %cst {dimension_numbers = #tpu.dot_dimension_numbers<[1], [0], [0], [1], [0, 0, 1, 1], [], []>} : vector<16x128xbf16>, vector<128x128xbf16>, vector<16x128xf32> -> vector<16x128xf32>
    %7 = arith.addf %3, %6 : vector<16x128xf32>
    %c0_6 = arith.constant 0 : index
    %c0_7 = arith.constant 0 : index
    %8 = vector.load %arg7[%c0_6, %c0_7] : memref<16x128xf32, #tpu.memory_space<vmem>>, vector<16x128xf32>
    tpu.vector_store %arg7[%c0_6, %c0_7], %7 {strides = array<i32>} : memref<16x128xf32, #tpu.memory_space<vmem>>, vector<16x128xf32>,
    %c0_i32_8 = arith.constant 0 : i32
    %9 = arith.cmpi eq, %arg2, %c0_i32_8 : i32
    %10 = arith.extui %9 : i1 to i32
    %c0_i32_9 = arith.constant 0 : i32
    %11 = arith.cmpi ne, %10, %c0_i32_9 : i32
    scf.if %11 {
      %c0_10 = arith.constant 0 : index
      %c0_11 = arith.constant 0 : index
      %12 = vector.load %arg7[%c0_10, %c0_11] : memref<16x128xf32, #tpu.memory_space<vmem>>, vector<16x128xf32>
      %c0_12 = arith.constant 0 : index
      %c0_13 = arith.constant 0 : index
      %13 = vector.load %arg5[%c0_12, %c0_13] : memref<1x128xbf16, #tpu.memory_space<vmem>>, vector<1x128xbf16>
      %14 = arith.extf %13 : vector<1x128xbf16> to vector<1x128xf32>
      %15 = vector.broadcast %14 : vector<1x128xf32> to vector<16x128xf32>
      %16 = arith.addf %12, %15 : vector<16x128xf32>
      %17 = arith.truncf %16 : vector<16x128xf32> to vector<16x128xbf16>
      %c0_14 = arith.constant 0 : index
      %c0_15 = arith.constant 0 : index
      %18 = vector.load %arg6[%c0_14, %c0_15] : memref<16x128xbf16, #tpu.memory_space<vmem>>, vector<16x128xbf16>
      tpu.vector_store %arg6[%c0_14, %c0_15], %17 {strides = array<i32>} : memref<16x128xbf16, #tpu.memory_space<vmem>>, vector<16x128xbf16>,
    } else {
    }
    return
  }
  func.func @transform_0(%arg0: i32, %arg1: i32, %arg2: i32) -> (i32, i32) {
    %c0_i32 = arith.constant 0 : i32
    return %arg0, %arg2 : i32, i32
  }
  func.func @transform_1(%arg0: i32, %arg1: i32, %arg2: i32) -> (i32, i32) {
    %c0_i32 = arith.constant 0 : i32
    return %arg2, %arg1 : i32, i32
  }
  func.func @transform_2(%arg0: i32, %arg1: i32, %arg2: i32) -> (i32, i32) {
    %c0_i32 = arith.constant 0 : i32
    %c0_i32_0 = arith.constant 0 : i32
    return %c0_i32, %arg1 : i32, i32
  }
  func.func @transform_3(%arg0: i32, %arg1: i32, %arg2: i32) -> (i32, i32) {
    %c0_i32 = arith.constant 0 : i32
    return %arg0, %arg1 : i32, i32
  }
}

module attributes {stable_mosaic.version = 11 : i64} {
  func.func @_layernorm_kernel(%arg0: i32, %arg1: memref<16x128xbf16, #tpu.memory_space<vmem>>, %arg2: memref<1x128xf32, #tpu.memory_space<vmem>>, %arg3: memref<1x128xf32, #tpu.memory_space<vmem>>, %arg4: memref<16x128xbf16, #tpu.memory_space<vmem>>) attributes {dimension_semantics = [#tpu.dimension_semantics<parallel>], iteration_bounds = array<i64: 1>, scalar_prefetch = 0 : i64, scratch_operands = 0 : i64, tpu.core_type = #tpu.core_type<tc>, window_params = [{transform_indices = @transform_0, window_bounds = array<i64: 16, 128>}, {pipeline_mode = #tpu.pipeline_mode<synchronous>, transform_indices = @transform_1, window_bounds = array<i64: 1, 128>}, {pipeline_mode = #tpu.pipeline_mode<synchronous>, transform_indices = @transform_2, window_bounds = array<i64: 1, 128>}, {transform_indices = @transform_3, window_bounds = array<i64: 16, 128>}]} {
    %c0 = arith.constant 0 : index
    %c0_0 = arith.constant 0 : index
    %0 = vector.load %arg1[%c0, %c0_0] : memref<16x128xbf16, #tpu.memory_space<vmem>>, vector<16x128xbf16>
    %1 = arith.extf %0 : vector<16x128xbf16> to vector<16x128xf32>
    %cst = arith.constant dense<0.000000e+00> : vector<16xf32>
    %2 = vector.multi_reduction <add>, %1, %cst [1] : vector<16x128xf32> to vector<16xf32>
    %3 = vector.shape_cast %2 : vector<16xf32> to vector<16x1xf32>
    %cst_1 = arith.constant 1.280000e+02 : f32
    %4 = vector.broadcast %cst_1 : f32 to vector<16x1xf32>
    %5 = arith.divf %3, %4 : vector<16x1xf32>
    %6 = vector.broadcast %5 : vector<16x1xf32> to vector<16x128xf32>
    %7 = arith.subf %1, %6 : vector<16x128xf32>
    %8 = arith.mulf %7, %7 : vector<16x128xf32>
    %cst_2 = arith.constant dense<0.000000e+00> : vector<16xf32>
    %9 = vector.multi_reduction <add>, %8, %cst_2 [1] : vector<16x128xf32> to vector<16xf32>
    %10 = vector.shape_cast %9 : vector<16xf32> to vector<16x1xf32>
    %cst_3 = arith.constant 1.280000e+02 : f32
    %11 = vector.broadcast %cst_3 : f32 to vector<16x1xf32>
    %12 = arith.divf %10, %11 : vector<16x1xf32>
    %13 = vector.broadcast %5 : vector<16x1xf32> to vector<16x128xf32>
    %14 = arith.subf %1, %13 : vector<16x128xf32>
    %cst_4 = arith.constant 9.99999974E-6 : f32
    %15 = vector.broadcast %cst_4 : f32 to vector<16x1xf32>
    %16 = arith.addf %12, %15 : vector<16x1xf32>
    %17 = math.rsqrt %16 : vector<16x1xf32>
    %18 = vector.broadcast %17 : vector<16x1xf32> to vector<16x128xf32>
    %19 = arith.mulf %14, %18 : vector<16x128xf32>
    %c0_5 = arith.constant 0 : index
    %c0_6 = arith.constant 0 : index
    %20 = vector.load %arg2[%c0_5, %c0_6] : memref<1x128xf32, #tpu.memory_space<vmem>>, vector<1x128xf32>
    %21 = vector.broadcast %20 : vector<1x128xf32> to vector<16x128xf32>
    %22 = arith.mulf %19, %21 : vector<16x128xf32>
    %c0_7 = arith.constant 0 : index
    %c0_8 = arith.constant 0 : index
    %23 = vector.load %arg3[%c0_7, %c0_8] : memref<1x128xf32, #tpu.memory_space<vmem>>, vector<1x128xf32>
    %24 = vector.broadcast %23 : vector<1x128xf32> to vector<16x128xf32>
    %25 = arith.addf %22, %24 : vector<16x128xf32>
    %26 = arith.truncf %25 : vector<16x128xf32> to vector<16x128xbf16>
    %c0_9 = arith.constant 0 : index
    %c0_10 = arith.constant 0 : index
    %27 = vector.load %arg4[%c0_9, %c0_10] : memref<16x128xbf16, #tpu.memory_space<vmem>>, vector<16x128xbf16>
    tpu.vector_store %arg4[%c0_9, %c0_10], %26 {strides = array<i32>} : memref<16x128xbf16, #tpu.memory_space<vmem>>, vector<16x128xbf16>,
    return
  }
  func.func @transform_0(%arg0: i32) -> (i32, i32) {
    %c0_i32 = arith.constant 0 : i32
    %c0_i32_0 = arith.constant 0 : i32
    return %arg0, %c0_i32 : i32, i32
  }
  func.func @transform_1(%arg0: i32) -> (i32, i32) {
    %c0_i32 = arith.constant 0 : i32
    %c0_i32_0 = arith.constant 0 : i32
    %c0_i32_1 = arith.constant 0 : i32
    return %c0_i32, %c0_i32_0 : i32, i32
  }
  func.func @transform_2(%arg0: i32) -> (i32, i32) {
    %c0_i32 = arith.constant 0 : i32
    %c0_i32_0 = arith.constant 0 : i32
    %c0_i32_1 = arith.constant 0 : i32
    return %c0_i32, %c0_i32_0 : i32, i32
  }
  func.func @transform_3(%arg0: i32) -> (i32, i32) {
    %c0_i32 = arith.constant 0 : i32
    %c0_i32_0 = arith.constant 0 : i32
    return %arg0, %c0_i32 : i32, i32
  }
}

module attributes {stable_mosaic.version = 11 : i64} {
  func.func @_ffn_ln_kernel(%arg0: i32, %arg1: i32, %arg2: memref<16x128xbf16, #tpu.memory_space<vmem>>, %arg3: memref<128x256xbf16, #tpu.memory_space<vmem>>, %arg4: memref<1x256xbf16, #tpu.memory_space<vmem>>, %arg5: memref<256x128xbf16, #tpu.memory_space<vmem>>, %arg6: memref<1x128xbf16, #tpu.memory_space<vmem>>, %arg7: memref<1x128xf32, #tpu.memory_space<vmem>>, %arg8: memref<1x128xf32, #tpu.memory_space<vmem>>, %arg9: memref<16x128xbf16, #tpu.memory_space<vmem>>, %arg10: memref<16x128xf32, #tpu.memory_space<vmem>>) attributes {dimension_semantics = [#tpu.dimension_semantics<parallel>, #tpu.dimension_semantics<arbitrary>], iteration_bounds = array<i64: 1, 1>, scalar_prefetch = 0 : i64, scratch_operands = 1 : i64, tpu.core_type = #tpu.core_type<tc>, window_params = [{transform_indices = @transform_0, window_bounds = array<i64: 16, 128>}, {transform_indices = @transform_1, window_bounds = array<i64: 128, 256>}, {transform_indices = @transform_2, window_bounds = array<i64: 1, 256>}, {transform_indices = @transform_3, window_bounds = array<i64: 256, 128>}, {pipeline_mode = #tpu.pipeline_mode<synchronous>, transform_indices = @transform_4, window_bounds = array<i64: 1, 128>}, {pipeline_mode = #tpu.pipeline_mode<synchronous>, transform_indices = @transform_5, window_bounds = array<i64: 1, 128>}, {pipeline_mode = #tpu.pipeline_mode<synchronous>, transform_indices = @transform_6, window_bounds = array<i64: 1, 128>}, {transform_indices = @transform_7, window_bounds = array<i64: 16, 128>}]} {
    %c0_i32 = arith.constant 0 : i32
    %0 = arith.cmpi eq, %arg1, %c0_i32 : i32
    %1 = arith.extui %0 : i1 to i32
    %c0_i32_0 = arith.constant 0 : i32
    %2 = arith.cmpi ne, %1, %c0_i32_0 : i32
    scf.if %2 {
      %cst_16 = arith.constant 0.000000e+00 : f32
      %21 = vector.broadcast %cst_16 : f32 to vector<16x128xf32>
      %c0_17 = arith.constant 0 : index
      %c0_18 = arith.constant 0 : index
      %22 = vector.load %arg10[%c0_17, %c0_18] : memref<16x128xf32, #tpu.memory_space<vmem>>, vector<16x128xf32>
      tpu.vector_store %arg10[%c0_17, %c0_18], %21 {strides = array<i32>} : memref<16x128xf32, #tpu.memory_space<vmem>>, vector<16x128xf32>,
    } else {
    }
    %c0 = arith.constant 0 : index
    %c0_1 = arith.constant 0 : index
    %3 = vector.load %arg2[%c0, %c0_1] : memref<16x128xbf16, #tpu.memory_space<vmem>>, vector<16x128xbf16>
    %c0_2 = arith.constant 0 : index
    %c0_3 = arith.constant 0 : index
    %4 = vector.load %arg3[%c0_2, %c0_3] : memref<128x256xbf16, #tpu.memory_space<vmem>>, vector<128x256xbf16>
    %cst = arith.constant dense<0.000000e+00> : vector<16x256xf32>
    %5 = tpu.matmul %3, %4, %cst {dimension_numbers = #tpu.dot_dimension_numbers<[1], [0], [0], [1], [0, 0, 1, 1], [], []>} : vector<16x128xbf16>, vector<128x256xbf16>, vector<16x256xf32> -> vector<16x256xf32>
    %c0_4 = arith.constant 0 : index
    %c0_5 = arith.constant 0 : index
    %6 = vector.load %arg4[%c0_4, %c0_5] : memref<1x256xbf16, #tpu.memory_space<vmem>>, vector<1x256xbf16>
    %7 = arith.extf %6 : vector<1x256xbf16> to vector<1x256xf32>
    %8 = vector.broadcast %7 : vector<1x256xf32> to vector<16x256xf32>
    %9 = arith.addf %5, %8 : vector<16x256xf32>
    %cst_6 = arith.constant 0.000000e+00 : f32
    %10 = vector.broadcast %cst_6 : f32 to vector<16x256xf32>
    %11 = arith.maximumf %9, %10 : vector<16x256xf32>
    %c0_7 = arith.constant 0 : index
    %c0_8 = arith.constant 0 : index
    %12 = vector.load %arg10[%c0_7, %c0_8] : memref<16x128xf32, #tpu.memory_space<vmem>>, vector<16x128xf32>
    %13 = arith.truncf %11 : vector<16x256xf32> to vector<16x256xbf16>
    %c0_9 = arith.constant 0 : index
    %c0_10 = arith.constant 0 : index
    %14 = vector.load %arg5[%c0_9, %c0_10] : memref<256x128xbf16, #tpu.memory_space<vmem>>, vector<256x128xbf16>
    %cst_11 = arith.constant dense<0.000000e+00> : vector<16x128xf32>
    %15 = tpu.matmul %13, %14, %cst_11 {dimension_numbers = #tpu.dot_dimension_numbers<[1], [0], [0], [1], [0, 0, 1, 1], [], []>} : vector<16x256xbf16>, vector<256x128xbf16>, vector<16x128xf32> -> vector<16x128xf32>
    %16 = arith.addf %12, %15 : vector<16x128xf32>
    %c0_12 = arith.constant 0 : index
    %c0_13 = arith.constant 0 : index
    %17 = vector.load %arg10[%c0_12, %c0_13] : memref<16x128xf32, #tpu.memory_space<vmem>>, vector<16x128xf32>
    tpu.vector_store %arg10[%c0_12, %c0_13], %16 {strides = array<i32>} : memref<16x128xf32, #tpu.memory_space<vmem>>, vector<16x128xf32>,
    %c0_i32_14 = arith.constant 0 : i32
    %18 = arith.cmpi eq, %arg1, %c0_i32_14 : i32
    %19 = arith.extui %18 : i1 to i32
    %c0_i32_15 = arith.constant 0 : i32
    %20 = arith.cmpi ne, %19, %c0_i32_15 : i32
    scf.if %20 {
      %c0_16 = arith.constant 0 : index
      %c0_17 = arith.constant 0 : index
      %21 = vector.load %arg10[%c0_16, %c0_17] : memref<16x128xf32, #tpu.memory_space<vmem>>, vector<16x128xf32>
      %c0_18 = arith.constant 0 : index
      %c0_19 = arith.constant 0 : index
      %22 = vector.load %arg6[%c0_18, %c0_19] : memref<1x128xbf16, #tpu.memory_space<vmem>>, vector<1x128xbf16>
      %23 = arith.extf %22 : vector<1x128xbf16> to vector<1x128xf32>
      %24 = vector.broadcast %23 : vector<1x128xf32> to vector<16x128xf32>
      %25 = arith.addf %21, %24 : vector<16x128xf32>
      %c0_20 = arith.constant 0 : index
      %c0_21 = arith.constant 0 : index
      %26 = vector.load %arg2[%c0_20, %c0_21] : memref<16x128xbf16, #tpu.memory_space<vmem>>, vector<16x128xbf16>
      %27 = arith.extf %26 : vector<16x128xbf16> to vector<16x128xf32>
      %28 = arith.addf %25, %27 : vector<16x128xf32>
      %cst_22 = arith.constant dense<0.000000e+00> : vector<16xf32>
      %29 = vector.multi_reduction <add>, %28, %cst_22 [1] : vector<16x128xf32> to vector<16xf32>
      %30 = vector.shape_cast %29 : vector<16xf32> to vector<16x1xf32>
      %cst_23 = arith.constant 1.280000e+02 : f32
      %31 = vector.broadcast %cst_23 : f32 to vector<16x1xf32>
      %32 = arith.divf %30, %31 : vector<16x1xf32>
      %33 = vector.broadcast %32 : vector<16x1xf32> to vector<16x128xf32>
      %34 = arith.subf %28, %33 : vector<16x128xf32>
      %35 = arith.mulf %34, %34 : vector<16x128xf32>
      %cst_24 = arith.constant dense<0.000000e+00> : vector<16xf32>
      %36 = vector.multi_reduction <add>, %35, %cst_24 [1] : vector<16x128xf32> to vector<16xf32>
      %37 = vector.shape_cast %36 : vector<16xf32> to vector<16x1xf32>
      %cst_25 = arith.constant 1.280000e+02 : f32
      %38 = vector.broadcast %cst_25 : f32 to vector<16x1xf32>
      %39 = arith.divf %37, %38 : vector<16x1xf32>
      %40 = vector.broadcast %32 : vector<16x1xf32> to vector<16x128xf32>
      %41 = arith.subf %28, %40 : vector<16x128xf32>
      %cst_26 = arith.constant 9.99999974E-6 : f32
      %42 = vector.broadcast %cst_26 : f32 to vector<16x1xf32>
      %43 = arith.addf %39, %42 : vector<16x1xf32>
      %44 = math.rsqrt %43 : vector<16x1xf32>
      %45 = vector.broadcast %44 : vector<16x1xf32> to vector<16x128xf32>
      %46 = arith.mulf %41, %45 : vector<16x128xf32>
      %c0_27 = arith.constant 0 : index
      %c0_28 = arith.constant 0 : index
      %47 = vector.load %arg7[%c0_27, %c0_28] : memref<1x128xf32, #tpu.memory_space<vmem>>, vector<1x128xf32>
      %48 = vector.broadcast %47 : vector<1x128xf32> to vector<16x128xf32>
      %49 = arith.mulf %46, %48 : vector<16x128xf32>
      %c0_29 = arith.constant 0 : index
      %c0_30 = arith.constant 0 : index
      %50 = vector.load %arg8[%c0_29, %c0_30] : memref<1x128xf32, #tpu.memory_space<vmem>>, vector<1x128xf32>
      %51 = vector.broadcast %50 : vector<1x128xf32> to vector<16x128xf32>
      %52 = arith.addf %49, %51 : vector<16x128xf32>
      %53 = arith.truncf %52 : vector<16x128xf32> to vector<16x128xbf16>
      %c0_31 = arith.constant 0 : index
      %c0_32 = arith.constant 0 : index
      %54 = vector.load %arg9[%c0_31, %c0_32] : memref<16x128xbf16, #tpu.memory_space<vmem>>, vector<16x128xbf16>
      tpu.vector_store %arg9[%c0_31, %c0_32], %53 {strides = array<i32>} : memref<16x128xbf16, #tpu.memory_space<vmem>>, vector<16x128xbf16>,
    } else {
    }
    return
  }
  func.func @transform_0(%arg0: i32, %arg1: i32) -> (i32, i32) {
    %c0_i32 = arith.constant 0 : i32
    %c0_i32_0 = arith.constant 0 : i32
    return %arg0, %c0_i32 : i32, i32
  }
  func.func @transform_1(%arg0: i32, %arg1: i32) -> (i32, i32) {
    %c0_i32 = arith.constant 0 : i32
    %c0_i32_0 = arith.constant 0 : i32
    return %c0_i32, %arg1 : i32, i32
  }
  func.func @transform_2(%arg0: i32, %arg1: i32) -> (i32, i32) {
    %c0_i32 = arith.constant 0 : i32
    %c0_i32_0 = arith.constant 0 : i32
    return %c0_i32, %arg1 : i32, i32
  }
  func.func @transform_3(%arg0: i32, %arg1: i32) -> (i32, i32) {
    %c0_i32 = arith.constant 0 : i32
    %c0_i32_0 = arith.constant 0 : i32
    return %arg1, %c0_i32 : i32, i32
  }
  func.func @transform_4(%arg0: i32, %arg1: i32) -> (i32, i32) {
    %c0_i32 = arith.constant 0 : i32
    %c0_i32_0 = arith.constant 0 : i32
    %c0_i32_1 = arith.constant 0 : i32
    return %c0_i32, %c0_i32_0 : i32, i32
  }
  func.func @transform_5(%arg0: i32, %arg1: i32) -> (i32, i32) {
    %c0_i32 = arith.constant 0 : i32
    %c0_i32_0 = arith.constant 0 : i32
    %c0_i32_1 = arith.constant 0 : i32
    return %c0_i32, %c0_i32_0 : i32, i32
  }
  func.func @transform_6(%arg0: i32, %arg1: i32) -> (i32, i32) {
    %c0_i32 = arith.constant 0 : i32
    %c0_i32_0 = arith.constant 0 : i32
    %c0_i32_1 = arith.constant 0 : i32
    return %c0_i32, %c0_i32_0 : i32, i32
  }
  func.func @transform_7(%arg0: i32, %arg1: i32) -> (i32, i32) {
    %c0_i32 = arith.constant 0 : i32
    %c0_i32_0 = arith.constant 0 : i32
    return %arg0, %c0_i32 : i32, i32
  }
}

module attributes {stable_mosaic.version = 11 : i64} {
  func.func @_mha_ln_kernel(%arg0: i32, %arg1: i32, %arg2: memref<1x8x128xbf16, #tpu.memory_space<vmem>>, %arg3: memref<1x16x128xbf16, #tpu.memory_space<vmem>>, %arg4: memref<1x16x128xbf16, #tpu.memory_space<vmem>>, %arg5: memref<128x128xbf16, #tpu.memory_space<vmem>>, %arg6: memref<1x128xbf16, #tpu.memory_space<vmem>>, %arg7: memref<1x8x128xbf16, #tpu.memory_space<vmem>>, %arg8: memref<1x128xf32, #tpu.memory_space<vmem>>, %arg9: memref<1x128xf32, #tpu.memory_space<vmem>>, %arg10: memref<1x8x128xbf16, #tpu.memory_space<vmem>>) attributes {dimension_semantics = [#tpu.dimension_semantics<parallel>, #tpu.dimension_semantics<parallel>], iteration_bounds = array<i64: 2, 1>, scalar_prefetch = 0 : i64, scratch_operands = 0 : i64, tpu.core_type = #tpu.core_type<tc>, window_params = [{transform_indices = @transform_0, window_bounds = array<i64: 1, 8, 128>}, {transform_indices = @transform_1, window_bounds = array<i64: 1, 16, 128>}, {transform_indices = @transform_2, window_bounds = array<i64: 1, 16, 128>}, {pipeline_mode = #tpu.pipeline_mode<synchronous>, transform_indices = @transform_3, window_bounds = array<i64: 128, 128>}, {pipeline_mode = #tpu.pipeline_mode<synchronous>, transform_indices = @transform_4, window_bounds = array<i64: 1, 128>}, {transform_indices = @transform_5, window_bounds = array<i64: 1, 8, 128>}, {pipeline_mode = #tpu.pipeline_mode<synchronous>, transform_indices = @transform_6, window_bounds = array<i64: 1, 128>}, {pipeline_mode = #tpu.pipeline_mode<synchronous>, transform_indices = @transform_7, window_bounds = array<i64: 1, 128>}, {transform_indices = @transform_8, window_bounds = array<i64: 1, 8, 128>}]} {
    %c0 = arith.constant 0 : index
    %c0_0 = arith.constant 0 : index
    %c0_1 = arith.constant 0 : index
    %0 = vector.load %arg2[%c0, %c0_0, %c0_1] : memref<1x8x128xbf16, #tpu.memory_space<vmem>>, vector<1x8x128xbf16>
    %1 = vector.shape_cast %0 : vector<1x8x128xbf16> to vector<8x128xbf16>
    %c0_2 = arith.constant 0 : index
    %c0_3 = arith.constant 0 : index
    %c0_4 = arith.constant 0 : index
    %2 = vector.load %arg3[%c0_2, %c0_3, %c0_4] : memref<1x16x128xbf16, #tpu.memory_space<vmem>>, vector<1x16x128xbf16>
    %3 = vector.shape_cast %2 : vector<1x16x128xbf16> to vector<16x128xbf16>
    %c0_5 = arith.constant 0 : index
    %c0_6 = arith.constant 0 : index
    %c0_7 = arith.constant 0 : index
    %4 = vector.load %arg4[%c0_5, %c0_6, %c0_7] : memref<1x16x128xbf16, #tpu.memory_space<vmem>>, vector<1x16x128xbf16>
    %5 = vector.shape_cast %4 : vector<1x16x128xbf16> to vector<16x128xbf16>
    %c0_8 = arith.constant 0 : index
    %c0_9 = arith.constant 0 : index
    %6 = vector.load %arg5[%c0_8, %c0_9] : memref<128x128xbf16, #tpu.memory_space<vmem>>, vector<128x128xbf16>
    %cst = arith.constant 0.000000e+00 : f32
    %7 = vector.broadcast %cst : f32 to vector<8x128xf32>
    %8 = vector.extract_strided_slice %1 {offsets = [0, 0], sizes = [8, 32], strides = [1, 1]} : vector<8x128xbf16> to vector<8x32xbf16>
    %9 = arith.extf %8 : vector<8x32xbf16> to vector<8x32xf32>
    %cst_10 = arith.constant 0.176776692 : f32
    %10 = vector.broadcast %cst_10 : f32 to vector<8x32xf32>
    %11 = arith.mulf %9, %10 : vector<8x32xf32>
    %12 = arith.truncf %11 : vector<8x32xf32> to vector<8x32xbf16>
    %13 = vector.extract_strided_slice %3 {offsets = [0, 0], sizes = [16, 32], strides = [1, 1]} : vector<16x128xbf16> to vector<16x32xbf16>
    %cst_11 = arith.constant dense<0.000000e+00> : vector<8x16xf32>
    %14 = tpu.matmul %12, %13, %cst_11 {dimension_numbers = #tpu.dot_dimension_numbers<[1], [1], [0], [0], [0, 0, 1, 0], [], []>} : vector<8x32xbf16>, vector<16x32xbf16>, vector<8x16xf32> -> vector<8x16xf32>
    %cst_12 = arith.constant dense<0xFF800000> : vector<8xf32>
    %15 = vector.multi_reduction <maximumf>, %14, %cst_12 [1] : vector<8x16xf32> to vector<8xf32>
    %16 = vector.shape_cast %15 : vector<8xf32> to vector<8x1xf32>
    %cst_13 = arith.constant -1.000000e+30 : f32
    %17 = vector.broadcast %cst_13 : f32 to vector<8x1xf32>
    %18 = arith.maximumf %16, %17 : vector<8x1xf32>
    %19 = vector.broadcast %18 : vector<8x1xf32> to vector<8x16xf32>
    %20 = arith.subf %14, %19 : vector<8x16xf32>
    %21 = math.exp %20 : vector<8x16xf32>
    %cst_14 = arith.constant dense<0.000000e+00> : vector<8xf32>
    %22 = vector.multi_reduction <add>, %21, %cst_14 [1] : vector<8x16xf32> to vector<8xf32>
    %23 = vector.shape_cast %22 : vector<8xf32> to vector<8x1xf32>
    %cst_15 = arith.constant 0.000000e+00 : f32
    %24 = vector.broadcast %cst_15 : f32 to vector<8x1xf32>
    %25 = arith.cmpf oeq, %23, %24 : vector<8x1xf32>
    %cst_16 = arith.constant 1.000000e+00 : f32
    %26 = vector.broadcast %cst_16 : f32 to vector<8x1xf32>
    %27 = arith.select %25, %26, %23 : vector<8x1xi1>, vector<8x1xf32>
    %28 = arith.truncf %21 : vector<8x16xf32> to vector<8x16xbf16>
    %29 = vector.extract_strided_slice %5 {offsets = [0, 0], sizes = [16, 32], strides = [1, 1]} : vector<16x128xbf16> to vector<16x32xbf16>
    %cst_17 = arith.constant dense<0.000000e+00> : vector<8x32xf32>
    %30 = tpu.matmul %28, %29, %cst_17 {dimension_numbers = #tpu.dot_dimension_numbers<[1], [0], [0], [1], [0, 0, 1, 1], [], []>} : vector<8x16xbf16>, vector<16x32xbf16>, vector<8x32xf32> -> vector<8x32xf32>
    %31 = vector.broadcast %27 : vector<8x1xf32> to vector<8x32xf32>
    %32 = arith.divf %30, %31 : vector<8x32xf32>
    %33 = arith.truncf %32 : vector<8x32xf32> to vector<8x32xbf16>
    %34 = vector.extract_strided_slice %6 {offsets = [0, 0], sizes = [32, 128], strides = [1, 1]} : vector<128x128xbf16> to vector<32x128xbf16>
    %cst_18 = arith.constant dense<0.000000e+00> : vector<8x128xf32>
    %35 = tpu.matmul %33, %34, %cst_18 {dimension_numbers = #tpu.dot_dimension_numbers<[1], [0], [0], [1], [0, 0, 1, 1], [], []>} : vector<8x32xbf16>, vector<32x128xbf16>, vector<8x128xf32> -> vector<8x128xf32>
    %36 = arith.addf %7, %35 : vector<8x128xf32>
    %37 = vector.extract_strided_slice %1 {offsets = [0, 32], sizes = [8, 32], strides = [1, 1]} : vector<8x128xbf16> to vector<8x32xbf16>
    %38 = arith.extf %37 : vector<8x32xbf16> to vector<8x32xf32>
    %cst_19 = arith.constant 0.176776692 : f32
    %39 = vector.broadcast %cst_19 : f32 to vector<8x32xf32>
    %40 = arith.mulf %38, %39 : vector<8x32xf32>
    %41 = arith.truncf %40 : vector<8x32xf32> to vector<8x32xbf16>
    %42 = vector.extract_strided_slice %3 {offsets = [0, 32], sizes = [16, 32], strides = [1, 1]} : vector<16x128xbf16> to vector<16x32xbf16>
    %cst_20 = arith.constant dense<0.000000e+00> : vector<8x16xf32>
    %43 = tpu.matmul %41, %42, %cst_20 {dimension_numbers = #tpu.dot_dimension_numbers<[1], [1], [0], [0], [0, 0, 1, 0], [], []>} : vector<8x32xbf16>, vector<16x32xbf16>, vector<8x16xf32> -> vector<8x16xf32>
    %cst_21 = arith.constant dense<0xFF800000> : vector<8xf32>
    %44 = vector.multi_reduction <maximumf>, %43, %cst_21 [1] : vector<8x16xf32> to vector<8xf32>
    %45 = vector.shape_cast %44 : vector<8xf32> to vector<8x1xf32>
    %cst_22 = arith.constant -1.000000e+30 : f32
    %46 = vector.broadcast %cst_22 : f32 to vector<8x1xf32>
    %47 = arith.maximumf %45, %46 : vector<8x1xf32>
    %48 = vector.broadcast %47 : vector<8x1xf32> to vector<8x16xf32>
    %49 = arith.subf %43, %48 : vector<8x16xf32>
    %50 = math.exp %49 : vector<8x16xf32>
    %cst_23 = arith.constant dense<0.000000e+00> : vector<8xf32>
    %51 = vector.multi_reduction <add>, %50, %cst_23 [1] : vector<8x16xf32> to vector<8xf32>
    %52 = vector.shape_cast %51 : vector<8xf32> to vector<8x1xf32>
    %cst_24 = arith.constant 0.000000e+00 : f32
    %53 = vector.broadcast %cst_24 : f32 to vector<8x1xf32>
    %54 = arith.cmpf oeq, %52, %53 : vector<8x1xf32>
    %cst_25 = arith.constant 1.000000e+00 : f32
    %55 = vector.broadcast %cst_25 : f32 to vector<8x1xf32>
    %56 = arith.select %54, %55, %52 : vector<8x1xi1>, vector<8x1xf32>
    %57 = arith.truncf %50 : vector<8x16xf32> to vector<8x16xbf16>
    %58 = vector.extract_strided_slice %5 {offsets = [0, 32], sizes = [16, 32], strides = [1, 1]} : vector<16x128xbf16> to vector<16x32xbf16>
    %cst_26 = arith.constant dense<0.000000e+00> : vector<8x32xf32>
    %59 = tpu.matmul %57, %58, %cst_26 {dimension_numbers = #tpu.dot_dimension_numbers<[1], [0], [0], [1], [0, 0, 1, 1], [], []>} : vector<8x16xbf16>, vector<16x32xbf16>, vector<8x32xf32> -> vector<8x32xf32>
    %60 = vector.broadcast %56 : vector<8x1xf32> to vector<8x32xf32>
    %61 = arith.divf %59, %60 : vector<8x32xf32>
    %62 = arith.truncf %61 : vector<8x32xf32> to vector<8x32xbf16>
    %63 = vector.extract_strided_slice %6 {offsets = [32, 0], sizes = [32, 128], strides = [1, 1]} : vector<128x128xbf16> to vector<32x128xbf16>
    %cst_27 = arith.constant dense<0.000000e+00> : vector<8x128xf32>
    %64 = tpu.matmul %62, %63, %cst_27 {dimension_numbers = #tpu.dot_dimension_numbers<[1], [0], [0], [1], [0, 0, 1, 1], [], []>} : vector<8x32xbf16>, vector<32x128xbf16>, vector<8x128xf32> -> vector<8x128xf32>
    %65 = arith.addf %36, %64 : vector<8x128xf32>
    %66 = vector.extract_strided_slice %1 {offsets = [0, 64], sizes = [8, 32], strides = [1, 1]} : vector<8x128xbf16> to vector<8x32xbf16>
    %67 = arith.extf %66 : vector<8x32xbf16> to vector<8x32xf32>
    %cst_28 = arith.constant 0.176776692 : f32
    %68 = vector.broadcast %cst_28 : f32 to vector<8x32xf32>
    %69 = arith.mulf %67, %68 : vector<8x32xf32>
    %70 = arith.truncf %69 : vector<8x32xf32> to vector<8x32xbf16>
    %71 = vector.extract_strided_slice %3 {offsets = [0, 64], sizes = [16, 32], strides = [1, 1]} : vector<16x128xbf16> to vector<16x32xbf16>
    %cst_29 = arith.constant dense<0.000000e+00> : vector<8x16xf32>
    %72 = tpu.matmul %70, %71, %cst_29 {dimension_numbers = #tpu.dot_dimension_numbers<[1], [1], [0], [0], [0, 0, 1, 0], [], []>} : vector<8x32xbf16>, vector<16x32xbf16>, vector<8x16xf32> -> vector<8x16xf32>
    %cst_30 = arith.constant dense<0xFF800000> : vector<8xf32>
    %73 = vector.multi_reduction <maximumf>, %72, %cst_30 [1] : vector<8x16xf32> to vector<8xf32>
    %74 = vector.shape_cast %73 : vector<8xf32> to vector<8x1xf32>
    %cst_31 = arith.constant -1.000000e+30 : f32
    %75 = vector.broadcast %cst_31 : f32 to vector<8x1xf32>
    %76 = arith.maximumf %74, %75 : vector<8x1xf32>
    %77 = vector.broadcast %76 : vector<8x1xf32> to vector<8x16xf32>
    %78 = arith.subf %72, %77 : vector<8x16xf32>
    %79 = math.exp %78 : vector<8x16xf32>
    %cst_32 = arith.constant dense<0.000000e+00> : vector<8xf32>
    %80 = vector.multi_reduction <add>, %79, %cst_32 [1] : vector<8x16xf32> to vector<8xf32>
    %81 = vector.shape_cast %80 : vector<8xf32> to vector<8x1xf32>
    %cst_33 = arith.constant 0.000000e+00 : f32
    %82 = vector.broadcast %cst_33 : f32 to vector<8x1xf32>
    %83 = arith.cmpf oeq, %81, %82 : vector<8x1xf32>
    %cst_34 = arith.constant 1.000000e+00 : f32
    %84 = vector.broadcast %cst_34 : f32 to vector<8x1xf32>
    %85 = arith.select %83, %84, %81 : vector<8x1xi1>, vector<8x1xf32>
    %86 = arith.truncf %79 : vector<8x16xf32> to vector<8x16xbf16>
    %87 = vector.extract_strided_slice %5 {offsets = [0, 64], sizes = [16, 32], strides = [1, 1]} : vector<16x128xbf16> to vector<16x32xbf16>
    %cst_35 = arith.constant dense<0.000000e+00> : vector<8x32xf32>
    %88 = tpu.matmul %86, %87, %cst_35 {dimension_numbers = #tpu.dot_dimension_numbers<[1], [0], [0], [1], [0, 0, 1, 1], [], []>} : vector<8x16xbf16>, vector<16x32xbf16>, vector<8x32xf32> -> vector<8x32xf32>
    %89 = vector.broadcast %85 : vector<8x1xf32> to vector<8x32xf32>
    %90 = arith.divf %88, %89 : vector<8x32xf32>
    %91 = arith.truncf %90 : vector<8x32xf32> to vector<8x32xbf16>
    %92 = vector.extract_strided_slice %6 {offsets = [64, 0], sizes = [32, 128], strides = [1, 1]} : vector<128x128xbf16> to vector<32x128xbf16>
    %cst_36 = arith.constant dense<0.000000e+00> : vector<8x128xf32>
    %93 = tpu.matmul %91, %92, %cst_36 {dimension_numbers = #tpu.dot_dimension_numbers<[1], [0], [0], [1], [0, 0, 1, 1], [], []>} : vector<8x32xbf16>, vector<32x128xbf16>, vector<8x128xf32> -> vector<8x128xf32>
    %94 = arith.addf %65, %93 : vector<8x128xf32>
    %95 = vector.extract_strided_slice %1 {offsets = [0, 96], sizes = [8, 32], strides = [1, 1]} : vector<8x128xbf16> to vector<8x32xbf16>
    %96 = arith.extf %95 : vector<8x32xbf16> to vector<8x32xf32>
    %cst_37 = arith.constant 0.176776692 : f32
    %97 = vector.broadcast %cst_37 : f32 to vector<8x32xf32>
    %98 = arith.mulf %96, %97 : vector<8x32xf32>
    %99 = arith.truncf %98 : vector<8x32xf32> to vector<8x32xbf16>
    %100 = vector.extract_strided_slice %3 {offsets = [0, 96], sizes = [16, 32], strides = [1, 1]} : vector<16x128xbf16> to vector<16x32xbf16>
    %cst_38 = arith.constant dense<0.000000e+00> : vector<8x16xf32>
    %101 = tpu.matmul %99, %100, %cst_38 {dimension_numbers = #tpu.dot_dimension_numbers<[1], [1], [0], [0], [0, 0, 1, 0], [], []>} : vector<8x32xbf16>, vector<16x32xbf16>, vector<8x16xf32> -> vector<8x16xf32>
    %cst_39 = arith.constant dense<0xFF800000> : vector<8xf32>
    %102 = vector.multi_reduction <maximumf>, %101, %cst_39 [1] : vector<8x16xf32> to vector<8xf32>
    %103 = vector.shape_cast %102 : vector<8xf32> to vector<8x1xf32>
    %cst_40 = arith.constant -1.000000e+30 : f32
    %104 = vector.broadcast %cst_40 : f32 to vector<8x1xf32>
    %105 = arith.maximumf %103, %104 : vector<8x1xf32>
    %106 = vector.broadcast %105 : vector<8x1xf32> to vector<8x16xf32>
    %107 = arith.subf %101, %106 : vector<8x16xf32>
    %108 = math.exp %107 : vector<8x16xf32>
    %cst_41 = arith.constant dense<0.000000e+00> : vector<8xf32>
    %109 = vector.multi_reduction <add>, %108, %cst_41 [1] : vector<8x16xf32> to vector<8xf32>
    %110 = vector.shape_cast %109 : vector<8xf32> to vector<8x1xf32>
    %cst_42 = arith.constant 0.000000e+00 : f32
    %111 = vector.broadcast %cst_42 : f32 to vector<8x1xf32>
    %112 = arith.cmpf oeq, %110, %111 : vector<8x1xf32>
    %cst_43 = arith.constant 1.000000e+00 : f32
    %113 = vector.broadcast %cst_43 : f32 to vector<8x1xf32>
    %114 = arith.select %112, %113, %110 : vector<8x1xi1>, vector<8x1xf32>
    %115 = arith.truncf %108 : vector<8x16xf32> to vector<8x16xbf16>
    %116 = vector.extract_strided_slice %5 {offsets = [0, 96], sizes = [16, 32], strides = [1, 1]} : vector<16x128xbf16> to vector<16x32xbf16>
    %cst_44 = arith.constant dense<0.000000e+00> : vector<8x32xf32>
    %117 = tpu.matmul %115, %116, %cst_44 {dimension_numbers = #tpu.dot_dimension_numbers<[1], [0], [0], [1], [0, 0, 1, 1], [], []>} : vector<8x16xbf16>, vector<16x32xbf16>, vector<8x32xf32> -> vector<8x32xf32>
    %118 = vector.broadcast %114 : vector<8x1xf32> to vector<8x32xf32>
    %119 = arith.divf %117, %118 : vector<8x32xf32>
    %120 = arith.truncf %119 : vector<8x32xf32> to vector<8x32xbf16>
    %121 = vector.extract_strided_slice %6 {offsets = [96, 0], sizes = [32, 128], strides = [1, 1]} : vector<128x128xbf16> to vector<32x128xbf16>
    %cst_45 = arith.constant dense<0.000000e+00> : vector<8x128xf32>
    %122 = tpu.matmul %120, %121, %cst_45 {dimension_numbers = #tpu.dot_dimension_numbers<[1], [0], [0], [1], [0, 0, 1, 1], [], []>} : vector<8x32xbf16>, vector<32x128xbf16>, vector<8x128xf32> -> vector<8x128xf32>
    %123 = arith.addf %94, %122 : vector<8x128xf32>
    %c0_46 = arith.constant 0 : index
    %c0_47 = arith.constant 0 : index
    %124 = vector.load %arg6[%c0_46, %c0_47] : memref<1x128xbf16, #tpu.memory_space<vmem>>, vector<1x128xbf16>
    %125 = arith.extf %124 : vector<1x128xbf16> to vector<1x128xf32>
    %126 = vector.broadcast %125 : vector<1x128xf32> to vector<8x128xf32>
    %127 = arith.addf %123, %126 : vector<8x128xf32>
    %c0_48 = arith.constant 0 : index
    %c0_49 = arith.constant 0 : index
    %c0_50 = arith.constant 0 : index
    %128 = vector.load %arg7[%c0_48, %c0_49, %c0_50] : memref<1x8x128xbf16, #tpu.memory_space<vmem>>, vector<1x8x128xbf16>
    %129 = vector.shape_cast %128 : vector<1x8x128xbf16> to vector<8x128xbf16>
    %130 = arith.extf %129 : vector<8x128xbf16> to vector<8x128xf32>
    %131 = arith.addf %127, %130 : vector<8x128xf32>
    %cst_51 = arith.constant dense<0.000000e+00> : vector<8xf32>
    %132 = vector.multi_reduction <add>, %131, %cst_51 [1] : vector<8x128xf32> to vector<8xf32>
    %133 = vector.shape_cast %132 : vector<8xf32> to vector<8x1xf32>
    %cst_52 = arith.constant 1.280000e+02 : f32
    %134 = vector.broadcast %cst_52 : f32 to vector<8x1xf32>
    %135 = arith.divf %133, %134 : vector<8x1xf32>
    %136 = vector.broadcast %135 : vector<8x1xf32> to vector<8x128xf32>
    %137 = arith.subf %131, %136 : vector<8x128xf32>
    %138 = arith.mulf %137, %137 : vector<8x128xf32>
    %cst_53 = arith.constant dense<0.000000e+00> : vector<8xf32>
    %139 = vector.multi_reduction <add>, %138, %cst_53 [1] : vector<8x128xf32> to vector<8xf32>
    %140 = vector.shape_cast %139 : vector<8xf32> to vector<8x1xf32>
    %cst_54 = arith.constant 1.280000e+02 : f32
    %141 = vector.broadcast %cst_54 : f32 to vector<8x1xf32>
    %142 = arith.divf %140, %141 : vector<8x1xf32>
    %143 = vector.broadcast %135 : vector<8x1xf32> to vector<8x128xf32>
    %144 = arith.subf %131, %143 : vector<8x128xf32>
    %cst_55 = arith.constant 9.99999974E-6 : f32
    %145 = vector.broadcast %cst_55 : f32 to vector<8x1xf32>
    %146 = arith.addf %142, %145 : vector<8x1xf32>
    %147 = math.rsqrt %146 : vector<8x1xf32>
    %148 = vector.broadcast %147 : vector<8x1xf32> to vector<8x128xf32>
    %149 = arith.mulf %144, %148 : vector<8x128xf32>
    %c0_56 = arith.constant 0 : index
    %c0_57 = arith.constant 0 : index
    %150 = vector.load %arg8[%c0_56, %c0_57] : memref<1x128xf32, #tpu.memory_space<vmem>>, vector<1x128xf32>
    %151 = vector.broadcast %150 : vector<1x128xf32> to vector<8x128xf32>
    %152 = arith.mulf %149, %151 : vector<8x128xf32>
    %c0_58 = arith.constant 0 : index
    %c0_59 = arith.constant 0 : index
    %153 = vector.load %arg9[%c0_58, %c0_59] : memref<1x128xf32, #tpu.memory_space<vmem>>, vector<1x128xf32>
    %154 = vector.broadcast %153 : vector<1x128xf32> to vector<8x128xf32>
    %155 = arith.addf %152, %154 : vector<8x128xf32>
    %156 = arith.truncf %155 : vector<8x128xf32> to vector<8x128xbf16>
    %c0_60 = arith.constant 0 : index
    %c0_61 = arith.constant 0 : index
    %c0_62 = arith.constant 0 : index
    %157 = vector.load %arg10[%c0_60, %c0_61, %c0_62] : memref<1x8x128xbf16, #tpu.memory_space<vmem>>, vector<1x8x128xbf16>
    %158 = vector.shape_cast %157 : vector<1x8x128xbf16> to vector<8x128xbf16>
    %159 = vector.shape_cast %156 : vector<8x128xbf16> to vector<1x8x128xbf16>
    tpu.vector_store %arg10[%c0_60, %c0_61, %c0_62], %159 {strides = array<i32>} : memref<1x8x128xbf16, #tpu.memory_space<vmem>>, vector<1x8x128xbf16>,
    return
  }
  func.func @transform_0(%arg0: i32, %arg1: i32) -> (i32, i32, i32) {
    %c0_i32 = arith.constant 0 : i32
    %c0_i32_0 = arith.constant 0 : i32
    return %arg0, %arg1, %c0_i32 : i32, i32, i32
  }
  func.func @transform_1(%arg0: i32, %arg1: i32) -> (i32, i32, i32) {
    %c0_i32 = arith.constant 0 : i32
    %c0_i32_0 = arith.constant 0 : i32
    %c0_i32_1 = arith.constant 0 : i32
    return %arg0, %c0_i32, %c0_i32_0 : i32, i32, i32
  }
  func.func @transform_2(%arg0: i32, %arg1: i32) -> (i32, i32, i32) {
    %c0_i32 = arith.constant 0 : i32
    %c1_i32 = arith.constant 1 : i32
    %c0_i32_0 = arith.constant 0 : i32
    return %arg0, %c0_i32, %c1_i32 : i32, i32, i32
  }
  func.func @transform_3(%arg0: i32, %arg1: i32) -> (i32, i32) {
    %c0_i32 = arith.constant 0 : i32
    %c0_i32_0 = arith.constant 0 : i32
    %c0_i32_1 = arith.constant 0 : i32
    return %c0_i32, %c0_i32_0 : i32, i32
  }
  func.func @transform_4(%arg0: i32, %arg1: i32) -> (i32, i32) {
    %c0_i32 = arith.constant 0 : i32
    %c0_i32_0 = arith.constant 0 : i32
    %c0_i32_1 = arith.constant 0 : i32
    return %c0_i32, %c0_i32_0 : i32, i32
  }
  func.func @transform_5(%arg0: i32, %arg1: i32) -> (i32, i32, i32) {
    %c0_i32 = arith.constant 0 : i32
    %c0_i32_0 = arith.constant 0 : i32
    return %arg0, %arg1, %c0_i32 : i32, i32, i32
  }
  func.func @transform_6(%arg0: i32, %arg1: i32) -> (i32, i32) {
    %c0_i32 = arith.constant 0 : i32
    %c0_i32_0 = arith.constant 0 : i32
    %c0_i32_1 = arith.constant 0 : i32
    return %c0_i32, %c0_i32_0 : i32, i32
  }
  func.func @transform_7(%arg0: i32, %arg1: i32) -> (i32, i32) {
    %c0_i32 = arith.constant 0 : i32
    %c0_i32_0 = arith.constant 0 : i32
    %c0_i32_1 = arith.constant 0 : i32
    return %c0_i32, %c0_i32_0 : i32, i32
  }
  func.func @transform_8(%arg0: i32, %arg1: i32) -> (i32, i32, i32) {
    %c0_i32 = arith.constant 0 : i32
    %c0_i32_0 = arith.constant 0 : i32
    return %arg0, %arg1, %c0_i32 : i32, i32, i32
  }
}

</mosaic_0001>

<bundles_post_ra>
// kernel: transformer_decoder_forward.15
= control target key start
LH: loop header
LB: loop body
LE: loop exit
PB: predicated region body
PF: predicated region fallthrough
CT: control target
= control target key end

     0   :  { %v225_v0 = vmov 0.0   ;;  %vm226_vm0 = vmmov 0   ;;  %v147_v10 = vlaneseq  ;;  %s280_s1 = inlined_call_operand.vmem [shape: bf16[128,128], index: 1, kind: input, shape index: {}]   ;;  %s281_s0 = inlined_call_operand.vmem [shape: bf16[16,128], index: 0, kind: input, shape index: {}]   ;;  %s282_s2 = inlined_call_operand.vmem [shape: bf16[1,128], index: 2, kind: input, shape index: {}]   ;;  %s283_s3 = inlined_call_operand.vmem [shape: bf16[16,128], index: 3, kind: output, shape index: {}]  }
   0x1   :  { %194 = vmatprep.subr.bf16.mxu0 %v225_v0  ;;  %v216_v1 = vld [vmem:[%s280_s1] sm:$0xff]   ;;  %210 = vmatprep.mubr.msk.bf16.mxu0 %vm226_vm0, %v225_v0  ;;  %v217_v2 = vld [vmem:[%s280_s1 + $0x8] sm:$0xff]   ;;  %v218_v3 = vld [vmem:[%s280_s1 + $0x10] sm:$0xff]  }
   0x2   :  { %195 = vmatpush3.bf16.msra.mxu0 %v216_v1  ;;  %v219_v4 = vld [vmem:[%s280_s1 + $0x18] sm:$0xff]   ;;  %v220_v5 = vld [vmem:[%s280_s1 + $0x20] sm:$0xff]   ;;  %v221_v6 = vld [vmem:[%s280_s1 + $0x28] sm:$0xff]   ;;  %v148_v11 = vshrl.u32 %v147_v10, 7 }
   0x3   :  { %196 = vmatprep.subr.bf16.mxu0 %v225_v0  ;;  %v222_v7 = vld [vmem:[%s280_s1 + $0x30] sm:$0xff]   ;;  %v223_v8 = vld [vmem:[%s280_s1 + $0x38] sm:$0xff]   ;;  %v224_v9 = vld [vmem:[%s281_s0] sm:$0xff]  }
   0x4   :  { %v145_v12 = vld [vmem:[%s282_s2] sm:$0x1]  ;;  %v149_v14 = vsub.s32 0, %v148_v11 }
   0x5   :  { %v146_v13 = vunpack.c.l.bf16 %v145_v12 }
   0x6   :  { %197 = vmatpush3.bf16.msra.mxu0 %v217_v2 }
   0x7   :  { %198 = vmatprep.subr.bf16.mxu0 %v225_v0  ;;  %v150_v15 = vrot.slane %v146_v13, %v149_v14 }
   0xa   :  { %199 = vmatpush3.bf16.msra.mxu0 %v218_v3 }
   0xb   :  { %200 = vmatprep.subr.bf16.mxu0 %v225_v0 }
   0xe   :  { %201 = vmatpush3.bf16.msra.mxu0 %v219_v4 }
   0xf   :  { %202 = vmatprep.subr.bf16.mxu0 %v225_v0 }
  0x12   :  { %203 = vmatpush3.bf16.msra.mxu0 %v220_v5 }
  0x13   :  { %204 = vmatprep.subr.bf16.mxu0 %v225_v0 }
  0x16   :  { %205 = vmatpush3.bf16.msra.mxu0 %v221_v6 }
  0x17   :  { %206 = vmatprep.subr.bf16.mxu0 %v225_v0 }
  0x1a   :  { %207 = vmatpush3.bf16.msra.mxu0 %v222_v7 }
  0x1b   :  { %208 = vmatprep.subr.bf16.mxu0 %v225_v0 }
  0x1e   :  { %209 = vmatpush3.bf16.msra.mxu0 %v223_v8 }
  0x21   :  { %211 = vmatmul.mubr.bf16.vlgmr.msra.gmra.mrb[0].mxu0 %v224_v9 }
  0xf4   :  { %v129_v16 = vpop.f32.mrb[0].mxu0 }
  0xf5   :  { %v212_v17 = vpop.f32.mrb[1].mxu0  ;;  %v151_v19 = vadd.f32 %v150_v15, %v129_v16 }
  0xf6   :  { %v132_v18 = vpop.f32.mrb[2].mxu0 }
  0xf7   :  { %v152_v20 = vadd.f32 %v150_v15, %v132_v18  ;;  %v213_v21 = vpop.f32.mrb[3].mxu0 }
  0xf9   :  { %v183_v22 = vpack.c.bf16 %v152_v20, %v151_v19 }
  0xfb   :  { %184 = vst [vmem:[%s283_s3] sm:$0xff] %v183_v22  }

// kernel: transformer_decoder_forward.16
= control target key start
LH: loop header
LB: loop body
LE: loop exit
PB: predicated region body
PF: predicated region fallthrough
CT: control target
= control target key end

     0   :  { %v357_v1 = vmov 0   ;;  %v230_v19 = vlaneseq  ;;  %s447_s1 = inlined_call_operand.vmem [shape: bf16[128,256], index: 1, kind: input, shape index: {}]   ;;  %s448_s0 = inlined_call_operand.vmem [shape: bf16[32,128], index: 0, kind: input, shape index: {}]   ;;  %s449_s2 = inlined_call_operand.vmem [shape: bf16[1,256], index: 2, kind: input, shape index: {}]   ;;  %s450_s3 = inlined_call_operand.vmem [shape: bf16[32,256], index: 3, kind: output, shape index: {}]  }
   0x1   :  { %v331_v0 = vld [vmem:[%s447_s1 + $0x4] ss:$8 sps:$4 sm:$0xff]   ;;  %179 = vmatprep.mubr.bf16.mxu0 %v357_v1  ;;  %189 = vmatprep.mubr.bf16.mxu1 %v357_v1  ;;  %v333_v2 = vld [vmem:[%s447_s1] ss:$8 sps:$4 sm:$0xff]   ;;  %v334_v3 = vld [vmem:[%s447_s1 + $0x14] ss:$8 sps:$4 sm:$0xff]  }
   0x2   :  { %147 = vmatprep.subr.bf16.mxu0 %v331_v0  ;;  %314 = vmatprep.subr.bf16.mxu1 %v331_v0  ;;  %v336_v4 = vld [vmem:[%s447_s1 + $0x10] ss:$8 sps:$4 sm:$0xff]   ;;  %v337_v5 = vld [vmem:[%s447_s1 + $0x24] ss:$8 sps:$4 sm:$0xff]   ;;  %v339_v6 = vld [vmem:[%s447_s1 + $0x20] ss:$8 sps:$4 sm:$0xff]  }
   0x3   :  { %148 = vmatpush1.bf16.msra.mxu0 %v333_v2  ;;  %322 = vmatpush1.bf16.msra.mxu1 %v333_v2  ;;  %v340_v7 = vld [vmem:[%s447_s1 + $0x34] ss:$8 sps:$4 sm:$0xff]   ;;  %v342_v8 = vld [vmem:[%s447_s1 + $0x30] ss:$8 sps:$4 sm:$0xff]   ;;  %v343_v9 = vld [vmem:[%s447_s1 + $0x44] ss:$8 sps:$4 sm:$0xff]  }
   0x4   :  { %149 = vmatprep.subr.bf16.mxu0 %v334_v3  ;;  %315 = vmatprep.subr.bf16.mxu1 %v334_v3  ;;  %v345_v10 = vld [vmem:[%s447_s1 + $0x40] ss:$8 sps:$4 sm:$0xff]   ;;  %v346_v11 = vld [vmem:[%s447_s1 + $0x54] ss:$8 sps:$4 sm:$0xff]   ;;  %v348_v12 = vld [vmem:[%s447_s1 + $0x50] ss:$8 sps:$4 sm:$0xff]  }
   0x5   :  { %v349_v13 = vld [vmem:[%s447_s1 + $0x64] ss:$8 sps:$4 sm:$0xff]   ;;  %v351_v14 = vld [vmem:[%s447_s1 + $0x60] ss:$8 sps:$4 sm:$0xff]   ;;  %v352_v15 = vld [vmem:[%s447_s1 + $0x74] ss:$8 sps:$4 sm:$0xff]  }
   0x6   :  { %v354_v16 = vld [vmem:[%s447_s1 + $0x70] ss:$8 sps:$4 sm:$0xff]   ;;  %v355_v17 = vld [vmem:[%s448_s0] sm:$0xff]   ;;  %v356_v18 = vld [vmem:[%s448_s0 + $0x8] sm:$0xff]   ;;  %v231_v20 = vshrl.u32 %v230_v19, 7 }
   0x7   :  { %150 = vmatpush1.bf16.msra.mxu0 %v336_v4  ;;  %323 = vmatpush1.bf16.msra.mxu1 %v336_v4  ;;  %v227_v21 = vld [vmem:[%s449_s2] sm:$0x3] }
   0x8   :  { %151 = vmatprep.subr.bf16.mxu0 %v337_v5  ;;  %316 = vmatprep.subr.bf16.mxu1 %v337_v5  ;;  %v228_v22 = vunpack.c.l.bf16 %v227_v21  ;;  %v232_v23 = vsub.s32 0, %v231_v20  ;;  %v236_v24 = vsub.s32 2, %v231_v20 }
   0xa   :  { %v233_v25 = vrot.slane %v228_v22, %v232_v23  ;;  %v237_v26 = vrot.slane %v228_v22, %v236_v24 }
   0xb   :  { %152 = vmatpush1.bf16.msra.mxu0 %v339_v6  ;;  %324 = vmatpush1.bf16.msra.mxu1 %v339_v6 }
   0xc   :  { %153 = vmatprep.subr.bf16.mxu0 %v340_v7  ;;  %317 = vmatprep.subr.bf16.mxu1 %v340_v7  ;;  %v243_v27 = vrot.slane %v233_v25, %v232_v23  ;;  %v247_v28 = vrot.slane %v237_v26, %v232_v23 }
   0xf   :  { %154 = vmatpush1.bf16.msra.mxu0 %v342_v8  ;;  %325 = vmatpush1.bf16.msra.mxu1 %v342_v8 }
  0x10   :  { %155 = vmatprep.subr.bf16.mxu0 %v343_v9  ;;  %318 = vmatprep.subr.bf16.mxu1 %v343_v9 }
  0x13   :  { %156 = vmatpush1.bf16.msra.mxu0 %v345_v10  ;;  %326 = vmatpush1.bf16.msra.mxu1 %v345_v10 }
  0x14   :  { %157 = vmatprep.subr.bf16.mxu0 %v346_v11  ;;  %319 = vmatprep.subr.bf16.mxu1 %v346_v11 }
  0x17   :  { %158 = vmatpush1.bf16.msra.mxu0 %v348_v12  ;;  %327 = vmatpush1.bf16.msra.mxu1 %v348_v12 }
  0x18   :  { %159 = vmatprep.subr.bf16.mxu0 %v349_v13  ;;  %320 = vmatprep.subr.bf16.mxu1 %v349_v13 }
  0x1b   :  { %160 = vmatpush1.bf16.msra.mxu0 %v351_v14  ;;  %328 = vmatpush1.bf16.msra.mxu1 %v351_v14 }
  0x1c   :  { %161 = vmatprep.subr.bf16.mxu0 %v352_v15  ;;  %321 = vmatprep.subr.bf16.mxu1 %v352_v15 }
  0x1f   :  { %162 = vmatpush1.bf16.msra.mxu0 %v354_v16  ;;  %329 = vmatpush1.bf16.msra.mxu1 %v354_v16 }
  0x22   :  { %180 = vmatmul.mubr.bf16.vlgmr.msra.gmra.mrb[0].mxu0 %v355_v17  ;;  %190 = vmatmul.mubr.bf16.vlgmr.msra.gmra.mrb[0].mxu1 %v356_v18 }
  0xf5   :  { %v181_v29 = vpop.f32.mrb[0].mxu0  ;;  %v191_v30 = vpop.f32.mrb[0].mxu1 }
  0xf6   :  { %v248_v31 = vadd.f32 %v243_v27, %v181_v29  ;;  %v252_v32 = vadd.f32 %v243_v27, %v191_v30  ;;  %v183_v33 = vpop.f32.mrb[1].mxu0  ;;  %v193_v34 = vpop.f32.mrb[1].mxu1 }
  0xf7   :  { %v249_v35 = vadd.f32 %v247_v28, %v183_v33  ;;  %v253_v36 = vadd.f32 %v247_v28, %v193_v34  ;;  %v185_v37 = vpop.f32.mrb[2].mxu0  ;;  %v195_v38 = vpop.f32.mrb[2].mxu1 }
  0xf8   :  { %v250_v39 = vadd.f32 %v243_v27, %v185_v37  ;;  %v254_v40 = vadd.f32 %v243_v27, %v195_v38  ;;  %v187_v41 = vpop.f32.mrb[3].mxu0  ;;  %v197_v42 = vpop.f32.mrb[3].mxu1 }
  0xf9   :  { %v310_v43 = vpack.c.bf16 %v249_v35, %v248_v31  ;;  %v312_v44 = vpack.c.bf16 %v253_v36, %v252_v32  ;;  %v251_v45 = vadd.f32 %v247_v28, %v187_v41  ;;  %v255_v46 = vadd.f32 %v247_v28, %v197_v42 }
  0xfb   :  { %280 = vst [vmem:[%s450_s3] sm:$0xff] %v310_v43  ;;  %282 = vst [vmem:[%s450_s3 + $0x10] sm:$0xff] %v312_v44  ;;  %v311_v47 = vpack.c.bf16 %v251_v45, %v250_v39  ;;  %v313_v48 = vpack.c.bf16 %v255_v46, %v254_v40 }
  0xfd   :  { %281 = vst [vmem:[%s450_s3 + $0x8] sm:$0xff] %v311_v47  ;;  %283 = vst [vmem:[%s450_s3 + $0x18] sm:$0xff] %v313_v48 }

// kernel: transformer_decoder_forward.13
= control target key start
LH: loop header
LB: loop body
LE: loop exit
PB: predicated region body
PF: predicated region fallthrough
CT: control target
= control target key end

     0   :  { %v466_v0 = vmov 0.0   ;;  %vm467_vm0 = vmmov 0   ;;  %v468_v3 = vmov 0   ;;  %v307_v27 = vlaneseq  ;;  %s579_s1 = inlined_call_operand.vmem [shape: bf16[128,384], index: 1, kind: input, shape index: {}]   ;;  %s580_s0 = inlined_call_operand.vmem [shape: bf16[16,128], index: 0, kind: input, shape index: {}]   ;;  %s581_s2 = inlined_call_operand.vmem [shape: bf16[1,384], index: 2, kind: input, shape index: {}]   ;;  %s582_s3 = inlined_call_operand.vmem [shape: bf16[16,384], index: 3, kind: output, shape index: {}]  }
   0x1   :  { %410 = vmatprep.subr.bf16.mxu1 %v466_v0  ;;  %v433_v1 = vld [vmem:[%s579_s1 + $0x4] ss:$12 sps:$4 sm:$0xff]   ;;  %426 = vmatprep.mubr.msk.bf16.mxu1 %vm467_vm0, %v466_v0  ;;  %v435_v2 = vld [vmem:[%s579_s1 + $0x8] ss:$12 sps:$4 sm:$0xff]   ;;  %v436_v4 = vld [vmem:[%s579_s1] ss:$12 sps:$4 sm:$0xff]  }
   0x2   :  { %231 = vmatprep.mubr.bf16.mxu0 %v468_v3  ;;  %199 = vmatprep.subr.bf16.mxu0 %v433_v1  ;;  %v437_v5 = vld [vmem:[%s579_s1 + $0x1c] ss:$12 sps:$4 sm:$0xff]   ;;  %v439_v6 = vld [vmem:[%s579_s1 + $0x20] ss:$12 sps:$4 sm:$0xff]   ;;  %v440_v7 = vld [vmem:[%s579_s1 + $0x18] ss:$12 sps:$4 sm:$0xff]  }
   0x3   :  { %411 = vmatpush3.bf16.msra.mxu1 %v435_v2  ;;  %200 = vmatpush1.bf16.msra.mxu0 %v436_v4  ;;  %v441_v8 = vld [vmem:[%s579_s1 + $0x34] ss:$12 sps:$4 sm:$0xff]   ;;  %v443_v9 = vld [vmem:[%s579_s1 + $0x38] ss:$12 sps:$4 sm:$0xff]   ;;  %v444_v10 = vld [vmem:[%s579_s1 + $0x30] ss:$12 sps:$4 sm:$0xff]  }
   0x4   :  { %412 = vmatprep.subr.bf16.mxu1 %v466_v0  ;;  %201 = vmatprep.subr.bf16.mxu0 %v437_v5  ;;  %v445_v11 = vld [vmem:[%s579_s1 + $0x4c] ss:$12 sps:$4 sm:$0xff]   ;;  %v447_v12 = vld [vmem:[%s579_s1 + $0x50] ss:$12 sps:$4 sm:$0xff]   ;;  %v448_v13 = vld [vmem:[%s579_s1 + $0x48] ss:$12 sps:$4 sm:$0xff]  }
   0x5   :  { %v449_v14 = vld [vmem:[%s579_s1 + $0x64] ss:$12 sps:$4 sm:$0xff]   ;;  %v451_v15 = vld [vmem:[%s579_s1 + $0x68] ss:$12 sps:$4 sm:$0xff]   ;;  %v452_v16 = vld [vmem:[%s579_s1 + $0x60] ss:$12 sps:$4 sm:$0xff]  }
   0x6   :  { %v453_v17 = vld [vmem:[%s579_s1 + $0x7c] ss:$12 sps:$4 sm:$0xff]   ;;  %v455_v18 = vld [vmem:[%s579_s1 + $0x80] ss:$12 sps:$4 sm:$0xff]   ;;  %v456_v19 = vld [vmem:[%s579_s1 + $0x78] ss:$12 sps:$4 sm:$0xff]  }
   0x7   :  { %413 = vmatpush3.bf16.msra.mxu1 %v439_v6  ;;  %202 = vmatpush1.bf16.msra.mxu0 %v440_v7  ;;  %v457_v20 = vld [vmem:[%s579_s1 + $0x94] ss:$12 sps:$4 sm:$0xff]   ;;  %v459_v21 = vld [vmem:[%s579_s1 + $0x98] ss:$12 sps:$4 sm:$0xff]   ;;  %v460_v22 = vld [vmem:[%s579_s1 + $0x90] ss:$12 sps:$4 sm:$0xff]  }
   0x8   :  { %414 = vmatprep.subr.bf16.mxu1 %v466_v0  ;;  %203 = vmatprep.subr.bf16.mxu0 %v441_v8  ;;  %v461_v23 = vld [vmem:[%s579_s1 + $0xac] ss:$12 sps:$4 sm:$0xff]   ;;  %v463_v24 = vld [vmem:[%s579_s1 + $0xb0] ss:$12 sps:$4 sm:$0xff]   ;;  %v464_v25 = vld [vmem:[%s579_s1 + $0xa8] ss:$12 sps:$4 sm:$0xff]  }
   0x9   :  { %v465_v26 = vld [vmem:[%s580_s0] sm:$0xff]   ;;  %v308_v28 = vshrl.u32 %v307_v27, 7 }
   0xa   :  { %v304_v29 = vld [vmem:[%s581_s2] sm:$0x7] }
   0xb   :  { %415 = vmatpush3.bf16.msra.mxu1 %v443_v9  ;;  %204 = vmatpush1.bf16.msra.mxu0 %v444_v10  ;;  %v305_v30 = vunpack.c.l.bf16 %v304_v29  ;;  %v317_v31 = vsub.s32 4, %v308_v28  ;;  %v309_v32 = vsub.s32 0, %v308_v28  ;;  %v313_v33 = vsub.s32 2, %v308_v28 }
   0xc   :  { %416 = vmatprep.subr.bf16.mxu1 %v466_v0  ;;  %205 = vmatprep.subr.bf16.mxu0 %v445_v11 }
   0xd   :  { %v318_v34 = vrot.slane %v305_v30, %v317_v31  ;;  %v310_v35 = vrot.slane %v305_v30, %v309_v32  ;;  %v314_v36 = vrot.slane %v305_v30, %v313_v33 }
   0xf   :  { %417 = vmatpush3.bf16.msra.mxu1 %v447_v12  ;;  %206 = vmatpush1.bf16.msra.mxu0 %v448_v13  ;;  %v333_v37 = vrot.slane %v318_v34, %v309_v32  ;;  %v325_v38 = vrot.slane %v310_v35, %v309_v32  ;;  %v329_v39 = vrot.slane %v314_v36, %v309_v32 }
  0x10   :  { %418 = vmatprep.subr.bf16.mxu1 %v466_v0  ;;  %207 = vmatprep.subr.bf16.mxu0 %v449_v14 }
  0x13   :  { %419 = vmatpush3.bf16.msra.mxu1 %v451_v15  ;;  %208 = vmatpush1.bf16.msra.mxu0 %v452_v16 }
  0x14   :  { %420 = vmatprep.subr.bf16.mxu1 %v466_v0  ;;  %209 = vmatprep.subr.bf16.mxu0 %v453_v17 }
  0x17   :  { %421 = vmatpush3.bf16.msra.mxu1 %v455_v18  ;;  %210 = vmatpush1.bf16.msra.mxu0 %v456_v19 }
  0x18   :  { %422 = vmatprep.subr.bf16.mxu1 %v466_v0  ;;  %211 = vmatprep.subr.bf16.mxu0 %v457_v20 }
  0x1b   :  { %423 = vmatpush3.bf16.msra.mxu1 %v459_v21  ;;  %212 = vmatpush1.bf16.msra.mxu0 %v460_v22 }
  0x1c   :  { %424 = vmatprep.subr.bf16.mxu1 %v466_v0  ;;  %213 = vmatprep.subr.bf16.mxu0 %v461_v23 }
  0x1f   :  { %425 = vmatpush3.bf16.msra.mxu1 %v463_v24  ;;  %214 = vmatpush1.bf16.msra.mxu0 %v464_v25 }
  0x22   :  { %427 = vmatmul.mubr.bf16.vlgmr.msra.gmra.mrb[0].mxu1 %v465_v26  ;;  %232 = vmatmul.mubr.bf16.vlgmr.msra.gmra.mrb[0].mxu0 %v465_v26 }
  0xf5   :  { %v276_v40 = vpop.f32.mrb[0].mxu1  ;;  %v233_v42 = vpop.f32.mrb[0].mxu0 }
  0xf6   :  { %v336_v41 = vadd.f32 %v333_v37, %v276_v40  ;;  %v428_v43 = vpop.f32.mrb[1].mxu1  ;;  %v334_v44 = vadd.f32 %v325_v38, %v233_v42  ;;  %v235_v45 = vpop.f32.mrb[1].mxu0 }
  0xf7   :  { %v279_v46 = vpop.f32.mrb[2].mxu1  ;;  %v335_v48 = vadd.f32 %v329_v39, %v235_v45  ;;  %v237_v50 = vpop.f32.mrb[2].mxu0 }
  0xf8   :  { %v398_v47 = vpack.c.bf16 %v336_v41, %v336_v41  ;;  %v339_v49 = vadd.f32 %v333_v37, %v279_v46  ;;  %v429_v51 = vpop.f32.mrb[3].mxu1  ;;  %v337_v52 = vadd.f32 %v325_v38, %v237_v50  ;;  %v239_v53 = vpop.f32.mrb[3].mxu0 }
  0xf9   :  { %v397_v54 = vpack.c.bf16 %v335_v48, %v334_v44  ;;  %v338_v56 = vadd.f32 %v329_v39, %v239_v53 }
  0xfa   :  { %361 = vst [vmem:[%s582_s3 + $0x8] sm:$0xf] %v398_v47  ;;  %v400_v55 = vpack.c.bf16 %v339_v49, %v339_v49 }
  0xfb   :  { %360 = vst [vmem:[%s582_s3] sm:$0xff] %v397_v54  ;;  %v399_v57 = vpack.c.bf16 %v338_v56, %v337_v52 }
  0xfc   :  { %363 = vst [vmem:[%s582_s3 + $0x14] sm:$0xf] %v400_v55 }
  0xfd   :  { %362 = vst [vmem:[%s582_s3 + $0xc] sm:$0xff] %v399_v57 }

// kernel: transformer_decoder_forward.14
= control target key start
LH: loop header
LB: loop body
LE: loop exit
PB: predicated region body
PF: predicated region fallthrough
CT: control target
= control target key end

     0   :  { %s1634_s30 = smov 0   ;;  %s1636_s10 = smov 0   ;;  %s1821_s0 = inlined_call_operand.vmem [shape: bf16[2,8,384], index: 0, kind: input, shape index: {}, may-alias: {0,1,2}]   ;;  %s1822_s1 = inlined_call_operand.vmem [shape: bf16[2,8,384], index: 1, kind: input, shape index: {}, may-alias: {0,1,2}]   ;;  %s1823_s2 = inlined_call_operand.vmem [shape: bf16[2,8,384], index: 2, kind: input, shape index: {}, may-alias: {0,1,2}]   ;;  %s1824_s3 = inlined_call_operand.vmem [shape: bf16[8,8], index: 3, kind: input, shape index: {}]   ;;  %s1825_s4 = inlined_call_operand.vmem [shape: bf16[128,128], index: 4, kind: input, shape index: {}]   ;;  %s1826_s5 = inlined_call_operand.vmem [shape: bf16[1,128], index: 5, kind: input, shape index: {}]   ;;  %s1827_s6 = inlined_call_operand.vmem [shape: bf16[2,8,128], index: 6, kind: input, shape index: {}]   ;;  %s1828_s7 = inlined_call_operand.vmem [shape: f32[1,128], index: 7, kind: input, shape index: {}]   ;;  %s1829_s8 = inlined_call_operand.vmem [shape: f32[1,128], index: 8, kind: input, shape index: {}]   ;;  %s1830_s9 = inlined_call_operand.vmem [shape: bf16[2,8,128], index: 9, kind: output, shape index: {}]  }
   0x1   :  { %s1638_s11 = smov 0  }
   0x2 LB: > { %s31_s12 = sadd.s32 1, %s1573_s10  ;;  %p1355_p0 = scmp.ge.s32.totalorder %s1577_s11, 1  ;;  %s1577_s11 = sphi %s1638_s11, %s19_s11   ;;  %s1573_s10 = sphi %s1636_s10, %s1832_s10   ;;  %s1569_s30 = sphi %s1634_s30, %s1831_s30  }
   0x3   : > { %p33_p1 = scmp.ge.s32.totalorder %s31_s12, 2  ;;  %p352_p2 = scmp.lt.s32.totalorder %s1577_s11, 3 }
   0x5   : > { %s1834_s12 = smov (%p33_p1, %s31_s12), 0  ;;  %p353_p3 = pnand %p1355_p0, %p352_p2 }
   0x6   : > { %p417_p4 = scmp.lt.s32.totalorder (!%p353_p3), %s1569_s30, 1  ;;  %v1579_v0 = vmov (!%p353_p3), 0.0   ;;  %vm1580_vm0 = vmmov (!%p353_p3), 0   ;;  %vm481_vm1 = vcmask (!%p353_p3), 261120   ;;  %s1581_s20 = smov (!%p353_p3), 96   ;;  %vm528_vm2 = vcmask (!%p353_p3), 64512  }
   0x7   : > { %356 = sbr.rel (%p353_p3) target bundleno = 2519 (0x9d7), region = 56  ;;  %1417 = vmatprep.subr.bf16.mxu0 (!%p353_p3), %v1579_v0  ;;  %1419 = vmatprep.mubr.msk.bf16.mxu0 (!%p353_p3), %vm1580_vm0, %v1579_v0  ;;  %v476_v7 = vld [vmem:[%s1824_s3] sm:$0xf] (!%p353_p3)  ;;  %vm545_vm3 = vcmask (!%p353_p3), 1043456   ;;  %s1582_s26 = smov (!%p353_p3), 64   ;;  %v1530_v49 = vld [vmem:[%s1825_s4 + $0x8] sm:$0xff] (!%p353_p3)  }
   0x8   : > { %1423 = vmatprep.subr.bf16.mxu1 (!%p353_p3), %v1579_v0  ;;  %1425 = vmatprep.mubr.msk.bf16.mxu1 (!%p353_p3), %vm1580_vm0, %v1579_v0  ;;  %v1683_v8 = vunpack.c.l.bf16 (!%p353_p3), %v476_v7  ;;  %v1529_v48 = vld [vmem:[%s1825_s4] sm:$0xff] (!%p353_p3)   ;;  %v1531_v50 = vld [vmem:[%s1825_s4 + $0x10] sm:$0xff] (!%p353_p3)   ;;  %v1532_v51 = vld [vmem:[%s1825_s4 + $0x18] sm:$0xff] (!%p353_p3)   ;;  %s1583_s18 = smov (!%p353_p3), 32  }
   0xe   : > { %s1836_s30 = smov (!%p417_p4, %s1569_s30), 1 }
   0xf   : > { %s1661_s13 = smul.u32 12, %s1836_s30  ;;  %s1359_s29 = sshll.u32 %s1836_s30, 2 }
  0x10   : > { %s448_s15 = scalar_lea.vmem %s1827_s6, %s1359_s29  ;;  %s455_s22 = scalar_lea.vmem %s1830_s9, %s1359_s29 }
  0x11   : > { %s1274_s16 = scalar_lea.vmem %s1822_s1, %s1661_s13  ;;  %s425_s19 = scalar_lea.vmem %s1821_s0, %s1661_s13 }
  0x12   : > { %v1361_v1 = vld [vmem:[%s1274_s16 + $0x4] sm:$0xf]  ;;  %v457_v2 = vld [vmem:[%s425_s19] sm:$0xf]  ;;  %s1278_s25 = scalar_lea.vmem %s1823_s2, %s1661_s13 }
  0x13   : > { %v486_v3 = vsel %vm481_vm1, %v1361_v1, 0  ;;  %v478_v4 = vunpack.c.l.bf16 %v457_v2  ;;  %v1687_v15 = vcombine.low %v1361_v1, %v1361_v1  ;;  %v1362_v16 = vld [vmem:[%s1278_s25 + $0x8] sm:$0xf] }
  0x14   : > { %1418 = vmatpush3.bf16.xpose.msra.mxu0 %v486_v3  ;;  %v547_v17 = vsel %vm545_vm3, %v1362_v16, 0  ;;  %v1695_v18 = vcombine.low %v1362_v16, %v1362_v16 }
  0x15   : > { %v479_v5 = vmul.f32 0.17677669, %v478_v4  ;;  %1435 = vmatprep.subr.bf16.mxu0 %v1579_v0  ;;  %1424 = vmatpush3.bf16.msra.mxu1 %v547_v17 }
  0x16   : > { %1429 = vmatprep.subr.bf16.mxu1 %v1579_v0 }
  0x17   : > { %v1673_v6 = vpack.c.bf16 %v479_v5, %v479_v5 }
  0x19   : > { %593 = vrot.lane.b32.xlu1 %v1673_v6, %s1581_s20 }
  0x1b   : > { %1420 = vmatmul.mubr.msk.bf16.vlgmr.msra.gmra.mrb[0].mxu0 %vm481_vm1, %v1673_v6 }
  0x1c   : > { %1437 = vmatprep.mubr.msk.bf16.mxu0 %vm1580_vm0, %v1579_v0 }
  0x8b   : > { %v594_v27 = vpop.permute.xlu1 %593 }
  0xee   : > { %v522_v9 = vpop.f32.mrb[0].mxu0 }
  0xef   : > { %v523_v10 = vadd.f32 %v522_v9, %v1683_v8  ;;  %v1421_v11 = vpop.f32.mrb[1].mxu0 }
  0xf0   : > { %v525_v12 = vpop.f32.mrb[2].mxu0 }
  0xf1   : > { %v1422_v13 = vpop.f32.mrb[3].mxu0  ;;  %v529_v14 = vsel %vm528_vm2, %v523_v10, -inf }
  0xf2   : > { %530 = vmax.xlane.f32.xlu0 %v529_v14 }
 0x108   : > { %598 = vrot.lane.b32.xlu0 %v1687_v15, %s1581_s20 }
 0x10c   : > { %662 = vrot.lane.b32.xlu0 %v1695_v18, %s1581_s20 }
 0x17f   : > { %v531_v19 = vpop.xlane.xlu0 %530 }
 0x180   : > { %v532_v20 = vmax.f32 %v531_v19, -1e+30 }
 0x182   : > { %v533_v21 = vsub.f32 %v523_v10, %v532_v20 }
 0x183   : > { %v599_v23 = vpop.permute.xlu0 %598 }
 0x184   : > { %v534_v22 = vmul.f32 1.442695, %v533_v21  ;;  %v604_v25 = vsel %vm481_vm1, %v599_v23, 0 }
 0x186   : > { %1537 = vpow2.f32 %v534_v22 }
 0x187   : > { %v663_v38 = vpop.permute.xlu0 %662 }
 0x188   : > { %v668_v39 = vsel %vm545_vm3, %v663_v38, 0 }
 0x189   : > { %1436 = vmatpush3.bf16.msra.mxu0 %v668_v39 }
 0x18a   : > { %1449 = vmatprep.subr.bf16.mxu0 %v1579_v0 }
 0x190   : > { %v1538_v24 = vpop.eup %1537 }
 0x191   : > { %v541_v26 = vpack.c.bf16 %v1538_v24, %v1538_v24  ;;  %v536_v47 = vsel %vm528_vm2, %v1538_v24, 0.0 }
 0x193   : > { %1426 = vmatmul.mubr.msk.bf16.vlgmr.msra.gmra.mrb[0].mxu1 %vm528_vm2, %v541_v26 }
 0x194   : > { %1430 = vmatpush3.bf16.xpose.msra.mxu1 %v604_v25  ;;  %1431 = vmatprep.mubr.msk.bf16.mxu1 %vm1580_vm0, %v1579_v0 }
 0x195   : > { %1441 = vmatprep.subr.bf16.mxu1 %v1579_v0 }
 0x19b   : > { %1432 = vmatmul.mubr.msk.bf16.vlgmr.msra.gmra.mrb[4].mxu1 %vm481_vm1, %v594_v27 }
 0x19c   : > { %1445 = vmatprep.mubr.msk.bf16.mxu1 %vm1580_vm0, %v1579_v0  ;;  %1442 = vmatpush3.bf16.msra.mxu1 %v1531_v50 }
 0x19d   : > { %1443 = vmatprep.subr.bf16.mxu1 %v1579_v0 }
 0x1a0   : > { %1444 = vmatpush3.bf16.msra.mxu1 %v1532_v51 }
 0x1a1   : > { %1457 = vmatprep.subr.bf16.mxu1 %v1579_v0 }
 0x266   : > { %v583_v28 = vpop.f32.mrb[0].mxu1 }
 0x267   : > { %v1427_v29 = vpop.f32.mrb[1].mxu1 }
 0x268   : > { %v586_v30 = vpop.f32.mrb[2].mxu1 }
 0x269   : > { %v1428_v31 = vpop.f32.mrb[3].mxu1 }
 0x26e   : > { %v640_v32 = vpop.f32.mrb[4].mxu1 }
 0x26f   : > { %v641_v33 = vadd.f32 %v640_v32, %v1683_v8  ;;  %v1433_v34 = vpop.f32.mrb[5].mxu1 }
 0x270   : > { %v643_v35 = vpop.f32.mrb[6].mxu1 }
 0x271   : > { %v1434_v36 = vpop.f32.mrb[7].mxu1  ;;  %v646_v37 = vsel %vm528_vm2, %v641_v33, -inf  ;;  %v1533_v35 = vld [vmem:[%s1825_s4 + $0x20] sm:$0xff]  }
 0x272   : > { %647 = vmax.xlane.f32.xlu1 %v646_v37  ;;  %v1534_v36 = vld [vmem:[%s1825_s4 + $0x28] sm:$0xff]  }
 0x283   : > { %825 = vrot.lane.b32.xlu1 %v1687_v15, %s1582_s26 }
 0x287   : > { %823 = vrot.lane.b32.xlu1 %v1673_v6, %s1582_s26 }
 0x2ff   : > { %v648_v40 = vpop.xlane.xlu1 %647 }
 0x300   : > { %v649_v41 = vmax.f32 %v648_v40, -1e+30 }
 0x302   : > { %v650_v42 = vsub.f32 %v641_v33, %v649_v41 }
 0x303   : > { %v826_v61 = vpop.permute.xlu1 %825 }
 0x304   : > { %v651_v43 = vmul.f32 1.442695, %v650_v42  ;;  %v831_v3 = vsel %vm481_vm1, %v826_v61, 0 }
 0x306   : > { %1539 = vpow2.f32 %v651_v43 }
 0x307   : > { %v824_v5 = vpop.permute.xlu1 %823 }
 0x310   : > { %v1540_v44 = vpop.eup %1539 }
 0x311   : > { %v653_v45 = vsel %vm528_vm2, %v1540_v44, 0.0  ;;  %v658_v46 = vpack.c.bf16 %v1540_v44, %v1540_v44 }
 0x312   : > { %654 = vadd.xlane.f32.xlu0 %v653_v45 }
 0x313   : > { %1438 = vmatmul.mubr.msk.bf16.vlgmr.msra.gmra.mrb[4].mxu0 %vm528_vm2, %v658_v46 }
 0x314   : > { %1453 = vmatprep.mubr.msk.bf16.mxu0 %vm1580_vm0, %v1579_v0  ;;  %1450 = vmatpush3.bf16.msra.mxu0 %v1529_v48 }
 0x315   : > { %1451 = vmatprep.subr.bf16.mxu0 %v1579_v0 }
 0x316   : > { %537 = vadd.xlane.f32.xlu0 %v536_v47 }
 0x318   : > { %1452 = vmatpush3.bf16.msra.mxu0 %v1530_v49 }
 0x319   : > { %1463 = vmatprep.subr.bf16.mxu0 %v1579_v0 }
 0x32c   : > { %886 = vrot.lane.b32.xlu0 %v1695_v18, %s1582_s26 }
 0x330   : > { %995 = vrot.lane.b32.xlu0 %v1687_v15, %s1583_s18 }
 0x334   : > { %993 = vrot.lane.b32.xlu0 %v1673_v6, %s1583_s18 }
 0x39f   : > { %v655_v52 = vpop.xlane.xlu0 %654 }
 0x3a0   : > { %vm656_vm5 = vcmp.eq.f32.partialorder %v655_v52, 0.0 }
 0x3a1   : > { %v657_v58 = vsel %vm656_vm5, 1.0, %v655_v52 }
 0x3a3   : > { %v538_v53 = vpop.xlane.xlu0 %537 }
 0x3a4   : > { %vm539_vm4 = vcmp.eq.f32.partialorder %v538_v53, 0.0 }
 0x3a5   : > { %v540_v54 = vsel %vm539_vm4, 1.0, %v538_v53 }
 0x3a6   : > { %1541 = vrcp.f32 %v540_v54 }
 0x3a7   : > { %1543 = vrcp.f32 %v657_v58  ;;  %v887_v6 = vpop.permute.xlu0 %886 }
 0x3a8   : > { %v892_v24 = vsel %vm545_vm3, %v887_v6, 0 }
 0x3ab   : > { %v996_v29 = vpop.permute.xlu0 %995 }
 0x3ac   : > { %v1001_v31 = vsel %vm481_vm1, %v996_v29, 0 }
 0x3af   : > { %v994_v34 = vpop.permute.xlu0 %993 }
 0x3b0   : > { %v1542_v55 = vpop.eup %1541 }
 0x3b1   : > { %v590_v56 = vmul.f32 %v1542_v55, %v583_v28  ;;  %v1544_v59 = vpop.eup %1543 }
 0x3b3   : > { %v591_v57 = vpack.c.bf16 %v590_v56, %v590_v56 }
 0x3b5   : > { %1454 = vmatmul.mubr.msk.bf16.vlgmr.msra.gmra.mrb[8].mxu0 %vm481_vm1, %v591_v57 }
 0x3b6   : > { %1465 = vmatprep.mubr.msk.bf16.mxu0 %vm1580_vm0, %v1579_v0  ;;  %1464 = vmatpush3.bf16.msra.mxu0 %v892_v24 }
 0x3b7   : > { %1477 = vmatprep.subr.bf16.mxu0 %v1579_v0 }
 0x3e6   : > { %v704_v60 = vpop.f32.mrb[4].mxu0 }
 0x3e7   : > { %v711_v62 = vmul.f32 %v1544_v59, %v704_v60  ;;  %v1439_v63 = vpop.f32.mrb[5].mxu0 }
 0x3e8   : > { %v707_v1 = vpop.f32.mrb[6].mxu0 }
 0x3e9   : > { %v712_v2 = vpack.c.bf16 %v711_v62, %v711_v62  ;;  %v1440_v4 = vpop.f32.mrb[7].mxu0 }
 0x3eb   : > { %1446 = vmatmul.mubr.msk.bf16.vlgmr.msra.gmra.mrb[8].mxu1 %vm481_vm1, %v712_v2  ;;  %v1536_v2 = vld [vmem:[%s1825_s4 + $0x38] sm:$0xff]  }
 0x3ec   : > { %1458 = vmatpush3.bf16.xpose.msra.mxu1 %v831_v3  ;;  %1459 = vmatprep.mubr.msk.bf16.mxu1 %vm1580_vm0, %v1579_v0 }
 0x3ed   : > { %1469 = vmatprep.subr.bf16.mxu1 %v1579_v0 }
 0x3f3   : > { %1460 = vmatmul.mubr.msk.bf16.vlgmr.msra.gmra.mrb[12].mxu1 %vm481_vm1, %v824_v5 }
 0x3f4   : > { %1473 = vmatprep.mubr.msk.bf16.mxu1 %vm1580_vm0, %v1579_v0  ;;  %1470 = vmatpush3.bf16.msra.mxu1 %v1533_v35 }
 0x3f5   : > { %1471 = vmatprep.subr.bf16.mxu1 %v1579_v0 }
 0x3f8   : > { %1472 = vmatpush3.bf16.msra.mxu1 %v1534_v36  ;;  %v1385_v36 = vld [vmem:[%s1828_s7] ss:$0 sm:$0xff] }
 0x3f9   : > { %1483 = vmatprep.subr.bf16.mxu1 %v1579_v0 }
 0x488   : > { %v817_v7 = vpop.f32.mrb[8].mxu0 }
 0x489   : > { %v1455_v9 = vpop.f32.mrb[9].mxu0 }
 0x48a   : > { %v820_v10 = vpop.f32.mrb[10].mxu0 }
 0x48b   : > { %v1456_v11 = vpop.f32.mrb[11].mxu0 }
 0x4be   : > { %v762_v12 = vpop.f32.mrb[8].mxu1 }
 0x4bf   : > { %v1750_v13 = vadd.f32 %v817_v7, %v762_v12  ;;  %v1447_v14 = vpop.f32.mrb[9].mxu1 }
 0x4c0   : > { %v765_v16 = vpop.f32.mrb[10].mxu1 }
 0x4c1   : > { %v1448_v17 = vpop.f32.mrb[11].mxu1  ;;  %v1163_v16 = vld [vmem:[%s1826_s5] sm:$0x1] }
 0x4c2   : > { %v1164_v17 = vunpack.c.l.bf16 %v1163_v16 }
 0x4c6   : > { %v867_v19 = vpop.f32.mrb[12].mxu1 }
 0x4c7   : > { %v868_v20 = vadd.f32 %v867_v19, %v1683_v8  ;;  %v1461_v21 = vpop.f32.mrb[13].mxu1 }
 0x4c8   : > { %v870_v22 = vpop.f32.mrb[14].mxu1 }
 0x4c9   : > { %v1462_v23 = vpop.f32.mrb[15].mxu1  ;;  %v873_v15 = vsel %vm528_vm2, %v868_v20, -inf }
 0x4ca   : > { %874 = vmax.xlane.f32.xlu1 %v873_v15 }
 0x557   : > { %v875_v25 = vpop.xlane.xlu1 %874 }
 0x558   : > { %v876_v26 = vmax.f32 %v875_v25, -1e+30 }
 0x55a   : > { %v877_v27 = vsub.f32 %v868_v20, %v876_v26  ;;  %v1170_v20 = vld [vmem:[%s448_s15] sm:$0xf] }
 0x55b   : > { %v1171_v6 = vunpack.c.l.bf16 %v1170_v20 }
 0x55c   : > { %v878_v28 = vmul.f32 1.442695, %v877_v27 }
 0x55e   : > { %1545 = vpow2.f32 %v878_v28 }
 0x568   : > { %v1546_v30 = vpop.eup %1545 }
 0x569   : > { %v880_v32 = vsel %vm528_vm2, %v1546_v30, 0.0  ;;  %v885_v33 = vpack.c.bf16 %v1546_v30, %v1546_v30 }
 0x56a   : > { %881 = vadd.xlane.f32.xlu0 %v880_v32 }
 0x56b   : > { %1466 = vmatmul.mubr.msk.bf16.vlgmr.msra.gmra.mrb[12].mxu0 %vm528_vm2, %v885_v33 }
 0x56c   : > { %1478 = vmatpush3.bf16.xpose.msra.mxu0 %v1001_v31  ;;  %1479 = vmatprep.mubr.msk.bf16.mxu0 %vm1580_vm0, %v1579_v0 }
 0x56d   : > { %1489 = vmatprep.subr.bf16.mxu0 %v1579_v0 }
 0x573   : > { %1480 = vmatmul.mubr.msk.bf16.vlgmr.msra.gmra.mrb[16].mxu0 %vm481_vm1, %v994_v34 }
 0x574   : > { %1493 = vmatprep.mubr.msk.bf16.mxu0 %vm1580_vm0, %v1579_v0 }
 0x5f7   : > { %v882_v37 = vpop.xlane.xlu0 %881 }
 0x5f8   : > { %vm883_vm6 = vcmp.eq.f32.partialorder %v882_v37, 0.0 }
 0x5f9   : > { %v884_v38 = vsel %vm883_vm6, 1.0, %v882_v37 }
 0x5fa   : > { %1547 = vrcp.f32 %v884_v38  ;;  %v1386_v38 = vld [vmem:[%s1829_s8] ss:$0 sm:$0xff] }
 0x604   : > { %v1548_v39 = vpop.eup %1547 }
 0x63e   : > { %v928_v40 = vpop.f32.mrb[12].mxu0 }
 0x63f   : > { %v935_v41 = vmul.f32 %v1548_v39, %v928_v40  ;;  %v1467_v42 = vpop.f32.mrb[13].mxu0 }
 0x640   : > { %v931_v43 = vpop.f32.mrb[14].mxu0 }
 0x641   : > { %v936_v44 = vpack.c.bf16 %v935_v41, %v935_v41  ;;  %v1468_v45 = vpop.f32.mrb[15].mxu0 }
 0x643   : > { %1474 = vmatmul.mubr.msk.bf16.vlgmr.msra.gmra.mrb[16].mxu1 %vm481_vm1, %v936_v44 }
 0x644   : > { %1485 = vmatprep.mubr.msk.bf16.mxu1 %vm1580_vm0, %v1579_v0 }
 0x646   : > { %v1037_v46 = vpop.f32.mrb[16].mxu0 }
 0x647   : > { %v1038_v47 = vadd.f32 %v1037_v46, %v1683_v8  ;;  %v1481_v48 = vpop.f32.mrb[17].mxu0 }
 0x648   : > { %v1040_v49 = vpop.f32.mrb[18].mxu0 }
 0x649   : > { %v1482_v50 = vpop.f32.mrb[19].mxu0  ;;  %v1043_v51 = vsel %vm528_vm2, %v1038_v47, -inf }
 0x64a   : > { %1044 = vmax.xlane.f32.xlu1 %v1043_v51 }
 0x65b   : > { %1056 = vrot.lane.b32.xlu1 %v1695_v18, %s1583_s18  ;;  %v1535_v18 = vld [vmem:[%s1825_s4 + $0x30] sm:$0xff]  }
 0x65c   : > { %1490 = vmatpush3.bf16.msra.mxu0 %v1535_v18 }
 0x65d   : > { %1491 = vmatprep.subr.bf16.mxu0 %v1579_v0 }
 0x660   : > { %1492 = vmatpush3.bf16.msra.mxu0 %v1536_v2 }
 0x6d7   : > { %v1045_v52 = vpop.xlane.xlu1 %1044 }
 0x6d8   : > { %v1046_v53 = vmax.f32 %v1045_v52, -1e+30 }
 0x6da   : > { %v1047_v54 = vsub.f32 %v1038_v47, %v1046_v53 }
 0x6db   : > { %v1057_v55 = vpop.permute.xlu1 %1056 }
 0x6dc   : > { %v1048_v56 = vmul.f32 1.442695, %v1047_v54  ;;  %v1062_v57 = vsel %vm545_vm3, %v1057_v55, 0 }
 0x6dd   : > { %1484 = vmatpush3.bf16.msra.mxu1 %v1062_v57 }
 0x6de   : > { %1549 = vpow2.f32 %v1048_v56 }
 0x6e8   : > { %v1550_v58 = vpop.eup %1549 }
 0x6e9   : > { %v1050_v8 = vsel %vm528_vm2, %v1550_v58, 0.0  ;;  %v1055_v59 = vpack.c.bf16 %v1550_v58, %v1550_v58 }
 0x6ea   : > { %1051 = vadd.xlane.f32.xlu1 %v1050_v8 }
 0x6eb   : > { %1486 = vmatmul.mubr.msk.bf16.vlgmr.msra.gmra.mrb[20].mxu1 %vm528_vm2, %v1055_v59 }
 0x716   : > { %v986_v60 = vpop.f32.mrb[16].mxu1 }
 0x717   : > { %v992_v61 = vadd.f32 %v986_v60, %v1750_v13  ;;  %v1475_v62 = vpop.f32.mrb[17].mxu1  ;;  %v1165_v13 = vlaneseq }
 0x718   : > { %v989_v63 = vpop.f32.mrb[18].mxu1 }
 0x719   : > { %v1476_v1 = vpop.f32.mrb[19].mxu1  ;;  %v1166_v14 = vshrl.u32 %v1165_v13, 7 }
 0x71b   : > { %v1167_v19 = vsub.s32 0, %v1166_v14 }
 0x71d   : > { %v1168_v21 = vrot.slane %v1164_v17, %v1167_v19 }
 0x777   : > { %v1052_v3 = vpop.xlane.xlu1 %1051 }
 0x778   : > { %vm1053_vm7 = vcmp.eq.f32.partialorder %v1052_v3, 0.0 }
 0x779   : > { %v1054_v4 = vsel %vm1053_vm7, 1.0, %v1052_v3 }
 0x77a   : > { %1551 = vrcp.f32 %v1054_v4 }
 0x784   : > { %v1552_v5 = vpop.eup %1551 }
 0x7be   : > { %v1098_v7 = vpop.f32.mrb[20].mxu1 }
 0x7bf   : > { %v1105_v0 = vmul.f32 %v1552_v5, %v1098_v7  ;;  %v1487_v9 = vpop.f32.mrb[21].mxu1 }
 0x7c0   : > { %v1101_v10 = vpop.f32.mrb[22].mxu1 }
 0x7c1   : > { %v1106_v11 = vpack.c.bf16 %v1105_v0, %v1105_v0  ;;  %v1488_v12 = vpop.f32.mrb[23].mxu1 }
 0x7c3   : > { %1494 = vmatmul.mubr.msk.bf16.vlgmr.msra.gmra.mrb[20].mxu0 %vm481_vm1, %v1106_v11 }
 0x896   : > { %v1156_v22 = vpop.f32.mrb[20].mxu0 }
 0x897   : > { %v1162_v23 = vadd.f32 %v1156_v22, %v992_v61  ;;  %v1495_v15 = vpop.f32.mrb[21].mxu0 }
 0x898   : > { %v1159_v24 = vpop.f32.mrb[22].mxu0 }
 0x899   : > { %v1169_v25 = vadd.f32 %v1168_v21, %v1162_v23  ;;  %v1496_v26 = vpop.f32.mrb[23].mxu0 }
 0x89b   : > { %v1172_v27 = vadd.f32 %v1171_v6, %v1169_v25 }
 0x89d   : > { %1173 = vadd.xlane.f32.xlu0 %v1172_v27 }
 0x92a   : > { %v1174_v28 = vpop.xlane.xlu0 %1173 }
 0x92b   : > { %v1176_v29 = vmul.f32 0.0078125, %v1174_v28 }
 0x92d   : > { %v1177_v30 = vsub.f32 %v1172_v27, %v1176_v29 }
 0x92f   : > { %v1178_v31 = vmul.f32 %v1177_v30, %v1177_v30 }
 0x931   : > { %1179 = vadd.xlane.f32.xlu0 %v1178_v31 }
 0x9be   : > { %v1180_v32 = vpop.xlane.xlu0 %1179 }
 0x9bf   : > { %v1181_v33 = vmul.f32 0.0078125, %v1180_v32 }
 0x9c1   : > { %v1182_v34 = vadd.f32 1e-05, %v1181_v33 }
 0x9c3   : > { %1553 = vrsqrt.f32 %v1182_v34 }
 0x9cd   : > { %v1554_v35 = vpop.eup %1553 }
 0x9ce   : > { %v1184_v37 = vmul.f32 %v1554_v35, %v1177_v30 }
 0x9d0   : > { %v1192_v39 = vmul.f32 %v1385_v36, %v1184_v37 }
 0x9d2   : > { %v1200_v40 = vadd.f32 %v1386_v38, %v1192_v39 }
 0x9d4   : > { %v1201_v41 = vpack.c.bf16 %v1200_v40, %v1200_v40 }
 0x9d6   : > { %1202 = vst [vmem:[%s455_s22] sm:$0xf] %v1201_v41 }
 0x9d7 PF: > { %s19_s11 = sadd.s32 1, %s1577_s11   ;;  %s1831_s30 = smov %s1573_s10 }
 0x9d8   : > { %p16_p5 = scmp.ge.s32.totalorder %s19_s11, 4   ;;  %s1832_s10 = smov %s1834_s12 }
 0x9da   :  { %18 = sbr.rel (!%p16_p5) target bundleno = 2 (0x2), region = 98 }

// kernel: transformer_decoder_forward.25
= control target key start
LH: loop header
LB: loop body
LE: loop exit
PB: predicated region body
PF: predicated region fallthrough
CT: control target
= control target key end

     0   :  { %s124_s0 = inlined_call_operand.vmem [shape: bf16[16,128], index: 0, kind: input, shape index: {}]   ;;  %s125_s1 = inlined_call_operand.vmem [shape: f32[1,128], index: 1, kind: input, shape index: {}]   ;;  %s126_s2 = inlined_call_operand.vmem [shape: f32[1,128], index: 2, kind: input, shape index: {}]   ;;  %s127_s3 = inlined_call_operand.vmem [shape: bf16[16,128], index: 3, kind: output, shape index: {}]  }
   0x1   :  { %v80_v0 = vld [vmem:[%s124_s0] sm:$0xff]  }
   0x2   :  { %v81_v1 = vunpack.c.l.bf16 %v80_v0  ;;  %v82_v2 = vunpack.c.h.bf16 %v80_v0  ;;  %v73_v19 = vld [vmem:[%s125_s1] ss:$0 sm:$0xff] }
   0x3   :  { %v74_v23 = vld [vmem:[%s126_s2] ss:$0 sm:$0xff] }
   0x4   :  { %18 = vadd.xlane.f32.xlu0 %v81_v1 }
   0x8   :  { %20 = vadd.xlane.f32.xlu0 %v82_v2 }
  0x91   :  { %v19_v3 = vpop.xlane.xlu0 %18 }
  0x92   :  { %v23_v4 = vmul.f32 0.0078125, %v19_v3 }
  0x94   :  { %v25_v5 = vsub.f32 %v81_v1, %v23_v4 }
  0x95   :  { %v21_v6 = vpop.xlane.xlu0 %20 }
  0x96   :  { %v24_v7 = vmul.f32 0.0078125, %v21_v6  ;;  %v27_v8 = vmul.f32 %v25_v5, %v25_v5 }
  0x98   :  { %v26_v9 = vsub.f32 %v82_v2, %v24_v7  ;;  %29 = vadd.xlane.f32.xlu1 %v27_v8 }
  0x9a   :  { %v28_v10 = vmul.f32 %v26_v9, %v26_v9 }
  0x9c   :  { %31 = vadd.xlane.f32.xlu1 %v28_v10 }
 0x125   :  { %v30_v11 = vpop.xlane.xlu1 %29 }
 0x126   :  { %v33_v12 = vmul.f32 0.0078125, %v30_v11 }
 0x128   :  { %v35_v13 = vadd.f32 1e-05, %v33_v12 }
 0x129   :  { %v32_v14 = vpop.xlane.xlu1 %31 }
 0x12a   :  { %88 = vrsqrt.f32 %v35_v13  ;;  %v34_v15 = vmul.f32 0.0078125, %v32_v14 }
 0x12c   :  { %v36_v16 = vadd.f32 1e-05, %v34_v15 }
 0x12e   :  { %90 = vrsqrt.f32 %v36_v16 }
 0x134   :  { %v89_v17 = vpop.eup %88 }
 0x135   :  { %v39_v18 = vmul.f32 %v89_v17, %v25_v5 }
 0x137   :  { %v48_v21 = vmul.f32 %v73_v19, %v39_v18 }
 0x138   :  { %v91_v20 = vpop.eup %90 }
 0x139   :  { %v40_v22 = vmul.f32 %v91_v20, %v26_v9  ;;  %v57_v25 = vadd.f32 %v74_v23, %v48_v21 }
 0x13b   :  { %v49_v24 = vmul.f32 %v73_v19, %v40_v22 }
 0x13d   :  { %v58_v26 = vadd.f32 %v74_v23, %v49_v24 }
 0x13f   :  { %v86_v27 = vpack.c.bf16 %v58_v26, %v57_v25 }
 0x141   :  { %87 = vst [vmem:[%s127_s3] sm:$0xff] %v86_v27  }

// kernel: transformer_decoder_forward.18
= control target key start
LH: loop header
LB: loop body
LE: loop exit
PB: predicated region body
PF: predicated region fallthrough
CT: control target
= control target key end

     0   :  { %v572_v1 = vmov 0   ;;  %v54_v34 = vlaneseq  ;;  %s730_s1 = inlined_call_operand.vmem [shape: bf16[128,256], index: 1, kind: input, shape index: {}]   ;;  %s731_s0 = inlined_call_operand.vmem [shape: bf16[16,128], index: 0, kind: input, shape index: {}]   ;;  %s732_s3 = inlined_call_operand.vmem [shape: bf16[256,128], index: 3, kind: input, shape index: {}]   ;;  %s733_s2 = inlined_call_operand.vmem [shape: bf16[1,256], index: 2, kind: input, shape index: {}]   ;;  %s734_s4 = inlined_call_operand.vmem [shape: bf16[1,128], index: 4, kind: input, shape index: {}]   ;;  %s735_s5 = inlined_call_operand.vmem [shape: f32[1,128], index: 5, kind: input, shape index: {}]   ;;  %s736_s6 = inlined_call_operand.vmem [shape: f32[1,128], index: 6, kind: input, shape index: {}]   ;;  %s737_s7 = inlined_call_operand.vmem [shape: bf16[16,128], index: 7, kind: output, shape index: {}]  }
   0x1   :  { %v527_v0 = vld [vmem:[%s730_s1 + $0x4] ss:$8 sps:$4 sm:$0xff]   ;;  %190 = vmatprep.mubr.bf16.mxu0 %v572_v1  ;;  %v529_v2 = vld [vmem:[%s730_s1] ss:$8 sps:$4 sm:$0xff]   ;;  %v530_v3 = vld [vmem:[%s730_s1 + $0x14] ss:$8 sps:$4 sm:$0xff]  }
   0x2   :  { %158 = vmatprep.subr.bf16.mxu0 %v527_v0  ;;  %v532_v4 = vld [vmem:[%s730_s1 + $0x10] ss:$8 sps:$4 sm:$0xff]   ;;  %v533_v5 = vld [vmem:[%s730_s1 + $0x24] ss:$8 sps:$4 sm:$0xff]   ;;  %v535_v6 = vld [vmem:[%s730_s1 + $0x20] ss:$8 sps:$4 sm:$0xff]  }
   0x3   :  { %159 = vmatpush1.bf16.msra.mxu0 %v529_v2  ;;  %v536_v7 = vld [vmem:[%s730_s1 + $0x34] ss:$8 sps:$4 sm:$0xff]   ;;  %v538_v8 = vld [vmem:[%s730_s1 + $0x30] ss:$8 sps:$4 sm:$0xff]   ;;  %v539_v9 = vld [vmem:[%s730_s1 + $0x44] ss:$8 sps:$4 sm:$0xff]  }
   0x4   :  { %160 = vmatprep.subr.bf16.mxu0 %v530_v3  ;;  %v552_v10 = vld [vmem:[%s732_s3 + $0x40] sm:$0xff]   ;;  %v542_v13 = vld [vmem:[%s730_s1 + $0x54] ss:$8 sps:$4 sm:$0xff]   ;;  %v554_v14 = vld [vmem:[%s732_s3 + $0x48] sm:$0xff]   ;;  %v55_v35 = vshrl.u32 %v54_v34, 7 }
   0x5   :  { %v541_v11 = vld [vmem:[%s730_s1 + $0x40] ss:$8 sps:$4 sm:$0xff]   ;;  %504 = vmatprep.subr.bf16.mxu1 %v552_v10  ;;  %v556_v16 = vld [vmem:[%s732_s3 + $0x50] sm:$0xff]   ;;  %v545_v18 = vld [vmem:[%s730_s1 + $0x64] ss:$8 sps:$4 sm:$0xff]  }
   0x6   :  { %v553_v12 = vld [vmem:[%s732_s3] sm:$0xff]   ;;  %v555_v15 = vld [vmem:[%s732_s3 + $0x8] sm:$0xff]   ;;  %v544_v17 = vld [vmem:[%s730_s1 + $0x50] ss:$8 sps:$4 sm:$0xff]   ;;  %v56_v38 = vsub.s32 0, %v55_v35  ;;  %v60_v39 = vsub.s32 2, %v55_v35 }
   0x7   :  { %161 = vmatpush1.bf16.msra.mxu0 %v532_v4  ;;  %505 = vmatpush3.bf16.msra.mxu1 %v553_v12  ;;  %v557_v19 = vld [vmem:[%s732_s3 + $0x10] sm:$0xff]   ;;  %v558_v20 = vld [vmem:[%s732_s3 + $0x58] sm:$0xff]   ;;  %v547_v21 = vld [vmem:[%s730_s1 + $0x60] ss:$8 sps:$4 sm:$0xff]  }
   0x8   :  { %162 = vmatprep.subr.bf16.mxu0 %v533_v5  ;;  %506 = vmatprep.subr.bf16.mxu1 %v554_v14  ;;  %v548_v22 = vld [vmem:[%s730_s1 + $0x74] ss:$8 sps:$4 sm:$0xff]   ;;  %v560_v24 = vld [vmem:[%s732_s3 + $0x60] sm:$0xff]   ;;  %v550_v25 = vld [vmem:[%s730_s1 + $0x70] ss:$8 sps:$4 sm:$0xff]  }
   0x9   :  { %v559_v23 = vld [vmem:[%s732_s3 + $0x18] sm:$0xff]   ;;  %v561_v26 = vld [vmem:[%s732_s3 + $0x20] sm:$0xff]   ;;  %v562_v27 = vld [vmem:[%s732_s3 + $0x68] sm:$0xff]  }
   0xa   :  { %v551_v28 = vld [vmem:[%s731_s0] sm:$0xff]   ;;  %v563_v29 = vld [vmem:[%s732_s3 + $0x28] sm:$0xff]   ;;  %v564_v30 = vld [vmem:[%s732_s3 + $0x70] sm:$0xff]  }
   0xb   :  { %163 = vmatpush1.bf16.msra.mxu0 %v535_v6  ;;  %507 = vmatpush3.bf16.msra.mxu1 %v555_v15  ;;  %v565_v31 = vld [vmem:[%s732_s3 + $0x30] sm:$0xff]   ;;  %v566_v32 = vld [vmem:[%s732_s3 + $0x78] sm:$0xff]   ;;  %v51_v36 = vld [vmem:[%s733_s2] sm:$0x3] }
   0xc   :  { %164 = vmatprep.subr.bf16.mxu0 %v536_v7  ;;  %508 = vmatprep.subr.bf16.mxu1 %v556_v16  ;;  %v567_v33 = vld [vmem:[%s732_s3 + $0x38] sm:$0xff]   ;;  %v52_v37 = vunpack.c.l.bf16 %v51_v36  ;;  %v387_v58 = vld [vmem:[%s734_s4] sm:$0x1] }
   0xd   :  { %v388_v59 = vunpack.c.l.bf16 %v387_v58  ;;  %v496_v60 = vld [vmem:[%s731_s0] sm:$0xff]  }
   0xe   :  { %v57_v40 = vrot.slane %v52_v37, %v56_v38  ;;  %v61_v41 = vrot.slane %v52_v37, %v60_v39  ;;  %v497_v2 = vunpack.c.l.bf16 %v496_v60 }
   0xf   :  { %165 = vmatpush1.bf16.msra.mxu0 %v538_v8  ;;  %509 = vmatpush3.bf16.msra.mxu1 %v557_v19  ;;  %v392_v62 = vrot.slane %v388_v59, %v56_v38  ;;  %v498_v8 = vunpack.c.h.bf16 %v496_v60 }
  0x10   :  { %166 = vmatprep.subr.bf16.mxu0 %v539_v9  ;;  %510 = vmatprep.subr.bf16.mxu1 %v558_v20  ;;  %v67_v42 = vrot.slane %v57_v40, %v56_v38  ;;  %v71_v43 = vrot.slane %v61_v41, %v56_v38 }
  0x13   :  { %167 = vmatpush1.bf16.msra.mxu0 %v541_v11  ;;  %511 = vmatpush3.bf16.msra.mxu1 %v559_v23 }
  0x14   :  { %168 = vmatprep.subr.bf16.mxu0 %v542_v13  ;;  %512 = vmatprep.subr.bf16.mxu1 %v560_v24 }
  0x17   :  { %169 = vmatpush1.bf16.msra.mxu0 %v544_v17  ;;  %513 = vmatpush3.bf16.msra.mxu1 %v561_v26  ;;  %v489_v26 = vld [vmem:[%s735_s5] ss:$0 sm:$0xff] }
  0x18   :  { %170 = vmatprep.subr.bf16.mxu0 %v545_v18  ;;  %514 = vmatprep.subr.bf16.mxu1 %v562_v27 }
  0x1b   :  { %171 = vmatpush1.bf16.msra.mxu0 %v547_v21  ;;  %515 = vmatpush3.bf16.msra.mxu1 %v563_v29 }
  0x1c   :  { %172 = vmatprep.subr.bf16.mxu0 %v548_v22  ;;  %516 = vmatprep.subr.bf16.mxu1 %v564_v30  ;;  %v490_v30 = vld [vmem:[%s736_s6] ss:$0 sm:$0xff] }
  0x1f   :  { %173 = vmatpush1.bf16.msra.mxu0 %v550_v25  ;;  %517 = vmatpush3.bf16.msra.mxu1 %v565_v31 }
  0x20   :  { %518 = vmatprep.subr.bf16.mxu1 %v566_v32 }
  0x22   :  { %191 = vmatmul.mubr.bf16.vlgmr.msra.gmra.mrb[0].mxu0 %v551_v28 }
  0x23   :  { %519 = vmatpush3.bf16.msra.mxu1 %v567_v33 }
  0xf5   :  { %v192_v44 = vpop.f32.mrb[0].mxu0 }
  0xf6   :  { %v193_v45 = vadd.f32 %v192_v44, %v67_v42  ;;  %v194_v46 = vpop.f32.mrb[1].mxu0 }
  0xf7   :  { %v195_v47 = vadd.f32 %v194_v46, %v71_v43  ;;  %v196_v48 = vpop.f32.mrb[2].mxu0 }
  0xf8   :  { %v197_v49 = vadd.f32 %v196_v48, %v67_v42  ;;  %v198_v50 = vpop.f32.mrb[3].mxu0  ;;  %v201_v52 = vmax.f32 %v193_v45, 0.0 }
  0xf9   :  { %v199_v51 = vadd.f32 %v198_v50, %v71_v43  ;;  %v202_v54 = vmax.f32 %v195_v47, 0.0 }
  0xfa   :  { %v203_v53 = vmax.f32 %v197_v49, 0.0 }
  0xfb   :  { %v204_v55 = vmax.f32 %v199_v51, 0.0 }
  0xfc   :  { %v207_v56 = vpack.c.bf16 %v203_v53, %v201_v52 }
  0xfd   :  { %v208_v57 = vpack.c.bf16 %v204_v55, %v202_v54 }
  0xff   :  { %369 = vmatprep.mubr.bf16.mxu1 %v208_v57 }
 0x100   :  { %370 = vmatmul.mubr.bf16.vlgmr.msra.gmra.mrb[0].mxu1 %v207_v56 }
 0x1d3   :  { %v520_v61 = vpop.f32.mrb[0].mxu1 }
 0x1d4   :  { %v521_v63 = vpop.f32.mrb[1].mxu1 }
 0x1d5   :  { %v522_v0 = vadd.f32 %v521_v63, %v520_v61  ;;  %v523_v1 = vpop.f32.mrb[2].mxu1 }
 0x1d6   :  { %v524_v3 = vpop.f32.mrb[3].mxu1 }
 0x1d7   :  { %v393_v4 = vadd.f32 %v522_v0, %v392_v62  ;;  %v525_v5 = vadd.f32 %v524_v3, %v523_v1 }
 0x1d9   :  { %v394_v6 = vadd.f32 %v525_v5, %v392_v62  ;;  %v399_v7 = vadd.f32 %v497_v2, %v393_v4 }
 0x1db   :  { %401 = vadd.xlane.f32.xlu0 %v399_v7  ;;  %v400_v9 = vadd.f32 %v498_v8, %v394_v6 }
 0x1df   :  { %403 = vadd.xlane.f32.xlu0 %v400_v9 }
 0x268   :  { %v402_v10 = vpop.xlane.xlu0 %401 }
 0x269   :  { %v406_v11 = vmul.f32 0.0078125, %v402_v10 }
 0x26b   :  { %v408_v12 = vsub.f32 %v399_v7, %v406_v11 }
 0x26c   :  { %v404_v13 = vpop.xlane.xlu0 %403 }
 0x26d   :  { %v407_v14 = vmul.f32 0.0078125, %v404_v13  ;;  %v410_v15 = vmul.f32 %v408_v12, %v408_v12 }
 0x26f   :  { %v409_v16 = vsub.f32 %v400_v9, %v407_v14  ;;  %412 = vadd.xlane.f32.xlu1 %v410_v15 }
 0x271   :  { %v411_v17 = vmul.f32 %v409_v16, %v409_v16 }
 0x273   :  { %414 = vadd.xlane.f32.xlu1 %v411_v17 }
 0x2fc   :  { %v413_v18 = vpop.xlane.xlu1 %412 }
 0x2fd   :  { %v416_v19 = vmul.f32 0.0078125, %v413_v18 }
 0x2ff   :  { %v418_v20 = vadd.f32 1e-05, %v416_v19 }
 0x300   :  { %v415_v21 = vpop.xlane.xlu1 %414 }
 0x301   :  { %568 = vrsqrt.f32 %v418_v20  ;;  %v417_v22 = vmul.f32 0.0078125, %v415_v21 }
 0x303   :  { %v419_v23 = vadd.f32 1e-05, %v417_v22 }
 0x305   :  { %570 = vrsqrt.f32 %v419_v23 }
 0x30b   :  { %v569_v24 = vpop.eup %568 }
 0x30c   :  { %v422_v25 = vmul.f32 %v569_v24, %v408_v12 }
 0x30e   :  { %v431_v28 = vmul.f32 %v489_v26, %v422_v25 }
 0x30f   :  { %v571_v27 = vpop.eup %570 }
 0x310   :  { %v423_v29 = vmul.f32 %v571_v27, %v409_v16  ;;  %v440_v32 = vadd.f32 %v490_v30, %v431_v28 }
 0x312   :  { %v432_v31 = vmul.f32 %v489_v26, %v423_v29 }
 0x314   :  { %v441_v33 = vadd.f32 %v490_v30, %v432_v31 }
 0x316   :  { %v502_v34 = vpack.c.bf16 %v441_v33, %v440_v32 }
 0x318   :  { %503 = vst [vmem:[%s737_s7] sm:$0xff] %v502_v34  }

// kernel: transformer_decoder_forward.17
= control target key start
LH: loop header
LB: loop body
LE: loop exit
PB: predicated region body
PF: predicated region fallthrough
CT: control target
= control target key end

     0   :  { %s1679_s27 = smov 0   ;;  %s1681_s28 = smov 0   ;;  %s1894_s0 = inlined_call_operand.vmem [shape: bf16[2,8,128], index: 0, kind: input, shape index: {}]   ;;  %s1895_s1 = inlined_call_operand.vmem [shape: bf16[2,16,256], index: 1, kind: input, shape index: {}, may-alias: {1,2}]   ;;  %s1896_s2 = inlined_call_operand.vmem [shape: bf16[2,16,256], index: 2, kind: input, shape index: {}, may-alias: {1,2}]   ;;  %s1897_s3 = inlined_call_operand.vmem [shape: bf16[128,128], index: 3, kind: input, shape index: {}]   ;;  %s1898_s4 = inlined_call_operand.vmem [shape: bf16[1,128], index: 4, kind: input, shape index: {}]   ;;  %s1899_s5 = inlined_call_operand.vmem [shape: bf16[2,8,128], index: 5, kind: input, shape index: {}]   ;;  %s1900_s6 = inlined_call_operand.vmem [shape: f32[1,128], index: 6, kind: input, shape index: {}]   ;;  %s1901_s7 = inlined_call_operand.vmem [shape: f32[1,128], index: 7, kind: input, shape index: {}]   ;;  %s1902_s8 = inlined_call_operand.vmem [shape: bf16[2,8,128], index: 8, kind: output, shape index: {}]  }
   0x1   :  { %s1683_s29 = smov 0   ;;  %s1685_s30 = smov 0  }
   0x2   :  { %s1687_s9 = smov 0  }
   0x3 LB: > { %s30_s10 = sadd.s32 1, %s1623_s30  ;;  %p72_p1 = scmp.ne.s32.totalorder %s1615_s28, %s1611_s27  ;;  %s1627_s9 = sphi %s1687_s9, %s18_s9   ;;  %s1623_s30 = sphi %s1685_s30, %s1907_s30   ;;  %s1619_s29 = sphi %s1683_s29, %s1906_s29   ;;  %s1615_s28 = sphi %s1681_s28, %s1905_s28   ;;  %s1611_s27 = sphi %s1679_s27, %s1904_s27  }
   0x4   : > { %p32_p0 = scmp.ge.s32.totalorder %s30_s10, 2  ;;  %p73_p2 = scmp.eq.s32.totalorder %s1627_s9, 0 }
   0x5   : > { %s65_s13 = sadd.s32 1, %s1615_s28  ;;  %p1365_p5 = scmp.ge.s32.totalorder %s1627_s9, 2 }
   0x6   : > { %s1909_s10 = smov (%p32_p0, %s30_s10), 0  ;;  %p1710_p3 = por %p73_p2, %p72_p1 }
   0x7   : > { %s62_s12 = ssub.s32 %s1623_s30, %s1909_s10  ;;  %276 = sbr.rel (%p1365_p5) target bundleno = 28 (0x1c), region = 32 }
   0x8   : > { %p63_p4 = scmp.eq.s32.totalorder %s62_s12, 0 }
   0xa   : > { %s1718_s14 = scalar_select %p63_p4, %s1615_s28, %s65_s13  }
   0xe   : > { %289 = sbr.rel (!%p1710_p3) target bundleno = 21 (0x15), region = 40  ;;  %s291_s15 = sand.u32 (%p1710_p3), 1, %s1615_s28  }
   0xf   : > { %s1406_s16 = sshll.u32 (%p1710_p3), %s1623_s30, 4  ;;  %s1366_s17 = sshll.u32 (%p1710_p3), %s291_s15, 3 }
  0x10   : > { %s296_s20 = scalar_lea.vmem (%p1710_p3), %s1895_s1, %s1406_s16  ;;  %s293_s21 = scalar_lea.vmem (%p1710_p3), [#allocation2], %s1366_s17 }
  0x11   : > { %v312_v0 = vld [vmem:[%s296_s20] sm:$0xf] (%p1710_p3)  ;;  %v314_v1 = vld [vmem:[%s296_s20 + $0x8] sm:$0xf] (%p1710_p3) }
  0x12   : > { %313 = vst [vmem:[%s293_s21] sm:$0xf] (%p1710_p3), %v312_v0  ;;  %315 = vst [vmem:[%s293_s21 + $0x4] sm:$0xf] (%p1710_p3), %v314_v1 }
  0x15 PF: > { %342 = sbr.rel (!%p1710_p3) target bundleno = 28 (0x1c), region = 81  ;;  %s344_s22 = sand.u32 (%p1710_p3), 1, %s1615_s28  }
  0x16   : > { %s1407_s23 = sshll.u32 (%p1710_p3), %s1623_s30, 4  ;;  %s1369_s24 = sshll.u32 (%p1710_p3), %s344_s22, 3 }
  0x17   : > { %s1271_s12 = scalar_lea.vmem (%p1710_p3), %s1896_s2, %s1407_s23  ;;  %s346_s13 = scalar_lea.vmem (%p1710_p3), [#allocation3], %s1369_s24 }
  0x18   : > { %v1372_v2 = vld [vmem:[%s1271_s12 + $0x4] sm:$0xf] (%p1710_p3)  ;;  %v1373_v3 = vld [vmem:[%s1271_s12 + $0xc] sm:$0xf] (%p1710_p3) }
  0x19   : > { %367 = vst [vmem:[%s346_s13] sm:$0xf] (%p1710_p3), %v1372_v2  ;;  %369 = vst [vmem:[%s346_s13 + $0x4] sm:$0xf] (%p1710_p3), %v1373_v3 }
  0x1c PF: > { %p1374_p6 = scmp.ge.s32.totalorder %s1627_s9, 1  ;;  %p405_p7 = scmp.lt.s32.totalorder %s1627_s9, 3 }
  0x1e   : > { %p406_p8 = pnand %p1374_p6, %p405_p7 }
  0x1f   : > { %s412_s11 = sand.u32 (!%p406_p8), 1, %s1611_s27   ;;  %p472_p9 = scmp.lt.s32.totalorder (!%p406_p8), %s1619_s29, 1  ;;  %v1629_v4 = vmov (!%p406_p8), 0.0   ;;  %vm1630_vm0 = vmmov (!%p406_p8), 0   ;;  %vm523_vm1 = vcmask (!%p406_p8), 261120   ;;  %vm570_vm2 = vcmask (!%p406_p8), 130048  }
  0x20   : > { %409 = sbr.rel (%p406_p8) target bundleno = 2533 (0x9e5), region = 126  ;;  %1436 = vmatprep.subr.bf16.mxu0 (!%p406_p8), %v1629_v4  ;;  %s1740_s15 = sshll.u32 (!%p406_p8), %s412_s11, 3  ;;  %1438 = vmatprep.mubr.msk.bf16.mxu0 (!%p406_p8), %vm1630_vm0, %v1629_v4  ;;  %v1563_v44 = vld [vmem:[%s1897_s3] sm:$0xff] (!%p406_p8)   ;;  %v1564_v45 = vld [vmem:[%s1897_s3 + $0x8] sm:$0xff] (!%p406_p8)   ;;  %v1565_v46 = vld [vmem:[%s1897_s3 + $0x10] sm:$0xff] (!%p406_p8)  }
  0x21   : > { %1442 = vmatprep.subr.bf16.mxu1 (!%p406_p8), %v1629_v4  ;;  %1444 = vmatprep.mubr.msk.bf16.mxu1 (!%p406_p8), %vm1630_vm0, %v1629_v4  ;;  %s414_s16 = scalar_lea.vmem (!%p406_p8), [#allocation2], %s1740_s15  ;;  %s421_s20 = scalar_lea.vmem (!%p406_p8), [#allocation3], %s1740_s15  ;;  %v1566_v47 = vld [vmem:[%s1897_s3 + $0x18] sm:$0xff] (!%p406_p8)  }
  0x22   : > { %v1748_v5 = vld [vmem:[%s414_s16] sm:$0xff] (!%p406_p8)   ;;  %v1769_v16 = vld [vmem:[%s421_s20] sm:$0xff] (!%p406_p8)   ;;  %s1632_s21 = smov (!%p406_p8), 64   ;;  %s1633_s15 = smov (!%p406_p8), 32  }
  0x23   : > { %v528_v6 = vsel (!%p406_p8), %vm523_vm1, %v1748_v5, 0  ;;  %1443 = vmatpush3.bf16.msra.mxu1 (!%p406_p8), %v1769_v16 }
  0x24   : > { %1437 = vmatpush3.bf16.xpose.msra.mxu0 (!%p406_p8), %v528_v6  ;;  %1448 = vmatprep.subr.bf16.mxu1 (!%p406_p8), %v1629_v4 }
  0x25   : > { %1454 = vmatprep.subr.bf16.mxu0 (!%p406_p8), %v1629_v4 }
  0x27   : > { %s1911_s29 = smov (!%p472_p9, %s1619_s29), 1 }
  0x28   : > { %s1753_s27 = sshll.u32 %s1911_s29, 2  ;;  %s1631_s29 = smov 96  }
  0x29   : > { %s478_s19 = scalar_lea.vmem %s1894_s0, %s1753_s27  ;;  %s485_s12 = scalar_lea.vmem %s1899_s5, %s1753_s27 }
  0x2a   : > { %v494_v7 = vld [vmem:[%s478_s19] sm:$0xf]  ;;  %s492_s19 = scalar_lea.vmem %s1902_s8, %s1753_s27 }
  0x2b   : > { %v515_v8 = vunpack.c.l.bf16 %v494_v7 }
  0x2d   : > { %v516_v9 = vmul.f32 0.17677669, %v515_v8 }
  0x2f   : > { %v1760_v10 = vpack.c.bf16 %v516_v9, %v516_v9 }
  0x31   : > { %1439 = vmatmul.mubr.msk.bf16.vlgmr.msra.gmra.mrb[0].mxu0 %vm523_vm1, %v1760_v10  ;;  %637 = vrot.lane.b32.xlu1 %v1760_v10, %s1631_s29 }
  0x32   : > { %1456 = vmatprep.mubr.msk.bf16.mxu0 %vm1630_vm0, %v1629_v4 }
  0xa3   : > { %v638_v25 = vpop.permute.xlu1 %637 }
 0x104   : > { %v564_v11 = vpop.f32.mrb[0].mxu0 }
 0x105   : > { %v1440_v12 = vpop.f32.mrb[1].mxu0  ;;  %v571_v13 = vsel %vm570_vm2, %v564_v11, -inf }
 0x106   : > { %572 = vmax.xlane.f32.xlu0 %v571_v13  ;;  %v567_v14 = vpop.f32.mrb[2].mxu0 }
 0x107   : > { %v1441_v15 = vpop.f32.mrb[3].mxu0 }
 0x11c   : > { %639 = vrot.lane.b32.xlu0 %v1748_v5, %s1631_s29 }
 0x120   : > { %700 = vrot.lane.b32.xlu0 %v1769_v16, %s1631_s29 }
 0x193   : > { %v573_v17 = vpop.xlane.xlu0 %572 }
 0x194   : > { %v574_v18 = vmax.f32 %v573_v17, -1e+30 }
 0x196   : > { %v575_v19 = vsub.f32 %v564_v11, %v574_v18 }
 0x197   : > { %v640_v21 = vpop.permute.xlu0 %639 }
 0x198   : > { %v576_v20 = vmul.f32 1.442695, %v575_v19  ;;  %v645_v23 = vsel %vm523_vm1, %v640_v21, 0 }
 0x19a   : > { %1571 = vpow2.f32 %v576_v20 }
 0x19b   : > { %v701_v35 = vpop.permute.xlu0 %700 }
 0x19c   : > { %1455 = vmatpush3.bf16.msra.mxu0 %v701_v35 }
 0x19d   : > { %1468 = vmatprep.subr.bf16.mxu0 %v1629_v4 }
 0x1a4   : > { %v1572_v22 = vpop.eup %1571 }
 0x1a5   : > { %v583_v24 = vpack.c.bf16 %v1572_v22, %v1572_v22  ;;  %v578_v43 = vsel %vm570_vm2, %v1572_v22, 0.0 }
 0x1a7   : > { %1445 = vmatmul.mubr.msk.bf16.vlgmr.msra.gmra.mrb[0].mxu1 %vm570_vm2, %v583_v24 }
 0x1a8   : > { %1449 = vmatpush3.bf16.xpose.msra.mxu1 %v645_v23  ;;  %1450 = vmatprep.mubr.msk.bf16.mxu1 %vm1630_vm0, %v1629_v4 }
 0x1a9   : > { %1460 = vmatprep.subr.bf16.mxu1 %v1629_v4 }
 0x1af   : > { %1451 = vmatmul.mubr.msk.bf16.vlgmr.msra.gmra.mrb[4].mxu1 %vm523_vm1, %v638_v25 }
 0x1b0   : > { %1464 = vmatprep.mubr.msk.bf16.mxu1 %vm1630_vm0, %v1629_v4  ;;  %1461 = vmatpush3.bf16.msra.mxu1 %v1565_v46 }
 0x1b1   : > { %1462 = vmatprep.subr.bf16.mxu1 %v1629_v4 }
 0x1b4   : > { %1463 = vmatpush3.bf16.msra.mxu1 %v1566_v47 }
 0x1b5   : > { %1476 = vmatprep.subr.bf16.mxu1 %v1629_v4 }
 0x27a   : > { %v627_v26 = vpop.f32.mrb[0].mxu1 }
 0x27b   : > { %v1446_v27 = vpop.f32.mrb[1].mxu1 }
 0x27c   : > { %v630_v28 = vpop.f32.mrb[2].mxu1 }
 0x27d   : > { %v1447_v29 = vpop.f32.mrb[3].mxu1  ;;  %v1567_v28 = vld [vmem:[%s1897_s3 + $0x20] sm:$0xff]  }
 0x27e   : > { %v1568_v29 = vld [vmem:[%s1897_s3 + $0x28] sm:$0xff]  }
 0x282   : > { %v681_v30 = vpop.f32.mrb[4].mxu1 }
 0x283   : > { %v1452_v31 = vpop.f32.mrb[5].mxu1  ;;  %v687_v32 = vsel %vm570_vm2, %v681_v30, -inf }
 0x284   : > { %688 = vmax.xlane.f32.xlu1 %v687_v32  ;;  %v684_v33 = vpop.f32.mrb[6].mxu1 }
 0x285   : > { %v1453_v34 = vpop.f32.mrb[7].mxu1 }
 0x295   : > { %861 = vrot.lane.b32.xlu1 %v1748_v5, %s1632_s21 }
 0x299   : > { %859 = vrot.lane.b32.xlu1 %v1760_v10, %s1632_s21 }
 0x311   : > { %v689_v36 = vpop.xlane.xlu1 %688 }
 0x312   : > { %v690_v37 = vmax.f32 %v689_v36, -1e+30 }
 0x314   : > { %v691_v38 = vsub.f32 %v681_v30, %v690_v37 }
 0x315   : > { %v862_v57 = vpop.permute.xlu1 %861 }
 0x316   : > { %v692_v39 = vmul.f32 1.442695, %v691_v38  ;;  %v867_v62 = vsel %vm523_vm1, %v862_v57, 0  ;;  %v1570_v57 = vld [vmem:[%s1897_s3 + $0x38] sm:$0xff]  }
 0x318   : > { %1573 = vpow2.f32 %v692_v39 }
 0x319   : > { %v860_v0 = vpop.permute.xlu1 %859 }
 0x322   : > { %v1574_v40 = vpop.eup %1573 }
 0x323   : > { %v694_v41 = vsel %vm570_vm2, %v1574_v40, 0.0  ;;  %v699_v42 = vpack.c.bf16 %v1574_v40, %v1574_v40 }
 0x324   : > { %695 = vadd.xlane.f32.xlu0 %v694_v41 }
 0x325   : > { %1457 = vmatmul.mubr.msk.bf16.vlgmr.msra.gmra.mrb[4].mxu0 %vm570_vm2, %v699_v42 }
 0x326   : > { %1472 = vmatprep.mubr.msk.bf16.mxu0 %vm1630_vm0, %v1629_v4  ;;  %1469 = vmatpush3.bf16.msra.mxu0 %v1563_v44 }
 0x327   : > { %1470 = vmatprep.subr.bf16.mxu0 %v1629_v4 }
 0x328   : > { %579 = vadd.xlane.f32.xlu0 %v578_v43 }
 0x32a   : > { %1471 = vmatpush3.bf16.msra.mxu0 %v1564_v45 }
 0x32b   : > { %1482 = vmatprep.subr.bf16.mxu0 %v1629_v4 }
 0x33e   : > { %922 = vrot.lane.b32.xlu0 %v1769_v16, %s1632_s21 }
 0x342   : > { %1029 = vrot.lane.b32.xlu0 %v1748_v5, %s1633_s15 }
 0x346   : > { %1027 = vrot.lane.b32.xlu0 %v1760_v10, %s1633_s15 }
 0x3b1   : > { %v696_v48 = vpop.xlane.xlu0 %695 }
 0x3b2   : > { %vm697_vm4 = vcmp.eq.f32.partialorder %v696_v48, 0.0 }
 0x3b3   : > { %v698_v54 = vsel %vm697_vm4, 1.0, %v696_v48 }
 0x3b5   : > { %v580_v49 = vpop.xlane.xlu0 %579 }
 0x3b6   : > { %vm581_vm3 = vcmp.eq.f32.partialorder %v580_v49, 0.0 }
 0x3b7   : > { %v582_v50 = vsel %vm581_vm3, 1.0, %v580_v49 }
 0x3b8   : > { %1575 = vrcp.f32 %v582_v50 }
 0x3b9   : > { %1577 = vrcp.f32 %v698_v54  ;;  %v923_v18 = vpop.permute.xlu0 %922 }
 0x3bd   : > { %v1030_v22 = vpop.permute.xlu0 %1029 }
 0x3be   : > { %v1035_v24 = vsel %vm523_vm1, %v1030_v22, 0 }
 0x3c1   : > { %v1028_v27 = vpop.permute.xlu0 %1027 }
 0x3c2   : > { %v1576_v51 = vpop.eup %1575 }
 0x3c3   : > { %v634_v52 = vmul.f32 %v1576_v51, %v627_v26  ;;  %v1578_v55 = vpop.eup %1577 }
 0x3c5   : > { %v635_v53 = vpack.c.bf16 %v634_v52, %v634_v52  ;;  %v1569_v52 = vld [vmem:[%s1897_s3 + $0x30] sm:$0xff]  }
 0x3c7   : > { %1473 = vmatmul.mubr.msk.bf16.vlgmr.msra.gmra.mrb[8].mxu0 %vm523_vm1, %v635_v53 }
 0x3c8   : > { %1484 = vmatprep.mubr.msk.bf16.mxu0 %vm1630_vm0, %v1629_v4  ;;  %1483 = vmatpush3.bf16.msra.mxu0 %v923_v18 }
 0x3c9   : > { %1496 = vmatprep.subr.bf16.mxu0 %v1629_v4 }
 0x3f8   : > { %v740_v56 = vpop.f32.mrb[4].mxu0 }
 0x3f9   : > { %v747_v58 = vmul.f32 %v1578_v55, %v740_v56  ;;  %v1458_v59 = vpop.f32.mrb[5].mxu0 }
 0x3fa   : > { %v743_v60 = vpop.f32.mrb[6].mxu0 }
 0x3fb   : > { %v748_v61 = vpack.c.bf16 %v747_v58, %v747_v58  ;;  %v1459_v63 = vpop.f32.mrb[7].mxu0 }
 0x3fd   : > { %1465 = vmatmul.mubr.msk.bf16.vlgmr.msra.gmra.mrb[8].mxu1 %vm523_vm1, %v748_v61 }
 0x3fe   : > { %1477 = vmatpush3.bf16.xpose.msra.mxu1 %v867_v62  ;;  %1478 = vmatprep.mubr.msk.bf16.mxu1 %vm1630_vm0, %v1629_v4 }
 0x3ff   : > { %1488 = vmatprep.subr.bf16.mxu1 %v1629_v4 }
 0x405   : > { %1479 = vmatmul.mubr.msk.bf16.vlgmr.msra.gmra.mrb[12].mxu1 %vm523_vm1, %v860_v0 }
 0x406   : > { %1492 = vmatprep.mubr.msk.bf16.mxu1 %vm1630_vm0, %v1629_v4  ;;  %1489 = vmatpush3.bf16.msra.mxu1 %v1567_v28 }
 0x407   : > { %1490 = vmatprep.subr.bf16.mxu1 %v1629_v4 }
 0x40a   : > { %1491 = vmatpush3.bf16.msra.mxu1 %v1568_v29  ;;  %v1403_v29 = vld [vmem:[%s1901_s7] ss:$0 sm:$0xff] }
 0x40b   : > { %1502 = vmatprep.subr.bf16.mxu1 %v1629_v4 }
 0x49a   : > { %v853_v1 = vpop.f32.mrb[8].mxu0 }
 0x49b   : > { %v1474_v2 = vpop.f32.mrb[9].mxu0 }
 0x49c   : > { %v856_v3 = vpop.f32.mrb[10].mxu0  ;;  %v1197_v2 = vlaneseq }
 0x49d   : > { %v1475_v6 = vpop.f32.mrb[11].mxu0 }
 0x49e   : > { %v1198_v3 = vshrl.u32 %v1197_v2, 7  ;;  %v1195_v6 = vld [vmem:[%s1898_s4] sm:$0x1] }
 0x4d0   : > { %v798_v7 = vpop.f32.mrb[8].mxu1 }
 0x4d1   : > { %v1824_v8 = vadd.f32 %v853_v1, %v798_v7  ;;  %v1466_v9 = vpop.f32.mrb[9].mxu1  ;;  %v1196_v7 = vunpack.c.l.bf16 %v1195_v6 }
 0x4d2   : > { %v801_v11 = vpop.f32.mrb[10].mxu1  ;;  %v1202_v9 = vld [vmem:[%s485_s12] sm:$0xf] }
 0x4d3   : > { %v1467_v12 = vpop.f32.mrb[11].mxu1 }
 0x4d8   : > { %v903_v13 = vpop.f32.mrb[12].mxu1 }
 0x4d9   : > { %v1480_v14 = vpop.f32.mrb[13].mxu1  ;;  %v909_v15 = vsel %vm570_vm2, %v903_v13, -inf }
 0x4da   : > { %910 = vmax.xlane.f32.xlu1 %v909_v15  ;;  %v906_v17 = vpop.f32.mrb[14].mxu1  ;;  %v1203_v15 = vunpack.c.l.bf16 %v1202_v9 }
 0x4db   : > { %v1481_v5 = vpop.f32.mrb[15].mxu1 }
 0x567   : > { %v911_v10 = vpop.xlane.xlu1 %910 }
 0x568   : > { %v912_v19 = vmax.f32 %v911_v10, -1e+30 }
 0x56a   : > { %v913_v20 = vsub.f32 %v903_v13, %v912_v19 }
 0x56c   : > { %v914_v21 = vmul.f32 1.442695, %v913_v20 }
 0x56e   : > { %1579 = vpow2.f32 %v914_v21 }
 0x578   : > { %v1580_v23 = vpop.eup %1579 }
 0x579   : > { %v916_v25 = vsel %vm570_vm2, %v1580_v23, 0.0  ;;  %v921_v26 = vpack.c.bf16 %v1580_v23, %v1580_v23 }
 0x57a   : > { %917 = vadd.xlane.f32.xlu0 %v916_v25 }
 0x57b   : > { %1485 = vmatmul.mubr.msk.bf16.vlgmr.msra.gmra.mrb[12].mxu0 %vm570_vm2, %v921_v26 }
 0x57c   : > { %1497 = vmatpush3.bf16.xpose.msra.mxu0 %v1035_v24  ;;  %1498 = vmatprep.mubr.msk.bf16.mxu0 %vm1630_vm0, %v1629_v4 }
 0x57d   : > { %1508 = vmatprep.subr.bf16.mxu0 %v1629_v4 }
 0x583   : > { %1499 = vmatmul.mubr.msk.bf16.vlgmr.msra.gmra.mrb[16].mxu0 %vm523_vm1, %v1028_v27  ;;  %v1402_v27 = vld [vmem:[%s1900_s6] ss:$0 sm:$0xff] }
 0x584   : > { %1512 = vmatprep.mubr.msk.bf16.mxu0 %vm1630_vm0, %v1629_v4  ;;  %1509 = vmatpush3.bf16.msra.mxu0 %v1569_v52 }
 0x585   : > { %1510 = vmatprep.subr.bf16.mxu0 %v1629_v4 }
 0x588   : > { %1511 = vmatpush3.bf16.msra.mxu0 %v1570_v57 }
 0x607   : > { %v918_v30 = vpop.xlane.xlu0 %917 }
 0x608   : > { %vm919_vm5 = vcmp.eq.f32.partialorder %v918_v30, 0.0 }
 0x609   : > { %v920_v31 = vsel %vm919_vm5, 1.0, %v918_v30 }
 0x60a   : > { %1581 = vrcp.f32 %v920_v31 }
 0x614   : > { %v1582_v32 = vpop.eup %1581 }
 0x64e   : > { %v962_v33 = vpop.f32.mrb[12].mxu0 }
 0x64f   : > { %v969_v34 = vmul.f32 %v1582_v32, %v962_v33  ;;  %v1486_v35 = vpop.f32.mrb[13].mxu0 }
 0x650   : > { %v965_v36 = vpop.f32.mrb[14].mxu0 }
 0x651   : > { %v970_v37 = vpack.c.bf16 %v969_v34, %v969_v34  ;;  %v1487_v38 = vpop.f32.mrb[15].mxu0 }
 0x653   : > { %1493 = vmatmul.mubr.msk.bf16.vlgmr.msra.gmra.mrb[16].mxu1 %vm523_vm1, %v970_v37 }
 0x654   : > { %1504 = vmatprep.mubr.msk.bf16.mxu1 %vm1630_vm0, %v1629_v4 }
 0x656   : > { %v1071_v39 = vpop.f32.mrb[16].mxu0 }
 0x657   : > { %v1500_v40 = vpop.f32.mrb[17].mxu0  ;;  %v1077_v41 = vsel %vm570_vm2, %v1071_v39, -inf }
 0x658   : > { %1078 = vmax.xlane.f32.xlu1 %v1077_v41  ;;  %v1074_v42 = vpop.f32.mrb[18].mxu0 }
 0x659   : > { %v1501_v43 = vpop.f32.mrb[19].mxu0 }
 0x669   : > { %1090 = vrot.lane.b32.xlu1 %v1769_v16, %s1633_s15 }
 0x6e5   : > { %v1079_v44 = vpop.xlane.xlu1 %1078 }
 0x6e6   : > { %v1080_v45 = vmax.f32 %v1079_v44, -1e+30 }
 0x6e8   : > { %v1081_v46 = vsub.f32 %v1071_v39, %v1080_v45 }
 0x6e9   : > { %v1091_v47 = vpop.permute.xlu1 %1090 }
 0x6ea   : > { %v1082_v48 = vmul.f32 1.442695, %v1081_v46  ;;  %1503 = vmatpush3.bf16.msra.mxu1 %v1091_v47 }
 0x6ec   : > { %1583 = vpow2.f32 %v1082_v48 }
 0x6f6   : > { %v1584_v49 = vpop.eup %1583 }
 0x6f7   : > { %v1084_v50 = vsel %vm570_vm2, %v1584_v49, 0.0  ;;  %v1089_v51 = vpack.c.bf16 %v1584_v49, %v1584_v49 }
 0x6f8   : > { %1085 = vadd.xlane.f32.xlu1 %v1084_v50 }
 0x6f9   : > { %1505 = vmatmul.mubr.msk.bf16.vlgmr.msra.gmra.mrb[20].mxu1 %vm570_vm2, %v1089_v51 }
 0x726   : > { %v1020_v16 = vpop.f32.mrb[16].mxu1 }
 0x727   : > { %v1026_v53 = vadd.f32 %v1020_v16, %v1824_v8  ;;  %v1494_v54 = vpop.f32.mrb[17].mxu1  ;;  %v1199_v8 = vsub.s32 0, %v1198_v3 }
 0x728   : > { %v1023_v55 = vpop.f32.mrb[18].mxu1 }
 0x729   : > { %v1495_v56 = vpop.f32.mrb[19].mxu1  ;;  %v1200_v11 = vrot.slane %v1196_v7, %v1199_v8 }
 0x785   : > { %v1086_v58 = vpop.xlane.xlu1 %1085 }
 0x786   : > { %vm1087_vm6 = vcmp.eq.f32.partialorder %v1086_v58, 0.0 }
 0x787   : > { %v1088_v59 = vsel %vm1087_vm6, 1.0, %v1086_v58 }
 0x788   : > { %1585 = vrcp.f32 %v1088_v59 }
 0x792   : > { %v1586_v60 = vpop.eup %1585 }
 0x7cc   : > { %v1130_v61 = vpop.f32.mrb[20].mxu1 }
 0x7cd   : > { %v1137_v62 = vmul.f32 %v1586_v60, %v1130_v61  ;;  %v1506_v4 = vpop.f32.mrb[21].mxu1 }
 0x7ce   : > { %v1133_v63 = vpop.f32.mrb[22].mxu1 }
 0x7cf   : > { %v1138_v0 = vpack.c.bf16 %v1137_v62, %v1137_v62  ;;  %v1507_v1 = vpop.f32.mrb[23].mxu1 }
 0x7d1   : > { %1513 = vmatmul.mubr.msk.bf16.vlgmr.msra.gmra.mrb[20].mxu0 %vm523_vm1, %v1138_v0 }
 0x8a4   : > { %v1188_v12 = vpop.f32.mrb[20].mxu0 }
 0x8a5   : > { %v1194_v13 = vadd.f32 %v1188_v12, %v1026_v53  ;;  %v1514_v14 = vpop.f32.mrb[21].mxu0 }
 0x8a6   : > { %v1191_v17 = vpop.f32.mrb[22].mxu0 }
 0x8a7   : > { %v1201_v5 = vadd.f32 %v1200_v11, %v1194_v13  ;;  %v1515_v18 = vpop.f32.mrb[23].mxu0 }
 0x8a9   : > { %v1204_v10 = vadd.f32 %v1203_v15, %v1201_v5 }
 0x8ab   : > { %1205 = vadd.xlane.f32.xlu0 %v1204_v10 }
 0x938   : > { %v1206_v19 = vpop.xlane.xlu0 %1205 }
 0x939   : > { %v1208_v20 = vmul.f32 0.0078125, %v1206_v19 }
 0x93b   : > { %v1209_v21 = vsub.f32 %v1204_v10, %v1208_v20 }
 0x93d   : > { %v1210_v22 = vmul.f32 %v1209_v21, %v1209_v21 }
 0x93f   : > { %1211 = vadd.xlane.f32.xlu0 %v1210_v22 }
 0x9cc   : > { %v1212_v23 = vpop.xlane.xlu0 %1211 }
 0x9cd   : > { %v1213_v24 = vmul.f32 0.0078125, %v1212_v23 }
 0x9cf   : > { %v1214_v25 = vadd.f32 1e-05, %v1213_v24 }
 0x9d1   : > { %1587 = vrsqrt.f32 %v1214_v25 }
 0x9db   : > { %v1588_v26 = vpop.eup %1587 }
 0x9dc   : > { %v1216_v28 = vmul.f32 %v1588_v26, %v1209_v21 }
 0x9de   : > { %v1224_v30 = vmul.f32 %v1402_v27, %v1216_v28 }
 0x9e0   : > { %v1232_v31 = vadd.f32 %v1403_v29, %v1224_v30 }
 0x9e2   : > { %v1233_v32 = vpack.c.bf16 %v1232_v31, %v1232_v31 }
 0x9e4   : > { %1234 = vst [vmem:[%s492_s19] sm:$0xf] %v1233_v32 }
 0x9e5 PF: > { %s18_s9 = sadd.s32 1, %s1627_s9   ;;  %s1904_s27 = smov %s1615_s28 }
 0x9e6   : > { %p15_p10 = scmp.ge.s32.totalorder %s18_s9, 4   ;;  %s1905_s28 = smov %s1718_s14 }
 0x9e7   : > { %s1906_s29 = smov %s1623_s30  ;;  %s1907_s30 = smov %s1909_s10 }
 0x9e8   :  { %17 = sbr.rel (!%p15_p10) target bundleno = 3 (0x3), region = 183 }

</bundles_post_ra>
